<compile_context>
chip_gen: v7x
topology: tpu7x:2x2x1
jax: 0.10.0
libtpu: 0.0.40
codegen_flags: <defaults>
</compile_context>

<pallas_src>
import functools

import numpy as np

import jax
import jax.numpy as jnp
from jax.experimental import pallas as pl
from jax.experimental.pallas import tpu as pltpu


# ----------------------------------------------------------------------------
# Small synthetic config (mirrors args.* of the PyTorch module).
# ----------------------------------------------------------------------------
FPN_DIM = 32          # args.latr_cfg.fpn_dim
NUM_QUERY = 12        # args.latr_cfg.num_query
NUM_CATEGORY = 5      # args.num_category
NUM_Y_STEPS = 8       # args.num_y_steps
ENC_C1, ENC_C2 = 16, 32
CIN, CIN_PAD = 3, 4   # image channels, padded to 4 for lane-dense conv slabs
HEAD_PAD = 128        # lane-dense padded width of the fused cls+reg head output


# ----------------------------------------------------------------------------
# Fully fused forward kernel (one grid step per batch element).
# ----------------------------------------------------------------------------
def _latr_fused_kernel(ximg_ref, sel1_ref, w1big_ref, b1t_ref,
                       sel2_ref, w2big_ref, b2t_ref,
                       a1_ref, a2_ref, up_ref, by_ref,
                       q_ref, kw_ref, bk_ref, vw_ref, bv_ref,
                       ow_ref, dec0_ref, g1w_ref, g1b_ref,
                       g2w_ref, g2b_ref, hw_ref, hb_ref,
                       o_ref,
                       f1s_ref, f2s_ref,
                       *, h1, w1, h2, w2):
    f32, bf16 = jnp.float32, jnp.bfloat16

    def conv_stage(x_bf, sel_ref, wbig_ref, bt_ref):
        # 3x3 / stride-2 / pad-1 conv + bias + ReLU as ONE banded GEMM:
        #  - the 3 row taps are gathered (with implicit zero H-padding) by
        #    tiny 0/1 row-selection matmuls and lane-concatenated at
        #    128-aligned offsets -> K = 3 * Win * Cin;
        #  - the 3 column taps + channels are folded into the weight matrix
        #    (banded layout, built once in the wrapper) -> N = Wout * Cout.
        slabs = [jnp.dot(sel_ref[i], x_bf,
                         preferred_element_type=f32).astype(bf16)
                 for i in range(3)]
        xcat = jnp.concatenate(slabs, axis=-1)
        y = jnp.dot(xcat, wbig_ref[...], preferred_element_type=f32)
        return jnp.maximum(y + bt_ref[...], 0.0)

    # ---- encoder: two stride-2 conv stages, activations stay in VMEM ----
    x0 = ximg_ref[0].astype(bf16)                                   # (H, W*4)
    f1 = conv_stage(x0, sel1_ref, w1big_ref, b1t_ref)               # (H1, W1*C1)
    f2 = conv_stage(f1.astype(bf16), sel2_ref, w2big_ref, b2t_ref)  # (H2, W2*C2)

    # ---- relayout (H, W*C) -> token-major (W*H, C) via VMEM scratch ----
    # (w-major token order; pos-encoding / upsample constants are built in the
    #  same order, and the query head is permutation-invariant over tokens)
    for wi in range(w1):
        f1s_ref[wi] = f1[:, wi * ENC_C1:(wi + 1) * ENC_C1]
    for wi in range(w2):
        f2s_ref[wi] = f2[:, wi * ENC_C2:(wi + 1) * ENC_C2]
    f1p = f1s_ref[...].reshape(w1 * h1, ENC_C1).astype(bf16)        # (S, 16)
    f2p = f2s_ref[...].reshape(w2 * h2, ENC_C2).astype(bf16)        # (S/4, 32)

    # ---- neck: FPN laterals + top-down add + ms2one (weights pre-folded);
    # coarse-level term is computed at coarse resolution and replicated with a
    # 0/1 nearest-neighbour upsample matmul.
    t2 = jnp.dot(f2p, a2_ref[...], preferred_element_type=f32)           # (S/4, D)
    t2u = jnp.dot(up_ref[...], t2.astype(bf16), preferred_element_type=f32)
    mem = jnp.maximum(
        jnp.dot(f1p, a1_ref[...], preferred_element_type=f32) + t2u + by_ref[...],
        0.0).astype(bf16)                                                # (S, D)

    # ---- decoder: cross-attention (pos + 1/sqrt(D) pre-folded) + FFN + head --
    k = jnp.dot(mem, kw_ref[...], preferred_element_type=f32) + bk_ref[...]
    v = jnp.dot(mem, vw_ref[...], preferred_element_type=f32) + bv_ref[...]
    s = jax.lax.dot_general(q_ref[...], k.astype(bf16),
                            dimension_numbers=(((1,), (1,)), ((), ())),
                            preferred_element_type=f32)                  # (NQ, S)
    s = s - jnp.max(s, axis=-1, keepdims=True)
    p = jnp.exp(s)
    p = p * pl.reciprocal(jnp.sum(p, axis=-1, keepdims=True), approx=True)
    attn = jnp.dot(p.astype(bf16), v.astype(bf16), preferred_element_type=f32)
    dec = dec0_ref[...] + jnp.dot(attn.astype(bf16), ow_ref[...],
                                  preferred_element_type=f32)
    hid = jnp.maximum(jnp.dot(dec.astype(bf16), g1w_ref[...],
                              preferred_element_type=f32) + g1b_ref[...], 0.0)
    dec = dec + jnp.dot(hid.astype(bf16), g2w_ref[...],
                        preferred_element_type=f32) + g2b_ref[...]
    # fused cls+reg head, output slab padded to 128 lanes (lane-dense store)
    o_ref[0] = jnp.dot(dec.astype(bf16), hw_ref[...],
                       preferred_element_type=f32) + hb_ref[...]


# ----------------------------------------------------------------------------
# Wrapper-side constant builders (weight folding, all tiny).
# ----------------------------------------------------------------------------
def _banded_conv_weight(w, win):
    """w: (3,3,Cin,Cout). Fold the 3 column taps (stride 2, pad 1) + channels
    of a 3x3 conv into a (3*win*Cin, (win//2)*Cout) GEMM weight; the 3 row
    taps stay separate (the kernel lane-concatenates them into K)."""
    kh, kw, cin, cout = w.shape
    wout = win // 2
    cw = jnp.arange(win)[:, None]
    c = jnp.arange(wout)[None, :]
    j = cw - 2 * c + 1                                        # (win, wout)
    valid = ((j >= 0) & (j < kw)).astype(w.dtype)
    jc = jnp.clip(j, 0, kw - 1)
    wb = w[:, jc, :, :] * valid[None, :, :, None, None]       # (3,win,wout,cin,cout)
    return wb.transpose(0, 1, 3, 2, 4).reshape(kh * win * cin, wout * cout)


def _row_select(hin):
    """(3, hin//2, hin) 0/1 matrices: sel[i] @ x == rows (2a + i - 1) of x,
    with out-of-range (padding) rows giving zeros."""
    hout = hin // 2
    a = jnp.arange(hout)[:, None]
    r = jnp.arange(hin)[None, :]
    return jnp.stack([(r == 2 * a + i - 1) for i in range(3)]).astype(jnp.bfloat16)


def _upsample_mat(h1, w1):
    """0/1 nearest-neighbour 2x upsample matrix in w-major token order."""
    h2, w2 = h1 // 2, w1 // 2
    p = jnp.arange(w1 * h1)
    wf, hf = p // h1, p % h1
    pc = (wf // 2) * h2 + hf // 2
    return (pc[:, None] == jnp.arange(h2 * w2)[None, :]).astype(jnp.bfloat16)


@functools.lru_cache(maxsize=None)
def sine_pos_encoding_wmajor(H, W, num_feats, temperature=10000.0, eps=1e-6):
    """SinePositionalEncoding(num_feats, normalize=True), numpy constant,
    flattened in w-major token order to match the kernel's relayout."""
    ones = np.ones((H, W), np.float32)
    y_embed = np.cumsum(ones, axis=0)
    x_embed = np.cumsum(ones, axis=1)
    y_embed = y_embed / (y_embed[-1:, :] + eps) * 2 * np.pi
    x_embed = x_embed / (x_embed[:, -1:] + eps) * 2 * np.pi
    dim_t = temperature ** (2.0 * (np.arange(num_feats) // 2) / num_feats)
    pos_x = x_embed[..., None] / dim_t
    pos_y = y_embed[..., None] / dim_t
    pos_x = np.stack([np.sin(pos_x[..., 0::2]), np.cos(pos_x[..., 1::2])],
                     axis=-1).reshape(H, W, num_feats)
    pos_y = np.stack([np.sin(pos_y[..., 0::2]), np.cos(pos_y[..., 1::2])],
                     axis=-1).reshape(H, W, num_feats)
    pos = np.concatenate([pos_y, pos_x], axis=-1)             # (H, W, 2*nf)
    pos = pos.transpose(1, 0, 2).reshape(W * H, 2 * num_feats)
    return np.ascontiguousarray(pos).astype(np.float32)


def _bcast(shape):
    n = len(shape)
    return pl.BlockSpec(tuple(shape), lambda b: (0,) * n)


# ----------------------------------------------------------------------------
# Model: parameters + forward
# ----------------------------------------------------------------------------
def init_params(key):
    ks = iter(jax.random.split(key, 32))
    s = 0.05

    def w(shape):
        return jax.random.normal(next(ks), shape, jnp.float32) * s

    def b(n):
        return jnp.zeros((n,), jnp.float32)

    return {
        # encoder (two conv stages, stride 2 each); weights tap-major [9,Cin,Cout]
        "enc1_w": w((9, CIN, ENC_C1)),        "enc1_b": b(ENC_C1),
        "enc2_w": w((9, ENC_C1, ENC_C2)),     "enc2_b": b(ENC_C2),
        # neck: FPN lateral 1x1 convs to FPN_DIM
        "lat1_w": w((ENC_C1, FPN_DIM)),       "lat1_b": b(FPN_DIM),
        "lat2_w": w((ENC_C2, FPN_DIM)),       "lat2_b": b(FPN_DIM),
        # ms2one: concat of 2 levels -> 1x1 conv to FPN_DIM
        "ms2one_w": w((2 * FPN_DIM, FPN_DIM)), "ms2one_b": b(FPN_DIM),
        # head: learned queries + single cross-attention decoder layer
        "query_embed": w((NUM_QUERY, FPN_DIM)),
        "q_w": w((FPN_DIM, FPN_DIM)), "q_b": b(FPN_DIM),
        "k_w": w((FPN_DIM, FPN_DIM)), "k_b": b(FPN_DIM),
        "v_w": w((FPN_DIM, FPN_DIM)), "v_b": b(FPN_DIM),
        "o_w": w((FPN_DIM, FPN_DIM)), "o_b": b(FPN_DIM),
        "ffn1_w": w((FPN_DIM, 2 * FPN_DIM)), "ffn1_b": b(2 * FPN_DIM),
        "ffn2_w": w((2 * FPN_DIM, FPN_DIM)), "ffn2_b": b(FPN_DIM),
        # prediction heads
        "cls_w": w((FPN_DIM, NUM_CATEGORY)),    "cls_b": b(NUM_CATEGORY),
        "reg_w": w((FPN_DIM, 3 * NUM_Y_STEPS)), "reg_b": b(3 * NUM_Y_STEPS),
    }


def latr_forward(params, image_nchw):
    """image_nchw: [B, 3, H, W] (PyTorch convention). Returns LATR-style dict."""
    x = jnp.transpose(image_nchw, (0, 2, 3, 1))               # NCHW -> NHWC
    B, H, W, cin = x.shape
    assert cin == CIN and H % 4 == 0 and W % 4 == 0
    H1, W1, H2, W2 = H // 2, W // 2, H // 4, W // 4
    D = FPN_DIM
    bf = lambda a: a.astype(jnp.bfloat16)

    # image in lane-dense (H, W*4) layout (channels zero-padded 3 -> 4)
    ximg = jnp.pad(x, ((0, 0), (0, 0), (0, 0), (0, CIN_PAD - CIN)))
    ximg = ximg.reshape(B, H, W * CIN_PAD)

    # ---- encoder weight folding (banded, column taps + Cin into K rows) ----
    w1 = jnp.pad(params["enc1_w"].reshape(3, 3, CIN, ENC_C1),
                 ((0, 0), (0, 0), (0, CIN_PAD - CIN), (0, 0)))
    w2 = params["enc2_w"].reshape(3, 3, ENC_C1, ENC_C2)
    w1big = bf(_banded_conv_weight(w1, W))      # (3*W*4,  W1*C1)
    w2big = bf(_banded_conv_weight(w2, W1))     # (3*W1*C1, W2*C2)
    sel1, sel2 = _row_select(H), _row_select(H1)
    b1t = jnp.tile(params["enc1_b"], W1).reshape(1, W1 * ENC_C1)
    b2t = jnp.tile(params["enc2_b"], W2).reshape(1, W2 * ENC_C2)

    # ---- neck weight folding (laterals + ms2one collapsed; coarse-first) ----
    wa, wb_ = params["ms2one_w"][:D], params["ms2one_w"][D:]
    a1 = bf(params["lat1_w"] @ wa)
    a2 = bf(params["lat2_w"] @ (wa + wb_))
    by = (params["lat1_b"] @ wa + params["lat2_b"] @ (wa + wb_)
          + params["ms2one_b"]).reshape(1, D)
    up = _upsample_mat(H1, W1)                  # (S, S/4) 0/1

    # ---- decoder folding: constant pos encoding + scale pre-folded ----
    pos = jnp.asarray(sine_pos_encoding_wmajor(H1, W1, D // 2))   # (S, D) const
    scale = 1.0 / float(D) ** 0.5
    q = bf((params["query_embed"] @ params["q_w"] + params["q_b"]) * scale)
    bk = pos @ params["k_w"] + params["k_b"]
    bv = pos @ params["v_w"] + params["v_b"]
    dec0 = params["query_embed"] + params["o_b"]

    n_used = NUM_CATEGORY + 3 * NUM_Y_STEPS
    hw = bf(jnp.concatenate(
        [params["cls_w"], params["reg_w"],
         jnp.zeros((D, HEAD_PAD - n_used), jnp.float32)], axis=1))
    hb = jnp.concatenate(
        [params["cls_b"], params["reg_b"],
         jnp.zeros((HEAD_PAD - n_used,), jnp.float32)]).reshape(1, HEAD_PAD)

    consts = (sel1, w1big, b1t, sel2, w2big, b2t, a1, a2, up, by,
              q, bf(params["k_w"]), bk, bf(params["v_w"]), bv,
              bf(params["o_w"]), dec0,
              bf(params["ffn1_w"]), params["ffn1_b"].reshape(1, 2 * D),
              bf(params["ffn2_w"]), params["ffn2_b"].reshape(1, D),
              hw, hb)

    kern = functools.partial(_latr_fused_kernel, h1=H1, w1=W1, h2=H2, w2=W2)

    out = pl.pallas_call(
        kern,
        out_shape=jax.ShapeDtypeStruct((B, NUM_QUERY, HEAD_PAD), jnp.float32),
        grid=(B,),
        in_specs=[pl.BlockSpec((1, H, W * CIN_PAD), lambda b: (b, 0, 0))]
                 + [_bcast(c.shape) for c in consts],
        out_specs=pl.BlockSpec((1, NUM_QUERY, HEAD_PAD), lambda b: (b, 0, 0)),
        scratch_shapes=[pltpu.VMEM((W1, H1, ENC_C1), jnp.float32),
                        pltpu.VMEM((W2, H2, ENC_C2), jnp.float32)],
        compiler_params=pltpu.CompilerParams(dimension_semantics=("parallel",)),
    )(ximg, *consts)

    cls = out[..., :NUM_CATEGORY]
    reg = out[..., NUM_CATEGORY:n_used]

    # TODO(synk): original LATRHead denormalizes line preds with
    # position_range / top_view_region and lidar2img projection; kept raw here.
    return {
        "all_cls_scores": cls[None],   # [num_decoder_layers=1, B, num_query, num_category]
        "all_line_preds": reg[None],   # [1, B, num_query, 3 * num_y_steps]
    }


# ----------------------------------------------------------------------------
# Entry point
# ----------------------------------------------------------------------------
if __name__ == "__main__":
    key = jax.random.PRNGKey(0)
    pkey, xkey = jax.random.split(key)
    params = init_params(pkey)

    # image in PyTorch NCHW convention: batch=2, channels=3, spatial=32
    image = jax.random.normal(xkey, (2, 3, 32, 32), jnp.float32)

    out = jax.jit(latr_forward)(params, image)
    jax.block_until_ready(out)

    assert out["all_cls_scores"].shape == (1, 2, NUM_QUERY, NUM_CATEGORY)
    assert out["all_line_preds"].shape == (1, 2, NUM_QUERY, 3 * NUM_Y_STEPS)
    print("KERNEL_OK")
</pallas_src>

<mosaic_0001>
module attributes {stable_mosaic.version = 11 : i64} {
  func.func @_latr_fused_kernel(%arg0: i32, %arg1: memref<1x32x128xf32, #tpu.memory_space<vmem>>, %arg2: memref<3x16x32xbf16, #tpu.memory_space<vmem>>, %arg3: memref<384x256xbf16, #tpu.memory_space<vmem>>, %arg4: memref<1x256xf32, #tpu.memory_space<vmem>>, %arg5: memref<3x8x16xbf16, #tpu.memory_space<vmem>>, %arg6: memref<768x256xbf16, #tpu.memory_space<vmem>>, %arg7: memref<1x256xf32, #tpu.memory_space<vmem>>, %arg8: memref<16x32xbf16, #tpu.memory_space<vmem>>, %arg9: memref<32x32xbf16, #tpu.memory_space<vmem>>, %arg10: memref<256x64xbf16, #tpu.memory_space<vmem>>, %arg11: memref<1x32xf32, #tpu.memory_space<vmem>>, %arg12: memref<12x32xbf16, #tpu.memory_space<vmem>>, %arg13: memref<32x32xbf16, #tpu.memory_space<vmem>>, %arg14: memref<256x32xf32, #tpu.memory_space<vmem>>, %arg15: memref<32x32xbf16, #tpu.memory_space<vmem>>, %arg16: memref<256x32xf32, #tpu.memory_space<vmem>>, %arg17: memref<32x32xbf16, #tpu.memory_space<vmem>>, %arg18: memref<12x32xf32, #tpu.memory_space<vmem>>, %arg19: memref<32x64xbf16, #tpu.memory_space<vmem>>, %arg20: memref<1x64xf32, #tpu.memory_space<vmem>>, %arg21: memref<64x32xbf16, #tpu.memory_space<vmem>>, %arg22: memref<1x32xf32, #tpu.memory_space<vmem>>, %arg23: memref<32x128xbf16, #tpu.memory_space<vmem>>, %arg24: memref<1x128xf32, #tpu.memory_space<vmem>>, %arg25: memref<1x12x128xf32, #tpu.memory_space<vmem>>, %arg26: memref<16x16x16xf32, #tpu.memory_space<vmem>>, %arg27: memref<8x8x32xf32, #tpu.memory_space<vmem>>) attributes {dimension_semantics = [#tpu.dimension_semantics<parallel>], iteration_bounds = array<i64: 2>, scalar_prefetch = 0 : i64, scratch_operands = 2 : i64, tpu.core_type = #tpu.core_type<tc>, window_params = [{transform_indices = @transform_0, window_bounds = array<i64: 1, 32, 128>}, {pipeline_mode = #tpu.pipeline_mode<synchronous>, transform_indices = @transform_1, window_bounds = array<i64: 3, 16, 32>}, {pipeline_mode = #tpu.pipeline_mode<synchronous>, transform_indices = @transform_2, window_bounds = array<i64: 384, 256>}, {pipeline_mode = #tpu.pipeline_mode<synchronous>, transform_indices = @transform_3, window_bounds = array<i64: 1, 256>}, {pipeline_mode = #tpu.pipeline_mode<synchronous>, transform_indices = @transform_4, window_bounds = array<i64: 3, 8, 16>}, {pipeline_mode = #tpu.pipeline_mode<synchronous>, transform_indices = @transform_5, window_bounds = array<i64: 768, 256>}, {pipeline_mode = #tpu.pipeline_mode<synchronous>, transform_indices = @transform_6, window_bounds = array<i64: 1, 256>}, {pipeline_mode = #tpu.pipeline_mode<synchronous>, transform_indices = @transform_7, window_bounds = array<i64: 16, 32>}, {pipeline_mode = #tpu.pipeline_mode<synchronous>, transform_indices = @transform_8, window_bounds = array<i64: 32, 32>}, {pipeline_mode = #tpu.pipeline_mode<synchronous>, transform_indices = @transform_9, window_bounds = array<i64: 256, 64>}, {pipeline_mode = #tpu.pipeline_mode<synchronous>, transform_indices = @transform_10, window_bounds = array<i64: 1, 32>}, {pipeline_mode = #tpu.pipeline_mode<synchronous>, transform_indices = @transform_11, window_bounds = array<i64: 12, 32>}, {pipeline_mode = #tpu.pipeline_mode<synchronous>, transform_indices = @transform_12, window_bounds = array<i64: 32, 32>}, {pipeline_mode = #tpu.pipeline_mode<synchronous>, transform_indices = @transform_13, window_bounds = array<i64: 256, 32>}, {pipeline_mode = #tpu.pipeline_mode<synchronous>, transform_indices = @transform_14, window_bounds = array<i64: 32, 32>}, {pipeline_mode = #tpu.pipeline_mode<synchronous>, transform_indices = @transform_15, window_bounds = array<i64: 256, 32>}, {pipeline_mode = #tpu.pipeline_mode<synchronous>, transform_indices = @transform_16, window_bounds = array<i64: 32, 32>}, {pipeline_mode = #tpu.pipeline_mode<synchronous>, transform_indices = @transform_17, window_bounds = array<i64: 12, 32>}, {pipeline_mode = #tpu.pipeline_mode<synchronous>, transform_indices = @transform_18, window_bounds = array<i64: 32, 64>}, {pipeline_mode = #tpu.pipeline_mode<synchronous>, transform_indices = @transform_19, window_bounds = array<i64: 1, 64>}, {pipeline_mode = #tpu.pipeline_mode<synchronous>, transform_indices = @transform_20, window_bounds = array<i64: 64, 32>}, {pipeline_mode = #tpu.pipeline_mode<synchronous>, transform_indices = @transform_21, window_bounds = array<i64: 1, 32>}, {pipeline_mode = #tpu.pipeline_mode<synchronous>, transform_indices = @transform_22, window_bounds = array<i64: 32, 128>}, {pipeline_mode = #tpu.pipeline_mode<synchronous>, transform_indices = @transform_23, window_bounds = array<i64: 1, 128>}, {transform_indices = @transform_24, window_bounds = array<i64: 1, 12, 128>}]} {
    %c0 = arith.constant 0 : index
    %c0_0 = arith.constant 0 : index
    %c0_1 = arith.constant 0 : index
    %0 = vector.load %arg1[%c0, %c0_0, %c0_1] : memref<1x32x128xf32, #tpu.memory_space<vmem>>, vector<1x32x128xf32>
    %1 = vector.shape_cast %0 : vector<1x32x128xf32> to vector<32x128xf32>
    %2 = arith.truncf %1 : vector<32x128xf32> to vector<32x128xbf16>
    %c0_2 = arith.constant 0 : index
    %c0_3 = arith.constant 0 : index
    %c0_4 = arith.constant 0 : index
    %3 = vector.load %arg2[%c0_2, %c0_3, %c0_4] : memref<3x16x32xbf16, #tpu.memory_space<vmem>>, vector<1x16x32xbf16>
    %4 = vector.shape_cast %3 : vector<1x16x32xbf16> to vector<16x32xbf16>
    %cst = arith.constant dense<0.000000e+00> : vector<16x128xf32>
    %5 = tpu.matmul %4, %2, %cst {dimension_numbers = #tpu.dot_dimension_numbers<[1], [0], [0], [1], [0, 0, 1, 1], [], []>} : vector<16x32xbf16>, vector<32x128xbf16>, vector<16x128xf32> -> vector<16x128xf32>
    %6 = arith.truncf %5 : vector<16x128xf32> to vector<16x128xbf16>
    %c1 = arith.constant 1 : index
    %c0_5 = arith.constant 0 : index
    %c0_6 = arith.constant 0 : index
    %7 = vector.load %arg2[%c1, %c0_5, %c0_6] : memref<3x16x32xbf16, #tpu.memory_space<vmem>>, vector<1x16x32xbf16>
    %8 = vector.shape_cast %7 : vector<1x16x32xbf16> to vector<16x32xbf16>
    %cst_7 = arith.constant dense<0.000000e+00> : vector<16x128xf32>
    %9 = tpu.matmul %8, %2, %cst_7 {dimension_numbers = #tpu.dot_dimension_numbers<[1], [0], [0], [1], [0, 0, 1, 1], [], []>} : vector<16x32xbf16>, vector<32x128xbf16>, vector<16x128xf32> -> vector<16x128xf32>
    %10 = arith.truncf %9 : vector<16x128xf32> to vector<16x128xbf16>
    %c2 = arith.constant 2 : index
    %c0_8 = arith.constant 0 : index
    %c0_9 = arith.constant 0 : index
    %11 = vector.load %arg2[%c2, %c0_8, %c0_9] : memref<3x16x32xbf16, #tpu.memory_space<vmem>>, vector<1x16x32xbf16>
    %12 = vector.shape_cast %11 : vector<1x16x32xbf16> to vector<16x32xbf16>
    %cst_10 = arith.constant dense<0.000000e+00> : vector<16x128xf32>
    %13 = tpu.matmul %12, %2, %cst_10 {dimension_numbers = #tpu.dot_dimension_numbers<[1], [0], [0], [1], [0, 0, 1, 1], [], []>} : vector<16x32xbf16>, vector<32x128xbf16>, vector<16x128xf32> -> vector<16x128xf32>
    %14 = arith.truncf %13 : vector<16x128xf32> to vector<16x128xbf16>
    %15 = tpu.concatenate %6, %10, %14 in 1 : vector<16x128xbf16>, vector<16x128xbf16>, vector<16x128xbf16> -> vector<16x384xbf16>
    %c0_11 = arith.constant 0 : index
    %c0_12 = arith.constant 0 : index
    %16 = vector.load %arg3[%c0_11, %c0_12] : memref<384x256xbf16, #tpu.memory_space<vmem>>, vector<384x256xbf16>
    %cst_13 = arith.constant dense<0.000000e+00> : vector<16x256xf32>
    %17 = tpu.matmul %15, %16, %cst_13 {dimension_numbers = #tpu.dot_dimension_numbers<[1], [0], [0], [1], [0, 0, 1, 1], [], []>} : vector<16x384xbf16>, vector<384x256xbf16>, vector<16x256xf32> -> vector<16x256xf32>
    %c0_14 = arith.constant 0 : index
    %c0_15 = arith.constant 0 : index
    %18 = vector.load %arg4[%c0_14, %c0_15] : memref<1x256xf32, #tpu.memory_space<vmem>>, vector<1x256xf32>
    %19 = vector.broadcast %18 : vector<1x256xf32> to vector<16x256xf32>
    %20 = arith.addf %17, %19 : vector<16x256xf32>
    %cst_16 = arith.constant 0.000000e+00 : f32
    %21 = vector.broadcast %cst_16 : f32 to vector<16x256xf32>
    %22 = arith.maximumf %20, %21 : vector<16x256xf32>
    %23 = arith.truncf %22 : vector<16x256xf32> to vector<16x256xbf16>
    %c0_17 = arith.constant 0 : index
    %c0_18 = arith.constant 0 : index
    %c0_19 = arith.constant 0 : index
    %24 = vector.load %arg5[%c0_17, %c0_18, %c0_19] : memref<3x8x16xbf16, #tpu.memory_space<vmem>>, vector<1x8x16xbf16>
    %25 = vector.shape_cast %24 : vector<1x8x16xbf16> to vector<8x16xbf16>
    %cst_20 = arith.constant dense<0.000000e+00> : vector<8x256xf32>
    %26 = tpu.matmul %25, %23, %cst_20 {dimension_numbers = #tpu.dot_dimension_numbers<[1], [0], [0], [1], [0, 0, 1, 1], [], []>} : vector<8x16xbf16>, vector<16x256xbf16>, vector<8x256xf32> -> vector<8x256xf32>
    %27 = arith.truncf %26 : vector<8x256xf32> to vector<8x256xbf16>
    %c1_21 = arith.constant 1 : index
    %c0_22 = arith.constant 0 : index
    %c0_23 = arith.constant 0 : index
    %28 = vector.load %arg5[%c1_21, %c0_22, %c0_23] : memref<3x8x16xbf16, #tpu.memory_space<vmem>>, vector<1x8x16xbf16>
    %29 = vector.shape_cast %28 : vector<1x8x16xbf16> to vector<8x16xbf16>
    %cst_24 = arith.constant dense<0.000000e+00> : vector<8x256xf32>
    %30 = tpu.matmul %29, %23, %cst_24 {dimension_numbers = #tpu.dot_dimension_numbers<[1], [0], [0], [1], [0, 0, 1, 1], [], []>} : vector<8x16xbf16>, vector<16x256xbf16>, vector<8x256xf32> -> vector<8x256xf32>
    %31 = arith.truncf %30 : vector<8x256xf32> to vector<8x256xbf16>
    %c2_25 = arith.constant 2 : index
    %c0_26 = arith.constant 0 : index
    %c0_27 = arith.constant 0 : index
    %32 = vector.load %arg5[%c2_25, %c0_26, %c0_27] : memref<3x8x16xbf16, #tpu.memory_space<vmem>>, vector<1x8x16xbf16>
    %33 = vector.shape_cast %32 : vector<1x8x16xbf16> to vector<8x16xbf16>
    %cst_28 = arith.constant dense<0.000000e+00> : vector<8x256xf32>
    %34 = tpu.matmul %33, %23, %cst_28 {dimension_numbers = #tpu.dot_dimension_numbers<[1], [0], [0], [1], [0, 0, 1, 1], [], []>} : vector<8x16xbf16>, vector<16x256xbf16>, vector<8x256xf32> -> vector<8x256xf32>
    %35 = arith.truncf %34 : vector<8x256xf32> to vector<8x256xbf16>
    %36 = tpu.concatenate %27, %31, %35 in 1 : vector<8x256xbf16>, vector<8x256xbf16>, vector<8x256xbf16> -> vector<8x768xbf16>
    %c0_29 = arith.constant 0 : index
    %c0_30 = arith.constant 0 : index
    %37 = vector.load %arg6[%c0_29, %c0_30] : memref<768x256xbf16, #tpu.memory_space<vmem>>, vector<768x256xbf16>
    %cst_31 = arith.constant dense<0.000000e+00> : vector<8x256xf32>
    %38 = tpu.matmul %36, %37, %cst_31 {dimension_numbers = #tpu.dot_dimension_numbers<[1], [0], [0], [1], [0, 0, 1, 1], [], []>} : vector<8x768xbf16>, vector<768x256xbf16>, vector<8x256xf32> -> vector<8x256xf32>
    %c0_32 = arith.constant 0 : index
    %c0_33 = arith.constant 0 : index
    %39 = vector.load %arg7[%c0_32, %c0_33] : memref<1x256xf32, #tpu.memory_space<vmem>>, vector<1x256xf32>
    %40 = vector.broadcast %39 : vector<1x256xf32> to vector<8x256xf32>
    %41 = arith.addf %38, %40 : vector<8x256xf32>
    %cst_34 = arith.constant 0.000000e+00 : f32
    %42 = vector.broadcast %cst_34 : f32 to vector<8x256xf32>
    %43 = arith.maximumf %41, %42 : vector<8x256xf32>
    %44 = vector.extract_strided_slice %22 {offsets = [0, 0], sizes = [16, 16], strides = [1, 1]} : vector<16x256xf32> to vector<16x16xf32>
    %c0_35 = arith.constant 0 : index
    %c0_36 = arith.constant 0 : index
    %c0_37 = arith.constant 0 : index
    %45 = vector.load %arg26[%c0_35, %c0_36, %c0_37] : memref<16x16x16xf32, #tpu.memory_space<vmem>>, vector<1x16x16xf32>
    %46 = vector.shape_cast %45 : vector<1x16x16xf32> to vector<16x16xf32>
    %47 = vector.shape_cast %44 : vector<16x16xf32> to vector<1x16x16xf32>
    tpu.vector_store %arg26[%c0_35, %c0_36, %c0_37], %47 {strides = array<i32>} : memref<16x16x16xf32, #tpu.memory_space<vmem>>, vector<1x16x16xf32>,
    %48 = vector.extract_strided_slice %22 {offsets = [0, 16], sizes = [16, 16], strides = [1, 1]} : vector<16x256xf32> to vector<16x16xf32>
    %c1_38 = arith.constant 1 : index
    %c0_39 = arith.constant 0 : index
    %c0_40 = arith.constant 0 : index
    %49 = vector.load %arg26[%c1_38, %c0_39, %c0_40] : memref<16x16x16xf32, #tpu.memory_space<vmem>>, vector<1x16x16xf32>
    %50 = vector.shape_cast %49 : vector<1x16x16xf32> to vector<16x16xf32>
    %51 = vector.shape_cast %48 : vector<16x16xf32> to vector<1x16x16xf32>
    tpu.vector_store %arg26[%c1_38, %c0_39, %c0_40], %51 {strides = array<i32>} : memref<16x16x16xf32, #tpu.memory_space<vmem>>, vector<1x16x16xf32>,
    %52 = vector.extract_strided_slice %22 {offsets = [0, 32], sizes = [16, 16], strides = [1, 1]} : vector<16x256xf32> to vector<16x16xf32>
    %c2_41 = arith.constant 2 : index
    %c0_42 = arith.constant 0 : index
    %c0_43 = arith.constant 0 : index
    %53 = vector.load %arg26[%c2_41, %c0_42, %c0_43] : memref<16x16x16xf32, #tpu.memory_space<vmem>>, vector<1x16x16xf32>
    %54 = vector.shape_cast %53 : vector<1x16x16xf32> to vector<16x16xf32>
    %55 = vector.shape_cast %52 : vector<16x16xf32> to vector<1x16x16xf32>
    tpu.vector_store %arg26[%c2_41, %c0_42, %c0_43], %55 {strides = array<i32>} : memref<16x16x16xf32, #tpu.memory_space<vmem>>, vector<1x16x16xf32>,
    %56 = vector.extract_strided_slice %22 {offsets = [0, 48], sizes = [16, 16], strides = [1, 1]} : vector<16x256xf32> to vector<16x16xf32>
    %c3 = arith.constant 3 : index
    %c0_44 = arith.constant 0 : index
    %c0_45 = arith.constant 0 : index
    %57 = vector.load %arg26[%c3, %c0_44, %c0_45] : memref<16x16x16xf32, #tpu.memory_space<vmem>>, vector<1x16x16xf32>
    %58 = vector.shape_cast %57 : vector<1x16x16xf32> to vector<16x16xf32>
    %59 = vector.shape_cast %56 : vector<16x16xf32> to vector<1x16x16xf32>
    tpu.vector_store %arg26[%c3, %c0_44, %c0_45], %59 {strides = array<i32>} : memref<16x16x16xf32, #tpu.memory_space<vmem>>, vector<1x16x16xf32>,
    %60 = vector.extract_strided_slice %22 {offsets = [0, 64], sizes = [16, 16], strides = [1, 1]} : vector<16x256xf32> to vector<16x16xf32>
    %c4 = arith.constant 4 : index
    %c0_46 = arith.constant 0 : index
    %c0_47 = arith.constant 0 : index
    %61 = vector.load %arg26[%c4, %c0_46, %c0_47] : memref<16x16x16xf32, #tpu.memory_space<vmem>>, vector<1x16x16xf32>
    %62 = vector.shape_cast %61 : vector<1x16x16xf32> to vector<16x16xf32>
    %63 = vector.shape_cast %60 : vector<16x16xf32> to vector<1x16x16xf32>
    tpu.vector_store %arg26[%c4, %c0_46, %c0_47], %63 {strides = array<i32>} : memref<16x16x16xf32, #tpu.memory_space<vmem>>, vector<1x16x16xf32>,
    %64 = vector.extract_strided_slice %22 {offsets = [0, 80], sizes = [16, 16], strides = [1, 1]} : vector<16x256xf32> to vector<16x16xf32>
    %c5 = arith.constant 5 : index
    %c0_48 = arith.constant 0 : index
    %c0_49 = arith.constant 0 : index
    %65 = vector.load %arg26[%c5, %c0_48, %c0_49] : memref<16x16x16xf32, #tpu.memory_space<vmem>>, vector<1x16x16xf32>
    %66 = vector.shape_cast %65 : vector<1x16x16xf32> to vector<16x16xf32>
    %67 = vector.shape_cast %64 : vector<16x16xf32> to vector<1x16x16xf32>
    tpu.vector_store %arg26[%c5, %c0_48, %c0_49], %67 {strides = array<i32>} : memref<16x16x16xf32, #tpu.memory_space<vmem>>, vector<1x16x16xf32>,
    %68 = vector.extract_strided_slice %22 {offsets = [0, 96], sizes = [16, 16], strides = [1, 1]} : vector<16x256xf32> to vector<16x16xf32>
    %c6 = arith.constant 6 : index
    %c0_50 = arith.constant 0 : index
    %c0_51 = arith.constant 0 : index
    %69 = vector.load %arg26[%c6, %c0_50, %c0_51] : memref<16x16x16xf32, #tpu.memory_space<vmem>>, vector<1x16x16xf32>
    %70 = vector.shape_cast %69 : vector<1x16x16xf32> to vector<16x16xf32>
    %71 = vector.shape_cast %68 : vector<16x16xf32> to vector<1x16x16xf32>
    tpu.vector_store %arg26[%c6, %c0_50, %c0_51], %71 {strides = array<i32>} : memref<16x16x16xf32, #tpu.memory_space<vmem>>, vector<1x16x16xf32>,
    %72 = vector.extract_strided_slice %22 {offsets = [0, 112], sizes = [16, 16], strides = [1, 1]} : vector<16x256xf32> to vector<16x16xf32>
    %c7 = arith.constant 7 : index
    %c0_52 = arith.constant 0 : index
    %c0_53 = arith.constant 0 : index
    %73 = vector.load %arg26[%c7, %c0_52, %c0_53] : memref<16x16x16xf32, #tpu.memory_space<vmem>>, vector<1x16x16xf32>
    %74 = vector.shape_cast %73 : vector<1x16x16xf32> to vector<16x16xf32>
    %75 = vector.shape_cast %72 : vector<16x16xf32> to vector<1x16x16xf32>
    tpu.vector_store %arg26[%c7, %c0_52, %c0_53], %75 {strides = array<i32>} : memref<16x16x16xf32, #tpu.memory_space<vmem>>, vector<1x16x16xf32>,
    %76 = vector.extract_strided_slice %22 {offsets = [0, 128], sizes = [16, 16], strides = [1, 1]} : vector<16x256xf32> to vector<16x16xf32>
    %c8 = arith.constant 8 : index
    %c0_54 = arith.constant 0 : index
    %c0_55 = arith.constant 0 : index
    %77 = vector.load %arg26[%c8, %c0_54, %c0_55] : memref<16x16x16xf32, #tpu.memory_space<vmem>>, vector<1x16x16xf32>
    %78 = vector.shape_cast %77 : vector<1x16x16xf32> to vector<16x16xf32>
    %79 = vector.shape_cast %76 : vector<16x16xf32> to vector<1x16x16xf32>
    tpu.vector_store %arg26[%c8, %c0_54, %c0_55], %79 {strides = array<i32>} : memref<16x16x16xf32, #tpu.memory_space<vmem>>, vector<1x16x16xf32>,
    %80 = vector.extract_strided_slice %22 {offsets = [0, 144], sizes = [16, 16], strides = [1, 1]} : vector<16x256xf32> to vector<16x16xf32>
    %c9 = arith.constant 9 : index
    %c0_56 = arith.constant 0 : index
    %c0_57 = arith.constant 0 : index
    %81 = vector.load %arg26[%c9, %c0_56, %c0_57] : memref<16x16x16xf32, #tpu.memory_space<vmem>>, vector<1x16x16xf32>
    %82 = vector.shape_cast %81 : vector<1x16x16xf32> to vector<16x16xf32>
    %83 = vector.shape_cast %80 : vector<16x16xf32> to vector<1x16x16xf32>
    tpu.vector_store %arg26[%c9, %c0_56, %c0_57], %83 {strides = array<i32>} : memref<16x16x16xf32, #tpu.memory_space<vmem>>, vector<1x16x16xf32>,
    %84 = vector.extract_strided_slice %22 {offsets = [0, 160], sizes = [16, 16], strides = [1, 1]} : vector<16x256xf32> to vector<16x16xf32>
    %c10 = arith.constant 10 : index
    %c0_58 = arith.constant 0 : index
    %c0_59 = arith.constant 0 : index
    %85 = vector.load %arg26[%c10, %c0_58, %c0_59] : memref<16x16x16xf32, #tpu.memory_space<vmem>>, vector<1x16x16xf32>
    %86 = vector.shape_cast %85 : vector<1x16x16xf32> to vector<16x16xf32>
    %87 = vector.shape_cast %84 : vector<16x16xf32> to vector<1x16x16xf32>
    tpu.vector_store %arg26[%c10, %c0_58, %c0_59], %87 {strides = array<i32>} : memref<16x16x16xf32, #tpu.memory_space<vmem>>, vector<1x16x16xf32>,
    %88 = vector.extract_strided_slice %22 {offsets = [0, 176], sizes = [16, 16], strides = [1, 1]} : vector<16x256xf32> to vector<16x16xf32>
    %c11 = arith.constant 11 : index
    %c0_60 = arith.constant 0 : index
    %c0_61 = arith.constant 0 : index
    %89 = vector.load %arg26[%c11, %c0_60, %c0_61] : memref<16x16x16xf32, #tpu.memory_space<vmem>>, vector<1x16x16xf32>
    %90 = vector.shape_cast %89 : vector<1x16x16xf32> to vector<16x16xf32>
    %91 = vector.shape_cast %88 : vector<16x16xf32> to vector<1x16x16xf32>
    tpu.vector_store %arg26[%c11, %c0_60, %c0_61], %91 {strides = array<i32>} : memref<16x16x16xf32, #tpu.memory_space<vmem>>, vector<1x16x16xf32>,
    %92 = vector.extract_strided_slice %22 {offsets = [0, 192], sizes = [16, 16], strides = [1, 1]} : vector<16x256xf32> to vector<16x16xf32>
    %c12 = arith.constant 12 : index
    %c0_62 = arith.constant 0 : index
    %c0_63 = arith.constant 0 : index
    %93 = vector.load %arg26[%c12, %c0_62, %c0_63] : memref<16x16x16xf32, #tpu.memory_space<vmem>>, vector<1x16x16xf32>
    %94 = vector.shape_cast %93 : vector<1x16x16xf32> to vector<16x16xf32>
    %95 = vector.shape_cast %92 : vector<16x16xf32> to vector<1x16x16xf32>
    tpu.vector_store %arg26[%c12, %c0_62, %c0_63], %95 {strides = array<i32>} : memref<16x16x16xf32, #tpu.memory_space<vmem>>, vector<1x16x16xf32>,
    %96 = vector.extract_strided_slice %22 {offsets = [0, 208], sizes = [16, 16], strides = [1, 1]} : vector<16x256xf32> to vector<16x16xf32>
    %c13 = arith.constant 13 : index
    %c0_64 = arith.constant 0 : index
    %c0_65 = arith.constant 0 : index
    %97 = vector.load %arg26[%c13, %c0_64, %c0_65] : memref<16x16x16xf32, #tpu.memory_space<vmem>>, vector<1x16x16xf32>
    %98 = vector.shape_cast %97 : vector<1x16x16xf32> to vector<16x16xf32>
    %99 = vector.shape_cast %96 : vector<16x16xf32> to vector<1x16x16xf32>
    tpu.vector_store %arg26[%c13, %c0_64, %c0_65], %99 {strides = array<i32>} : memref<16x16x16xf32, #tpu.memory_space<vmem>>, vector<1x16x16xf32>,
    %100 = vector.extract_strided_slice %22 {offsets = [0, 224], sizes = [16, 16], strides = [1, 1]} : vector<16x256xf32> to vector<16x16xf32>
    %c14 = arith.constant 14 : index
    %c0_66 = arith.constant 0 : index
    %c0_67 = arith.constant 0 : index
    %101 = vector.load %arg26[%c14, %c0_66, %c0_67] : memref<16x16x16xf32, #tpu.memory_space<vmem>>, vector<1x16x16xf32>
    %102 = vector.shape_cast %101 : vector<1x16x16xf32> to vector<16x16xf32>
    %103 = vector.shape_cast %100 : vector<16x16xf32> to vector<1x16x16xf32>
    tpu.vector_store %arg26[%c14, %c0_66, %c0_67], %103 {strides = array<i32>} : memref<16x16x16xf32, #tpu.memory_space<vmem>>, vector<1x16x16xf32>,
    %104 = vector.extract_strided_slice %22 {offsets = [0, 240], sizes = [16, 16], strides = [1, 1]} : vector<16x256xf32> to vector<16x16xf32>
    %c15 = arith.constant 15 : index
    %c0_68 = arith.constant 0 : index
    %c0_69 = arith.constant 0 : index
    %105 = vector.load %arg26[%c15, %c0_68, %c0_69] : memref<16x16x16xf32, #tpu.memory_space<vmem>>, vector<1x16x16xf32>
    %106 = vector.shape_cast %105 : vector<1x16x16xf32> to vector<16x16xf32>
    %107 = vector.shape_cast %104 : vector<16x16xf32> to vector<1x16x16xf32>
    tpu.vector_store %arg26[%c15, %c0_68, %c0_69], %107 {strides = array<i32>} : memref<16x16x16xf32, #tpu.memory_space<vmem>>, vector<1x16x16xf32>,
    %108 = vector.extract_strided_slice %43 {offsets = [0, 0], sizes = [8, 32], strides = [1, 1]} : vector<8x256xf32> to vector<8x32xf32>
    %c0_70 = arith.constant 0 : index
    %c0_71 = arith.constant 0 : index
    %c0_72 = arith.constant 0 : index
    %109 = vector.load %arg27[%c0_70, %c0_71, %c0_72] : memref<8x8x32xf32, #tpu.memory_space<vmem>>, vector<1x8x32xf32>
    %110 = vector.shape_cast %109 : vector<1x8x32xf32> to vector<8x32xf32>
    %111 = vector.shape_cast %108 : vector<8x32xf32> to vector<1x8x32xf32>
    tpu.vector_store %arg27[%c0_70, %c0_71, %c0_72], %111 {strides = array<i32>} : memref<8x8x32xf32, #tpu.memory_space<vmem>>, vector<1x8x32xf32>,
    %112 = vector.extract_strided_slice %43 {offsets = [0, 32], sizes = [8, 32], strides = [1, 1]} : vector<8x256xf32> to vector<8x32xf32>
    %c1_73 = arith.constant 1 : index
    %c0_74 = arith.constant 0 : index
    %c0_75 = arith.constant 0 : index
    %113 = vector.load %arg27[%c1_73, %c0_74, %c0_75] : memref<8x8x32xf32, #tpu.memory_space<vmem>>, vector<1x8x32xf32>
    %114 = vector.shape_cast %113 : vector<1x8x32xf32> to vector<8x32xf32>
    %115 = vector.shape_cast %112 : vector<8x32xf32> to vector<1x8x32xf32>
    tpu.vector_store %arg27[%c1_73, %c0_74, %c0_75], %115 {strides = array<i32>} : memref<8x8x32xf32, #tpu.memory_space<vmem>>, vector<1x8x32xf32>,
    %116 = vector.extract_strided_slice %43 {offsets = [0, 64], sizes = [8, 32], strides = [1, 1]} : vector<8x256xf32> to vector<8x32xf32>
    %c2_76 = arith.constant 2 : index
    %c0_77 = arith.constant 0 : index
    %c0_78 = arith.constant 0 : index
    %117 = vector.load %arg27[%c2_76, %c0_77, %c0_78] : memref<8x8x32xf32, #tpu.memory_space<vmem>>, vector<1x8x32xf32>
    %118 = vector.shape_cast %117 : vector<1x8x32xf32> to vector<8x32xf32>
    %119 = vector.shape_cast %116 : vector<8x32xf32> to vector<1x8x32xf32>
    tpu.vector_store %arg27[%c2_76, %c0_77, %c0_78], %119 {strides = array<i32>} : memref<8x8x32xf32, #tpu.memory_space<vmem>>, vector<1x8x32xf32>,
    %120 = vector.extract_strided_slice %43 {offsets = [0, 96], sizes = [8, 32], strides = [1, 1]} : vector<8x256xf32> to vector<8x32xf32>
    %c3_79 = arith.constant 3 : index
    %c0_80 = arith.constant 0 : index
    %c0_81 = arith.constant 0 : index
    %121 = vector.load %arg27[%c3_79, %c0_80, %c0_81] : memref<8x8x32xf32, #tpu.memory_space<vmem>>, vector<1x8x32xf32>
    %122 = vector.shape_cast %121 : vector<1x8x32xf32> to vector<8x32xf32>
    %123 = vector.shape_cast %120 : vector<8x32xf32> to vector<1x8x32xf32>
    tpu.vector_store %arg27[%c3_79, %c0_80, %c0_81], %123 {strides = array<i32>} : memref<8x8x32xf32, #tpu.memory_space<vmem>>, vector<1x8x32xf32>,
    %124 = vector.extract_strided_slice %43 {offsets = [0, 128], sizes = [8, 32], strides = [1, 1]} : vector<8x256xf32> to vector<8x32xf32>
    %c4_82 = arith.constant 4 : index
    %c0_83 = arith.constant 0 : index
    %c0_84 = arith.constant 0 : index
    %125 = vector.load %arg27[%c4_82, %c0_83, %c0_84] : memref<8x8x32xf32, #tpu.memory_space<vmem>>, vector<1x8x32xf32>
    %126 = vector.shape_cast %125 : vector<1x8x32xf32> to vector<8x32xf32>
    %127 = vector.shape_cast %124 : vector<8x32xf32> to vector<1x8x32xf32>
    tpu.vector_store %arg27[%c4_82, %c0_83, %c0_84], %127 {strides = array<i32>} : memref<8x8x32xf32, #tpu.memory_space<vmem>>, vector<1x8x32xf32>,
    %128 = vector.extract_strided_slice %43 {offsets = [0, 160], sizes = [8, 32], strides = [1, 1]} : vector<8x256xf32> to vector<8x32xf32>
    %c5_85 = arith.constant 5 : index
    %c0_86 = arith.constant 0 : index
    %c0_87 = arith.constant 0 : index
    %129 = vector.load %arg27[%c5_85, %c0_86, %c0_87] : memref<8x8x32xf32, #tpu.memory_space<vmem>>, vector<1x8x32xf32>
    %130 = vector.shape_cast %129 : vector<1x8x32xf32> to vector<8x32xf32>
    %131 = vector.shape_cast %128 : vector<8x32xf32> to vector<1x8x32xf32>
    tpu.vector_store %arg27[%c5_85, %c0_86, %c0_87], %131 {strides = array<i32>} : memref<8x8x32xf32, #tpu.memory_space<vmem>>, vector<1x8x32xf32>,
    %132 = vector.extract_strided_slice %43 {offsets = [0, 192], sizes = [8, 32], strides = [1, 1]} : vector<8x256xf32> to vector<8x32xf32>
    %c6_88 = arith.constant 6 : index
    %c0_89 = arith.constant 0 : index
    %c0_90 = arith.constant 0 : index
    %133 = vector.load %arg27[%c6_88, %c0_89, %c0_90] : memref<8x8x32xf32, #tpu.memory_space<vmem>>, vector<1x8x32xf32>
    %134 = vector.shape_cast %133 : vector<1x8x32xf32> to vector<8x32xf32>
    %135 = vector.shape_cast %132 : vector<8x32xf32> to vector<1x8x32xf32>
    tpu.vector_store %arg27[%c6_88, %c0_89, %c0_90], %135 {strides = array<i32>} : memref<8x8x32xf32, #tpu.memory_space<vmem>>, vector<1x8x32xf32>,
    %136 = vector.extract_strided_slice %43 {offsets = [0, 224], sizes = [8, 32], strides = [1, 1]} : vector<8x256xf32> to vector<8x32xf32>
    %c7_91 = arith.constant 7 : index
    %c0_92 = arith.constant 0 : index
    %c0_93 = arith.constant 0 : index
    %137 = vector.load %arg27[%c7_91, %c0_92, %c0_93] : memref<8x8x32xf32, #tpu.memory_space<vmem>>, vector<1x8x32xf32>
    %138 = vector.shape_cast %137 : vector<1x8x32xf32> to vector<8x32xf32>
    %139 = vector.shape_cast %136 : vector<8x32xf32> to vector<1x8x32xf32>
    tpu.vector_store %arg27[%c7_91, %c0_92, %c0_93], %139 {strides = array<i32>} : memref<8x8x32xf32, #tpu.memory_space<vmem>>, vector<1x8x32xf32>,
    %c0_94 = arith.constant 0 : index
    %c0_95 = arith.constant 0 : index
    %c0_96 = arith.constant 0 : index
    %140 = vector.load %arg26[%c0_94, %c0_95, %c0_96] : memref<16x16x16xf32, #tpu.memory_space<vmem>>, vector<16x16x16xf32>
    %141 = vector.shape_cast %140 : vector<16x16x16xf32> to vector<256x16xf32>
    %142 = arith.truncf %141 : vector<256x16xf32> to vector<256x16xbf16>
    %c0_97 = arith.constant 0 : index
    %c0_98 = arith.constant 0 : index
    %c0_99 = arith.constant 0 : index
    %143 = vector.load %arg27[%c0_97, %c0_98, %c0_99] : memref<8x8x32xf32, #tpu.memory_space<vmem>>, vector<8x8x32xf32>
    %144 = vector.shape_cast %143 : vector<8x8x32xf32> to vector<64x32xf32>
    %145 = arith.truncf %144 : vector<64x32xf32> to vector<64x32xbf16>
    %c0_100 = arith.constant 0 : index
    %c0_101 = arith.constant 0 : index
    %146 = vector.load %arg9[%c0_100, %c0_101] : memref<32x32xbf16, #tpu.memory_space<vmem>>, vector<32x32xbf16>
    %cst_102 = arith.constant dense<0.000000e+00> : vector<64x32xf32>
    %147 = tpu.matmul %145, %146, %cst_102 {dimension_numbers = #tpu.dot_dimension_numbers<[1], [0], [0], [1], [0, 0, 1, 1], [], []>} : vector<64x32xbf16>, vector<32x32xbf16>, vector<64x32xf32> -> vector<64x32xf32>
    %c0_103 = arith.constant 0 : index
    %c0_104 = arith.constant 0 : index
    %148 = vector.load %arg10[%c0_103, %c0_104] : memref<256x64xbf16, #tpu.memory_space<vmem>>, vector<256x64xbf16>
    %149 = arith.truncf %147 : vector<64x32xf32> to vector<64x32xbf16>
    %cst_105 = arith.constant dense<0.000000e+00> : vector<256x32xf32>
    %150 = tpu.matmul %148, %149, %cst_105 {dimension_numbers = #tpu.dot_dimension_numbers<[1], [0], [0], [1], [0, 0, 1, 1], [], []>} : vector<256x64xbf16>, vector<64x32xbf16>, vector<256x32xf32> -> vector<256x32xf32>
    %c0_106 = arith.constant 0 : index
    %c0_107 = arith.constant 0 : index
    %151 = vector.load %arg8[%c0_106, %c0_107] : memref<16x32xbf16, #tpu.memory_space<vmem>>, vector<16x32xbf16>
    %cst_108 = arith.constant dense<0.000000e+00> : vector<256x32xf32>
    %152 = tpu.matmul %142, %151, %cst_108 {dimension_numbers = #tpu.dot_dimension_numbers<[1], [0], [0], [1], [0, 0, 1, 1], [], []>} : vector<256x16xbf16>, vector<16x32xbf16>, vector<256x32xf32> -> vector<256x32xf32>
    %153 = arith.addf %152, %150 : vector<256x32xf32>
    %c0_109 = arith.constant 0 : index
    %c0_110 = arith.constant 0 : index
    %154 = vector.load %arg11[%c0_109, %c0_110] : memref<1x32xf32, #tpu.memory_space<vmem>>, vector<1x32xf32>
    %155 = vector.broadcast %154 : vector<1x32xf32> to vector<256x32xf32>
    %156 = arith.addf %153, %155 : vector<256x32xf32>
    %cst_111 = arith.constant 0.000000e+00 : f32
    %157 = vector.broadcast %cst_111 : f32 to vector<256x32xf32>
    %158 = arith.maximumf %156, %157 : vector<256x32xf32>
    %159 = arith.truncf %158 : vector<256x32xf32> to vector<256x32xbf16>
    %c0_112 = arith.constant 0 : index
    %c0_113 = arith.constant 0 : index
    %160 = vector.load %arg13[%c0_112, %c0_113] : memref<32x32xbf16, #tpu.memory_space<vmem>>, vector<32x32xbf16>
    %cst_114 = arith.constant dense<0.000000e+00> : vector<256x32xf32>
    %161 = tpu.matmul %159, %160, %cst_114 {dimension_numbers = #tpu.dot_dimension_numbers<[1], [0], [0], [1], [0, 0, 1, 1], [], []>} : vector<256x32xbf16>, vector<32x32xbf16>, vector<256x32xf32> -> vector<256x32xf32>
    %c0_115 = arith.constant 0 : index
    %c0_116 = arith.constant 0 : index
    %162 = vector.load %arg14[%c0_115, %c0_116] : memref<256x32xf32, #tpu.memory_space<vmem>>, vector<256x32xf32>
    %163 = arith.addf %161, %162 : vector<256x32xf32>
    %c0_117 = arith.constant 0 : index
    %c0_118 = arith.constant 0 : index
    %164 = vector.load %arg15[%c0_117, %c0_118] : memref<32x32xbf16, #tpu.memory_space<vmem>>, vector<32x32xbf16>
    %cst_119 = arith.constant dense<0.000000e+00> : vector<256x32xf32>
    %165 = tpu.matmul %159, %164, %cst_119 {dimension_numbers = #tpu.dot_dimension_numbers<[1], [0], [0], [1], [0, 0, 1, 1], [], []>} : vector<256x32xbf16>, vector<32x32xbf16>, vector<256x32xf32> -> vector<256x32xf32>
    %c0_120 = arith.constant 0 : index
    %c0_121 = arith.constant 0 : index
    %166 = vector.load %arg16[%c0_120, %c0_121] : memref<256x32xf32, #tpu.memory_space<vmem>>, vector<256x32xf32>
    %167 = arith.addf %165, %166 : vector<256x32xf32>
    %c0_122 = arith.constant 0 : index
    %c0_123 = arith.constant 0 : index
    %168 = vector.load %arg12[%c0_122, %c0_123] : memref<12x32xbf16, #tpu.memory_space<vmem>>, vector<12x32xbf16>
    %169 = arith.truncf %163 : vector<256x32xf32> to vector<256x32xbf16>
    %cst_124 = arith.constant dense<0.000000e+00> : vector<12x256xf32>
    %170 = tpu.matmul %168, %169, %cst_124 {dimension_numbers = #tpu.dot_dimension_numbers<[1], [1], [0], [0], [0, 0, 1, 0], [], []>} : vector<12x32xbf16>, vector<256x32xbf16>, vector<12x256xf32> -> vector<12x256xf32>
    %cst_125 = arith.constant dense<0xFF800000> : vector<12xf32>
    %171 = vector.multi_reduction <maximumf>, %170, %cst_125 [1] : vector<12x256xf32> to vector<12xf32>
    %172 = vector.shape_cast %171 : vector<12xf32> to vector<12x1xf32>
    %173 = vector.broadcast %172 : vector<12x1xf32> to vector<12x256xf32>
    %174 = arith.subf %170, %173 : vector<12x256xf32>
    %175 = math.exp %174 : vector<12x256xf32>
    %cst_126 = arith.constant dense<0.000000e+00> : vector<12xf32>
    %176 = vector.multi_reduction <add>, %175, %cst_126 [1] : vector<12x256xf32> to vector<12xf32>
    %177 = vector.shape_cast %176 : vector<12xf32> to vector<12x1xf32>
    %178 = tpu.reciprocal %177 {approx = true} : vector<12x1xf32> -> vector<12x1xf32>
    %179 = vector.broadcast %178 : vector<12x1xf32> to vector<12x256xf32>
    %180 = arith.mulf %175, %179 : vector<12x256xf32>
    %181 = arith.truncf %180 : vector<12x256xf32> to vector<12x256xbf16>
    %182 = arith.truncf %167 : vector<256x32xf32> to vector<256x32xbf16>
    %cst_127 = arith.constant dense<0.000000e+00> : vector<12x32xf32>
    %183 = tpu.matmul %181, %182, %cst_127 {dimension_numbers = #tpu.dot_dimension_numbers<[1], [0], [0], [1], [0, 0, 1, 1], [], []>} : vector<12x256xbf16>, vector<256x32xbf16>, vector<12x32xf32> -> vector<12x32xf32>
    %c0_128 = arith.constant 0 : index
    %c0_129 = arith.constant 0 : index
    %184 = vector.load %arg18[%c0_128, %c0_129] : memref<12x32xf32, #tpu.memory_space<vmem>>, vector<12x32xf32>
    %185 = arith.truncf %183 : vector<12x32xf32> to vector<12x32xbf16>
    %c0_130 = arith.constant 0 : index
    %c0_131 = arith.constant 0 : index
    %186 = vector.load %arg17[%c0_130, %c0_131] : memref<32x32xbf16, #tpu.memory_space<vmem>>, vector<32x32xbf16>
    %cst_132 = arith.constant dense<0.000000e+00> : vector<12x32xf32>
    %187 = tpu.matmul %185, %186, %cst_132 {dimension_numbers = #tpu.dot_dimension_numbers<[1], [0], [0], [1], [0, 0, 1, 1], [], []>} : vector<12x32xbf16>, vector<32x32xbf16>, vector<12x32xf32> -> vector<12x32xf32>
    %188 = arith.addf %184, %187 : vector<12x32xf32>
    %189 = arith.truncf %188 : vector<12x32xf32> to vector<12x32xbf16>
    %c0_133 = arith.constant 0 : index
    %c0_134 = arith.constant 0 : index
    %190 = vector.load %arg19[%c0_133, %c0_134] : memref<32x64xbf16, #tpu.memory_space<vmem>>, vector<32x64xbf16>
    %cst_135 = arith.constant dense<0.000000e+00> : vector<12x64xf32>
    %191 = tpu.matmul %189, %190, %cst_135 {dimension_numbers = #tpu.dot_dimension_numbers<[1], [0], [0], [1], [0, 0, 1, 1], [], []>} : vector<12x32xbf16>, vector<32x64xbf16>, vector<12x64xf32> -> vector<12x64xf32>
    %c0_136 = arith.constant 0 : index
    %c0_137 = arith.constant 0 : index
    %192 = vector.load %arg20[%c0_136, %c0_137] : memref<1x64xf32, #tpu.memory_space<vmem>>, vector<1x64xf32>
    %193 = vector.broadcast %192 : vector<1x64xf32> to vector<12x64xf32>
    %194 = arith.addf %191, %193 : vector<12x64xf32>
    %cst_138 = arith.constant 0.000000e+00 : f32
    %195 = vector.broadcast %cst_138 : f32 to vector<12x64xf32>
    %196 = arith.maximumf %194, %195 : vector<12x64xf32>
    %197 = arith.truncf %196 : vector<12x64xf32> to vector<12x64xbf16>
    %c0_139 = arith.constant 0 : index
    %c0_140 = arith.constant 0 : index
    %198 = vector.load %arg21[%c0_139, %c0_140] : memref<64x32xbf16, #tpu.memory_space<vmem>>, vector<64x32xbf16>
    %cst_141 = arith.constant dense<0.000000e+00> : vector<12x32xf32>
    %199 = tpu.matmul %197, %198, %cst_141 {dimension_numbers = #tpu.dot_dimension_numbers<[1], [0], [0], [1], [0, 0, 1, 1], [], []>} : vector<12x64xbf16>, vector<64x32xbf16>, vector<12x32xf32> -> vector<12x32xf32>
    %200 = arith.addf %188, %199 : vector<12x32xf32>
    %c0_142 = arith.constant 0 : index
    %c0_143 = arith.constant 0 : index
    %201 = vector.load %arg22[%c0_142, %c0_143] : memref<1x32xf32, #tpu.memory_space<vmem>>, vector<1x32xf32>
    %202 = vector.broadcast %201 : vector<1x32xf32> to vector<12x32xf32>
    %203 = arith.addf %200, %202 : vector<12x32xf32>
    %204 = arith.truncf %203 : vector<12x32xf32> to vector<12x32xbf16>
    %c0_144 = arith.constant 0 : index
    %c0_145 = arith.constant 0 : index
    %205 = vector.load %arg23[%c0_144, %c0_145] : memref<32x128xbf16, #tpu.memory_space<vmem>>, vector<32x128xbf16>
    %cst_146 = arith.constant dense<0.000000e+00> : vector<12x128xf32>
    %206 = tpu.matmul %204, %205, %cst_146 {dimension_numbers = #tpu.dot_dimension_numbers<[1], [0], [0], [1], [0, 0, 1, 1], [], []>} : vector<12x32xbf16>, vector<32x128xbf16>, vector<12x128xf32> -> vector<12x128xf32>
    %c0_147 = arith.constant 0 : index
    %c0_148 = arith.constant 0 : index
    %207 = vector.load %arg24[%c0_147, %c0_148] : memref<1x128xf32, #tpu.memory_space<vmem>>, vector<1x128xf32>
    %208 = vector.broadcast %207 : vector<1x128xf32> to vector<12x128xf32>
    %209 = arith.addf %206, %208 : vector<12x128xf32>
    %c0_149 = arith.constant 0 : index
    %c0_150 = arith.constant 0 : index
    %c0_151 = arith.constant 0 : index
    %210 = vector.load %arg25[%c0_149, %c0_150, %c0_151] : memref<1x12x128xf32, #tpu.memory_space<vmem>>, vector<1x12x128xf32>
    %211 = vector.shape_cast %210 : vector<1x12x128xf32> to vector<12x128xf32>
    %212 = vector.shape_cast %209 : vector<12x128xf32> to vector<1x12x128xf32>
    tpu.vector_store %arg25[%c0_149, %c0_150, %c0_151], %212 {strides = array<i32>} : memref<1x12x128xf32, #tpu.memory_space<vmem>>, vector<1x12x128xf32>,
    return
  }
  func.func @transform_0(%arg0: i32) -> (i32, i32, i32) {
    %c0_i32 = arith.constant 0 : i32
    %c0_i32_0 = arith.constant 0 : i32
    %c0_i32_1 = arith.constant 0 : i32
    return %arg0, %c0_i32, %c0_i32_0 : i32, i32, i32
  }
  func.func @transform_1(%arg0: i32) -> (i32, i32, i32) {
    %c0_i32 = arith.constant 0 : i32
    %c0_i32_0 = arith.constant 0 : i32
    %c0_i32_1 = arith.constant 0 : i32
    %c0_i32_2 = arith.constant 0 : i32
    return %c0_i32, %c0_i32_0, %c0_i32_1 : i32, i32, i32
  }
  func.func @transform_2(%arg0: i32) -> (i32, i32) {
    %c0_i32 = arith.constant 0 : i32
    %c0_i32_0 = arith.constant 0 : i32
    %c0_i32_1 = arith.constant 0 : i32
    return %c0_i32, %c0_i32_0 : i32, i32
  }
  func.func @transform_3(%arg0: i32) -> (i32, i32) {
    %c0_i32 = arith.constant 0 : i32
    %c0_i32_0 = arith.constant 0 : i32
    %c0_i32_1 = arith.constant 0 : i32
    return %c0_i32, %c0_i32_0 : i32, i32
  }
  func.func @transform_4(%arg0: i32) -> (i32, i32, i32) {
    %c0_i32 = arith.constant 0 : i32
    %c0_i32_0 = arith.constant 0 : i32
    %c0_i32_1 = arith.constant 0 : i32
    %c0_i32_2 = arith.constant 0 : i32
    return %c0_i32, %c0_i32_0, %c0_i32_1 : i32, i32, i32
  }
  func.func @transform_5(%arg0: i32) -> (i32, i32) {
    %c0_i32 = arith.constant 0 : i32
    %c0_i32_0 = arith.constant 0 : i32
    %c0_i32_1 = arith.constant 0 : i32
    return %c0_i32, %c0_i32_0 : i32, i32
  }
  func.func @transform_6(%arg0: i32) -> (i32, i32) {
    %c0_i32 = arith.constant 0 : i32
    %c0_i32_0 = arith.constant 0 : i32
    %c0_i32_1 = arith.constant 0 : i32
    return %c0_i32, %c0_i32_0 : i32, i32
  }
  func.func @transform_7(%arg0: i32) -> (i32, i32) {
    %c0_i32 = arith.constant 0 : i32
    %c0_i32_0 = arith.constant 0 : i32
    %c0_i32_1 = arith.constant 0 : i32
    return %c0_i32, %c0_i32_0 : i32, i32
  }
  func.func @transform_8(%arg0: i32) -> (i32, i32) {
    %c0_i32 = arith.constant 0 : i32
    %c0_i32_0 = arith.constant 0 : i32
    %c0_i32_1 = arith.constant 0 : i32
    return %c0_i32, %c0_i32_0 : i32, i32
  }
  func.func @transform_9(%arg0: i32) -> (i32, i32) {
    %c0_i32 = arith.constant 0 : i32
    %c0_i32_0 = arith.constant 0 : i32
    %c0_i32_1 = arith.constant 0 : i32
    return %c0_i32, %c0_i32_0 : i32, i32
  }
  func.func @transform_10(%arg0: i32) -> (i32, i32) {
    %c0_i32 = arith.constant 0 : i32
    %c0_i32_0 = arith.constant 0 : i32
    %c0_i32_1 = arith.constant 0 : i32
    return %c0_i32, %c0_i32_0 : i32, i32
  }
  func.func @transform_11(%arg0: i32) -> (i32, i32) {
    %c0_i32 = arith.constant 0 : i32
    %c0_i32_0 = arith.constant 0 : i32
    %c0_i32_1 = arith.constant 0 : i32
    return %c0_i32, %c0_i32_0 : i32, i32
  }
  func.func @transform_12(%arg0: i32) -> (i32, i32) {
    %c0_i32 = arith.constant 0 : i32
    %c0_i32_0 = arith.constant 0 : i32
    %c0_i32_1 = arith.constant 0 : i32
    return %c0_i32, %c0_i32_0 : i32, i32
  }
  func.func @transform_13(%arg0: i32) -> (i32, i32) {
    %c0_i32 = arith.constant 0 : i32
    %c0_i32_0 = arith.constant 0 : i32
    %c0_i32_1 = arith.constant 0 : i32
    return %c0_i32, %c0_i32_0 : i32, i32
  }
  func.func @transform_14(%arg0: i32) -> (i32, i32) {
    %c0_i32 = arith.constant 0 : i32
    %c0_i32_0 = arith.constant 0 : i32
    %c0_i32_1 = arith.constant 0 : i32
    return %c0_i32, %c0_i32_0 : i32, i32
  }
  func.func @transform_15(%arg0: i32) -> (i32, i32) {
    %c0_i32 = arith.constant 0 : i32
    %c0_i32_0 = arith.constant 0 : i32
    %c0_i32_1 = arith.constant 0 : i32
    return %c0_i32, %c0_i32_0 : i32, i32
  }
  func.func @transform_16(%arg0: i32) -> (i32, i32) {
    %c0_i32 = arith.constant 0 : i32
    %c0_i32_0 = arith.constant 0 : i32
    %c0_i32_1 = arith.constant 0 : i32
    return %c0_i32, %c0_i32_0 : i32, i32
  }
  func.func @transform_17(%arg0: i32) -> (i32, i32) {
    %c0_i32 = arith.constant 0 : i32
    %c0_i32_0 = arith.constant 0 : i32
    %c0_i32_1 = arith.constant 0 : i32
    return %c0_i32, %c0_i32_0 : i32, i32
  }
  func.func @transform_18(%arg0: i32) -> (i32, i32) {
    %c0_i32 = arith.constant 0 : i32
    %c0_i32_0 = arith.constant 0 : i32
    %c0_i32_1 = arith.constant 0 : i32
    return %c0_i32, %c0_i32_0 : i32, i32
  }
  func.func @transform_19(%arg0: i32) -> (i32, i32) {
    %c0_i32 = arith.constant 0 : i32
    %c0_i32_0 = arith.constant 0 : i32
    %c0_i32_1 = arith.constant 0 : i32
    return %c0_i32, %c0_i32_0 : i32, i32
  }
  func.func @transform_20(%arg0: i32) -> (i32, i32) {
    %c0_i32 = arith.constant 0 : i32
    %c0_i32_0 = arith.constant 0 : i32
    %c0_i32_1 = arith.constant 0 : i32
    return %c0_i32, %c0_i32_0 : i32, i32
  }
  func.func @transform_21(%arg0: i32) -> (i32, i32) {
    %c0_i32 = arith.constant 0 : i32
    %c0_i32_0 = arith.constant 0 : i32
    %c0_i32_1 = arith.constant 0 : i32
    return %c0_i32, %c0_i32_0 : i32, i32
  }
  func.func @transform_22(%arg0: i32) -> (i32, i32) {
    %c0_i32 = arith.constant 0 : i32
    %c0_i32_0 = arith.constant 0 : i32
    %c0_i32_1 = arith.constant 0 : i32
    return %c0_i32, %c0_i32_0 : i32, i32
  }
  func.func @transform_23(%arg0: i32) -> (i32, i32) {
    %c0_i32 = arith.constant 0 : i32
    %c0_i32_0 = arith.constant 0 : i32
    %c0_i32_1 = arith.constant 0 : i32
    return %c0_i32, %c0_i32_0 : i32, i32
  }
  func.func @transform_24(%arg0: i32) -> (i32, i32, i32) {
    %c0_i32 = arith.constant 0 : i32
    %c0_i32_0 = arith.constant 0 : i32
    %c0_i32_1 = arith.constant 0 : i32
    return %arg0, %c0_i32, %c0_i32_0 : i32, i32, i32
  }
}

</mosaic_0001>

<bundles_post_ra>
// kernel: tile.13
= control target key start
LH: loop header
LB: loop body
LE: loop exit
PB: predicated region body
PF: predicated region fallthrough
CT: control target
= control target key end

     0   :  { %s28_s0 = inlined_call_operand.vmem [shape: f32[16], index: 0, kind: input, shape index: {}]   ;;  %s29_s1 = inlined_call_operand.vmem [shape: f32[16,16], index: 1, kind: output, shape index: {}]  }
   0x1   :  { %v4_v0 = vld [vmem:[%s28_s0] ss:$0 sm:$0xff] }
   0x2   :  { %5 = vst [vmem:[%s29_s1] sm:$0xff] %v4_v0  ;;  %8 = vst [vmem:[%s29_s1 + $0x8] sm:$0xff] %v4_v0 }

// kernel: tile.14
= control target key start
LH: loop header
LB: loop body
LE: loop exit
PB: predicated region body
PF: predicated region fallthrough
CT: control target
= control target key end

     0   :  { %s7_s6 = smov 3  ;;  %s21_s9 = smov 3  ;;  %vm4_vm0 = vcmask 130048   ;;  %vm11_vm1 = vcmask 1048448   ;;  %vm18_vm2 = vcmask 917248   ;;  %vm25_vm3 = vcmask 786048   ;;  %s128_s0 = inlined_call_operand.vmem [shape: f32[16,16], index: 0, kind: input, shape index: {}]   ;;  %s129_s1 = inlined_call_operand.vmem [shape: f32[1,256], index: 1, kind: output, shape index: {}]  }
   0x1   :  { %v66_v0 = vld [vmem:[%s128_s0 + $0x7] ss:$8 sm:%s7_s6]   ;;  %s81_s10 = smov 112   ;;  %v68_v1 = vld [vmem:[%s128_s0 + $0x5] ss:$8 sm:%s21_s9]   ;;  %s14_s13 = smov 3 }
   0x2   :  { %9 = vrot.lane.b32.xlu0 %v66_v0, %s81_s10  ;;  %s82_s14 = smov 80   ;;  %v67_v2 = vld [vmem:[%s128_s0 + $0x6] ss:$8 sm:%s14_s13]   ;;  %s28_s17 = smov 3  ;;  %vm32_vm4 = vcmask 654848   ;;  %vm39_vm5 = vcmask 523648  }
   0x3   :  { %23 = vrot.lane.b32.xlu1 %v68_v1, %s82_s14  ;;  %v69_v3 = vld [vmem:[%s128_s0 + $0x4] ss:$8 sm:%s28_s17]   ;;  %s35_s20 = smov 3  ;;  %s42_s21 = smov 3  ;;  %vm46_vm6 = vcmask 392448   ;;  %vm53_vm7 = vcmask 261248  }
   0x4   :  { %s83_s22 = smov 96   ;;  %s84_s23 = smov 64   ;;  %v70_v4 = vld [vmem:[%s128_s0 + $0x3] ss:$8 sm:%s35_s20]   ;;  %v71_v5 = vld [vmem:[%s128_s0 + $0x2] ss:$8 sm:%s42_s21]  }
   0x5   :  { %s2_s26 = smov 3  ;;  %s49_s29 = smov 3 }
   0x6   :  { %16 = vrot.lane.b32.xlu0 %v67_v2, %s83_s22  ;;  %v3_v6 = vld [vmem:[%s128_s0] ss:$8 sm:%s2_s26]   ;;  %s85_s3 = smov 48   ;;  %s86_s4 = smov 32  }
   0x7   :  { %30 = vrot.lane.b32.xlu1 %v69_v3, %s84_s23  ;;  %5 = vst.msk [vmem:[#allocation0] ss:$8 sm:$0x3] %vm4_vm0, %v3_v6   ;;  %v72_v7 = vld [vmem:[%s128_s0 + $0x1] ss:$8 sm:%s49_s29]   ;;  %s87_s0 = smov 16  }
   0xa   :  { %37 = vrot.lane.b32.xlu0 %v70_v4, %s85_s3 }
   0xb   :  { %44 = vrot.lane.b32.xlu1 %v71_v5, %s86_s4 }
   0xe   :  { %51 = vrot.lane.b32.xlu0 %v72_v7, %s87_s0 }
  0x74   :  { %v10_v8 = vpop.permute.xlu0 %9  }
  0x75   :  { %12 = vst.msk [vmem:[#allocation0] ss:$8 sm:$0x3] %vm11_vm1, %v10_v8   ;;  %v24_v9 = vpop.permute.xlu1 %23  }
  0x78   :  { %v17_v10 = vpop.permute.xlu0 %16  }
  0x79   :  { %19 = vst.msk [vmem:[#allocation0] ss:$8 sm:$0x3] %vm18_vm2, %v17_v10   ;;  %v31_v11 = vpop.permute.xlu1 %30  }
  0x7a   :  { %26 = vst.msk [vmem:[#allocation0] ss:$8 sm:$0x3] %vm25_vm3, %v24_v9  }
  0x7b   :  { %33 = vst.msk [vmem:[#allocation0] ss:$8 sm:$0x3] %vm32_vm4, %v31_v11  }
  0x7c   :  { %v38_v12 = vpop.permute.xlu0 %37  }
  0x7d   :  { %40 = vst.msk [vmem:[#allocation0] ss:$8 sm:$0x3] %vm39_vm5, %v38_v12   ;;  %v45_v13 = vpop.permute.xlu1 %44  }
  0x7e   :  { %47 = vst.msk [vmem:[#allocation0] ss:$8 sm:$0x3] %vm46_vm6, %v45_v13  }
  0x80   :  { %v52_v14 = vpop.permute.xlu0 %51  }
  0x81   :  { %54 = vst.msk [vmem:[#allocation0] ss:$8 sm:$0x3] %vm53_vm7, %v52_v14  }
  0x88   :  { %v58_v15 = vld [vmem:[#allocation0] sm:$0x1]  ;;  %v62_v16 = vld [vmem:[#allocation0 + $0x8] sm:$0x1] }
  0x89   :  { %60 = vst [vmem:[%s129_s1] sm:$0x1] %v58_v15  ;;  %73 = vst [vmem:[%s129_s1 + $0x1] sm:$0x1] %v62_v16 }

// kernel: tile.18
= control target key start
LH: loop header
LB: loop body
LE: loop exit
PB: predicated region body
PF: predicated region fallthrough
CT: control target
= control target key end

     0   :  { %s22_s0 = inlined_call_operand.vmem [shape: f32[32], index: 0, kind: input, shape index: {}]   ;;  %s23_s1 = inlined_call_operand.vmem [shape: f32[8,32], index: 1, kind: output, shape index: {}]  }
   0x1   :  { %v4_v0 = vld [vmem:[%s22_s0] ss:$0 sm:$0xff] }
   0x2   :  { %5 = vst [vmem:[%s23_s1] sm:$0xff] %v4_v0 }

// kernel: tile.19
= control target key start
LH: loop header
LB: loop body
LE: loop exit
PB: predicated region body
PF: predicated region fallthrough
CT: control target
= control target key end

     0   :  { %s7_s6 = smov 3  ;;  %s14_s9 = smov 3  ;;  %vm4_vm0 = vcmask 261120   ;;  %vm11_vm1 = vcmask 1048320   ;;  %vm18_vm2 = vcmask 785920   ;;  %vm25_vm3 = vcmask 523520   ;;  %s76_s0 = inlined_call_operand.vmem [shape: f32[8,32], index: 0, kind: input, shape index: {}]   ;;  %s77_s1 = inlined_call_operand.vmem [shape: f32[1,256], index: 1, kind: output, shape index: {}]  }
   0x1   :  { %v38_v0 = vld [vmem:[%s76_s0 + $0x3] ss:$4 sm:%s7_s6]   ;;  %s45_s10 = smov 96   ;;  %s21_s11 = smov 3  ;;  %v39_v1 = vld [vmem:[%s76_s0 + $0x2] ss:$4 sm:%s14_s9]  }
   0x2   :  { %9 = vrot.lane.b32.xlu0 %v38_v0, %s45_s10  ;;  %v40_v2 = vld [vmem:[%s76_s0 + $0x1] ss:$4 sm:%s21_s11]   ;;  %s2_s16 = smov 3  ;;  %s46_s17 = smov 32  }
   0x3   :  { %23 = vrot.lane.b32.xlu1 %v40_v2, %s46_s17  ;;  %v3_v3 = vld [vmem:[%s76_s0] ss:$4 sm:%s2_s16]   ;;  %s47_s0 = smov 64  }
   0x4   :  { %5 = vst.msk [vmem:[#allocation0] ss:$8 sm:$0x3] %vm4_vm0, %v3_v3  }
   0x6   :  { %16 = vrot.lane.b32.xlu0 %v39_v1, %s47_s0 }
  0x74   :  { %v10_v4 = vpop.permute.xlu0 %9  }
  0x75   :  { %12 = vst.msk [vmem:[#allocation0] ss:$8 sm:$0x3] %vm11_vm1, %v10_v4   ;;  %v24_v5 = vpop.permute.xlu1 %23  }
  0x78   :  { %v17_v6 = vpop.permute.xlu0 %16  }
  0x79   :  { %19 = vst.msk [vmem:[#allocation0] ss:$8 sm:$0x3] %vm18_vm2, %v17_v6  }
  0x7a   :  { %26 = vst.msk [vmem:[#allocation0] ss:$8 sm:$0x3] %vm25_vm3, %v24_v5  }
  0x81   :  { %v30_v7 = vld [vmem:[#allocation0] sm:$0x1]  ;;  %v34_v8 = vld [vmem:[#allocation0 + $0x8] sm:$0x1] }
  0x82   :  { %32 = vst [vmem:[%s77_s1] sm:$0x1] %v30_v7  ;;  %41 = vst [vmem:[%s77_s1 + $0x1] sm:$0x1] %v34_v8 }

// kernel: latr_forward.1
= control target key start
LH: loop header
LB: loop body
LE: loop exit
PB: predicated region body
PF: predicated region fallthrough
CT: control target
= control target key end

     0   :  { %s6479_s0 = inlined_call_operand.vmem [shape: f32[2,32,128], index: 0, kind: input, shape index: {}]   ;;  %s6480_s1 = inlined_call_operand.vmem [shape: bf16[3,16,32], index: 1, kind: input, shape index: {}]   ;;  %s6481_s2 = inlined_call_operand.vmem [shape: bf16[384,256], index: 2, kind: input, shape index: {}]   ;;  %s6482_s3 = inlined_call_operand.vmem [shape: f32[1,256], index: 3, kind: input, shape index: {}]   ;;  %s6483_s4 = inlined_call_operand.vmem [shape: bf16[3,8,16], index: 4, kind: input, shape index: {}]   ;;  %s6484_s5 = inlined_call_operand.vmem [shape: bf16[768,256], index: 5, kind: input, shape index: {}]   ;;  %s6485_s6 = inlined_call_operand.vmem [shape: f32[1,256], index: 6, kind: input, shape index: {}]   ;;  %s6486_s7 = inlined_call_operand.vmem [shape: bf16[16,32], index: 7, kind: input, shape index: {}]   ;;  %s6487_s8 = inlined_call_operand.vmem [shape: bf16[32,32], index: 8, kind: input, shape index: {}]   ;;  %s6488_s9 = inlined_call_operand.vmem [shape: bf16[256,64], index: 9, kind: input, shape index: {}]   ;;  %s6489_s10 = inlined_call_operand.vmem [shape: f32[1,32], index: 10, kind: input, shape index: {}]   ;;  %s6490_s11 = inlined_call_operand.vmem [shape: bf16[12,32], index: 11, kind: input, shape index: {}]   ;;  %s6491_s12 = inlined_call_operand.vmem [shape: bf16[32,32], index: 12, kind: input, shape index: {}]   ;;  %s6492_s13 = inlined_call_operand.vmem [shape: f32[256,32], index: 13, kind: input, shape index: {}]   ;;  %s6493_s14 = inlined_call_operand.vmem [shape: bf16[32,32], index: 14, kind: input, shape index: {}]   ;;  %s6494_s15 = inlined_call_operand.vmem [shape: f32[256,32], index: 15, kind: input, shape index: {}]   ;;  %s6495_s16 = inlined_call_operand.vmem [shape: bf16[32,32], index: 16, kind: input, shape index: {}]   ;;  %s6496_s17 = inlined_call_operand.vmem [shape: f32[12,32], index: 17, kind: input, shape index: {}]   ;;  %s6497_s18 = inlined_call_operand.vmem [shape: bf16[32,64], index: 18, kind: input, shape index: {}]   ;;  %s6498_s19 = inlined_call_operand.vmem [shape: f32[1,64], index: 19, kind: input, shape index: {}]   ;;  %s6499_s20 = inlined_call_operand.vmem [shape: bf16[64,32], index: 20, kind: input, shape index: {}]   ;;  %s6500_s21 = inlined_call_operand.vmem [shape: f32[1,32], index: 21, kind: input, shape index: {}]   ;;  %s6501_s22 = inlined_call_operand.vmem [shape: bf16[32,128], index: 22, kind: input, shape index: {}]   ;;  %s6502_s23 = inlined_call_operand.vmem [shape: f32[1,128], index: 23, kind: input, shape index: {}]   ;;  %s6503_s24 = inlined_call_operand.vmem [shape: f32[2,12,128], index: 24, kind: output, shape index: {}]  }
   0x1   :  { %6513 = sst [smem:[#allocation4_spill]] %s6479_s0 }
   0x2   :  { %6514 = sst [smem:[#allocation5_spill]] %s6480_s1 }
   0x3   :  { %6515 = sst [smem:[#allocation6_spill]] %s6481_s2 }
   0x4   :  { %6516 = sst [smem:[#allocation7_spill]] %s6482_s3 }
   0x5   :  { %6517 = sst [smem:[#allocation8_spill]] %s6483_s4 }
   0x6   :  { %6518 = sst [smem:[#allocation9_spill]] %s6484_s5  ;;  %s5258_s5 = smov 0  }
   0x7   :  { %6519 = sst [smem:[#allocation10_spill]] %s6485_s6 }
   0x8   :  { %6520 = sst [smem:[#allocation11_spill]] %s6486_s7 }
   0x9   :  { %6521 = sst [smem:[#allocation12_spill]] %s6487_s8 }
   0xa LB: > { %s4131_s26 = sadd.s32 4294967295, %s5121_s5   ;;  %p4135_p0 = scmp.ge.s32.totalorder %s5121_s5, 1  ;;  %s5121_s5 = sphi %s5258_s5, %s34_s5  }
   0xb   : > { %p662_p1 = scmp.lt.s32.totalorder %s5121_s5, 3 }
   0xd   : > { %p663_p2 = pnand %p4135_p0, %p662_p1 }
   0xe   : > { %p728_p3 = scmp.lt.s32.totalorder (!%p663_p2), %s4131_s26, 1  ;;  %v6511_v0 = vmov (!%p663_p2), 0.0   ;;  %vm5124_vm0 = vmmov (!%p663_p2), 0   ;;  %s6522_s2 = sld [smem:[#allocation4_spill]] (!%p663_p2)  ;;  %vm752_vm1 = vcmask (!%p663_p2), 261120   ;;  %v5125_v43 = vmov (!%p663_p2), 0  }
   0xf   : > { %666 = sbr.rel (%p663_p2) target bundleno = 3663 (0xe4f), region = 116  ;;  %4556 = vmatprep.subr.bf16.mxu0 (!%p663_p2), %v6511_v0  ;;  %4564 = vmatprep.subr.bf16.mxu1 (!%p663_p2), %v6511_v0  ;;  %s6523_s30 = sld [smem:[#allocation6_spill]] (!%p663_p2)  ;;  %vm1297_vm2 = vcmask (!%p663_p2), 130048   ;;  %vm2592_vm3 = vcmask (!%p663_p2), 523264   ;;  %vm3692_vm4 = vcmask (!%p663_p2), 1043456  }
  0x10   : > { %4560 = vmatprep.mubr.msk.bf16.mxu0 (!%p663_p2), %vm5124_vm0, %v6511_v0  ;;  %4568 = vmatprep.mubr.msk.bf16.mxu1 (!%p663_p2), %vm5124_vm0, %v6511_v0  ;;  %s6524_s8 = sld [smem:[#allocation5_spill]] (!%p663_p2)  ;;  %s6525_s1 = sld [smem:[#allocation7_spill]] (!%p663_p2) }
  0x11   : > { %s6526_s6 = sld [smem:[#allocation8_spill]] (!%p663_p2)  ;;  %s6527_s3 = sld [smem:[#allocation9_spill]] (!%p663_p2) }
  0x12   : > { %s6528_s28 = sld [smem:[#allocation10_spill]] (!%p663_p2)  ;;  %s6529_s0 = sld [smem:[#allocation12_spill]] (!%p663_p2) }
  0x13   : > { %s5126_s25 = smov (!%p663_p2), 32   ;;  %s5127_s4 = smov (!%p663_p2), 96  }
  0x15   : > { %v4855_v7 = vld [vmem:[%s6523_s30 + $0x4] ss:$8 sps:$4 sm:$0xff] (!%p663_p2)   ;;  %v4853_v10 = vld [vmem:[%s6523_s30] ss:$8 sps:$4 sm:$0xff] (!%p663_p2)   ;;  %v4858_v11 = vld [vmem:[%s6523_s30 + $0x14] ss:$8 sps:$4 sm:$0xff] (!%p663_p2)  }
  0x16   : > { %s6547_s26 = smov (!%p728_p3, %s4131_s26), 1  ;;  %v4850_v8 = vld [vmem:[%s6524_s8] sm:$0xff]   ;;  %v4851_v9 = vld [vmem:[%s6524_s8 + $0x8] sm:$0xff]   ;;  %v4856_v12 = vld [vmem:[%s6523_s30 + $0x10] ss:$8 sps:$4 sm:$0xff]  }
  0x17   : > { %s4412_s27 = sshll.u32 %s6547_s26, 5  ;;  %v4861_v13 = vld [vmem:[%s6523_s30 + $0x24] ss:$8 sps:$4 sm:$0xff]   ;;  %v4852_v14 = vld [vmem:[%s6524_s8 + $0x10] sm:$0xff]   ;;  %v4859_v15 = vld [vmem:[%s6523_s30 + $0x20] ss:$8 sps:$4 sm:$0xff]  }
  0x18   : > { %s732_s29 = scalar_lea.vmem %s6522_s2, %s4412_s27  ;;  %v4864_v16 = vld [vmem:[%s6523_s30 + $0x34] ss:$8 sps:$4 sm:$0xff]   ;;  %v4862_v17 = vld [vmem:[%s6523_s30 + $0x30] ss:$8 sps:$4 sm:$0xff]   ;;  %v4867_v18 = vld [vmem:[%s6523_s30 + $0x44] ss:$8 sps:$4 sm:$0xff]  }
  0x19   : > { %v739_v1 = vld [vmem:[%s732_s29] sm:$0xff]  ;;  %v740_v2 = vld [vmem:[%s732_s29 + $0x8] sm:$0xff]  ;;  %v741_v3 = vld [vmem:[%s732_s29 + $0x10] sm:$0xff]  ;;  %s5129_s27 = smov 112   ;;  %s5131_s2 = smov 48  }
  0x1a   : > { %v743_v4 = vpack.c.bf16 %v740_v2, %v739_v1  ;;  %v742_v5 = vld [vmem:[%s732_s29 + $0x18] sm:$0xff]  ;;  %v4865_v19 = vld [vmem:[%s6523_s30 + $0x40] ss:$8 sps:$4 sm:$0xff]   ;;  %v4873_v22 = vld [vmem:[%s6523_s30 + $0x64] ss:$8 sps:$4 sm:$0xff]   ;;  %s5132_s29 = smov 16  }
  0x1b   : > { %v744_v6 = vpack.c.bf16 %v742_v5, %v741_v3  ;;  %v4870_v20 = vld [vmem:[%s6523_s30 + $0x54] ss:$8 sps:$4 sm:$0xff]   ;;  %v4868_v21 = vld [vmem:[%s6523_s30 + $0x50] ss:$8 sps:$4 sm:$0xff]   ;;  %v4871_v23 = vld [vmem:[%s6523_s30 + $0x60] ss:$8 sps:$4 sm:$0xff]  }
  0x1c   : > { %4557 = vmatpush3.bf16.msra.mxu0 %v743_v4  ;;  %4565 = vmatpush3.bf16.msra.mxu1 %v743_v4  ;;  %v4876_v24 = vld [vmem:[%s6523_s30 + $0x74] ss:$8 sps:$4 sm:$0xff]   ;;  %v4874_v25 = vld [vmem:[%s6523_s30 + $0x70] ss:$8 sps:$4 sm:$0xff]   ;;  %v4879_v26 = vld [vmem:[%s6523_s30 + $0x84] ss:$8 sps:$4 sm:$0xff]  }
  0x1d   : > { %4558 = vmatprep.subr.bf16.mxu0 %v6511_v0  ;;  %4566 = vmatprep.subr.bf16.mxu1 %v6511_v0  ;;  %v4877_v27 = vld [vmem:[%s6523_s30 + $0x80] ss:$8 sps:$4 sm:$0xff]   ;;  %v4882_v28 = vld [vmem:[%s6523_s30 + $0x94] ss:$8 sps:$4 sm:$0xff]   ;;  %v4880_v29 = vld [vmem:[%s6523_s30 + $0x90] ss:$8 sps:$4 sm:$0xff]  }
  0x1e   : > { %v4885_v30 = vld [vmem:[%s6523_s30 + $0xa4] ss:$8 sps:$4 sm:$0xff]   ;;  %v4883_v31 = vld [vmem:[%s6523_s30 + $0xa0] ss:$8 sps:$4 sm:$0xff]   ;;  %v4888_v32 = vld [vmem:[%s6523_s30 + $0xb4] ss:$8 sps:$4 sm:$0xff]  }
  0x1f   : > { %v4886_v33 = vld [vmem:[%s6523_s30 + $0xb0] ss:$8 sps:$4 sm:$0xff]   ;;  %v4891_v34 = vld [vmem:[%s6523_s30 + $0xc4] ss:$8 sps:$4 sm:$0xff]   ;;  %v4889_v35 = vld [vmem:[%s6523_s30 + $0xc0] ss:$8 sps:$4 sm:$0xff]  }
  0x20   : > { %4559 = vmatpush3.bf16.msra.mxu0 %v744_v6  ;;  %4567 = vmatpush3.bf16.msra.mxu1 %v744_v6  ;;  %v4894_v36 = vld [vmem:[%s6523_s30 + $0xd4] ss:$8 sps:$4 sm:$0xff]   ;;  %v4892_v37 = vld [vmem:[%s6523_s30 + $0xd0] ss:$8 sps:$4 sm:$0xff]   ;;  %v4897_v38 = vld [vmem:[%s6523_s30 + $0xe4] ss:$8 sps:$4 sm:$0xff]  }
  0x21   : > { %4572 = vmatprep.subr.bf16.mxu0 %v6511_v0  ;;  %1204 = vmatprep.subr.bf16.mxu1 %v4855_v7  ;;  %v4895_v39 = vld [vmem:[%s6523_s30 + $0xe0] ss:$8 sps:$4 sm:$0xff]   ;;  %v4900_v40 = vld [vmem:[%s6523_s30 + $0xf4] ss:$8 sps:$4 sm:$0xff]   ;;  %v4898_v41 = vld [vmem:[%s6523_s30 + $0xf0] ss:$8 sps:$4 sm:$0xff]  }
  0x22   : > { %v4903_v42 = vld [vmem:[%s6523_s30 + $0x104] ss:$8 sps:$4 sm:$0xff]   ;;  %v4901_v54 = vld [vmem:[%s6523_s30 + $0x100] ss:$8 sps:$4 sm:$0xff]   ;;  %v4906_v55 = vld [vmem:[%s6523_s30 + $0x114] ss:$8 sps:$4 sm:$0xff]  }
  0x23   : > { %4561 = vmatmul.mubr.msk.bf16.vlgmr.msra.gmra.mrb[0].mxu0 %vm752_vm1, %v4850_v8  ;;  %4569 = vmatmul.mubr.msk.bf16.vlgmr.msra.gmra.mrb[0].mxu1 %vm752_vm1, %v4851_v9  ;;  %v4904_v56 = vld [vmem:[%s6523_s30 + $0x110] ss:$8 sps:$4 sm:$0xff]   ;;  %v4909_v57 = vld [vmem:[%s6523_s30 + $0x124] ss:$8 sps:$4 sm:$0xff]   ;;  %v4907_v61 = vld [vmem:[%s6523_s30 + $0x120] ss:$8 sps:$4 sm:$0xff]  }
  0x24   : > { %4573 = vmatpush3.bf16.msra.mxu0 %v743_v4  ;;  %4576 = vmatprep.mubr.msk.bf16.mxu0 %vm5124_vm0, %v6511_v0  ;;  %v4912_v1 = vld [vmem:[%s6523_s30 + $0x134] ss:$8 sps:$4 sm:$0xff]   ;;  %v4910_v2 = vld [vmem:[%s6523_s30 + $0x130] ss:$8 sps:$4 sm:$0xff]   ;;  %v4915_v3 = vld [vmem:[%s6523_s30 + $0x144] ss:$8 sps:$4 sm:$0xff]  }
  0x25   : > { %4574 = vmatprep.subr.bf16.mxu0 %v6511_v0  ;;  %1205 = vmatpush1.bf16.msra.mxu1 %v4853_v10  ;;  %v4913_v4 = vld [vmem:[%s6523_s30 + $0x140] ss:$8 sps:$4 sm:$0xff]   ;;  %v4918_v5 = vld [vmem:[%s6523_s30 + $0x154] ss:$8 sps:$4 sm:$0xff]   ;;  %v4921_v7 = vld [vmem:[%s6523_s30 + $0x164] ss:$8 sps:$4 sm:$0xff]  }
  0x26   : > { %1206 = vmatprep.subr.bf16.mxu1 %v4858_v11  ;;  %v4919_v8 = vld [vmem:[%s6523_s30 + $0x160] ss:$8 sps:$4 sm:$0xff]   ;;  %v4924_v9 = vld [vmem:[%s6523_s30 + $0x174] ss:$8 sps:$4 sm:$0xff]   ;;  %v4922_v10 = vld [vmem:[%s6523_s30 + $0x170] ss:$8 sps:$4 sm:$0xff]   ;;  %v954_v11 = vlaneseq }
  0x28   : > { %4575 = vmatpush3.bf16.msra.mxu0 %v744_v6  ;;  %v4916_v6 = vld [vmem:[%s6523_s30 + $0x150] ss:$8 sps:$4 sm:$0xff]  }
  0x29   : > { %1207 = vmatpush1.bf16.msra.mxu1 %v4856_v12  ;;  %v5442_v12 = vshrl.u32 %v954_v11, 7 }
  0x2a   : > { %1208 = vmatprep.subr.bf16.mxu1 %v4861_v13 }
  0x2b   : > { %4577 = vmatmul.mubr.msk.bf16.vlgmr.msra.gmra.mrb[4].mxu0 %vm752_vm1, %v4852_v14  ;;  %v956_v13 = vsub.s32 0, %v5442_v12  ;;  %v952_v14 = vld [vmem:[%s6525_s1] sm:$0x3]  ;;  %s5128_s1 = smov 64  }
  0x2c   : > { %1333 = vmatprep.mubr.bf16.mxu0 %v5125_v43 }
  0x2d   : > { %1209 = vmatpush1.bf16.msra.mxu1 %v4859_v15  ;;  %v960_v15 = vsub.s32 1, %v5442_v12 }
  0x2e   : > { %1210 = vmatprep.subr.bf16.mxu1 %v4864_v16  ;;  %v957_v16 = vrot.slane %v952_v14, %v956_v13 }
  0x31   : > { %1211 = vmatpush1.bf16.msra.mxu1 %v4862_v17  ;;  %v961_v17 = vrot.slane %v952_v14, %v960_v15  ;;  %v4978_v14 = vld [vmem:[%s6527_s3 + $0x114] ss:$8 sps:$4 sm:$0xff]  }
  0x32   : > { %1212 = vmatprep.subr.bf16.mxu1 %v4867_v18 }
  0x35   : > { %1213 = vmatpush1.bf16.msra.mxu1 %v4865_v19 }
  0x36   : > { %1214 = vmatprep.subr.bf16.mxu1 %v4870_v20 }
  0x39   : > { %1215 = vmatpush1.bf16.msra.mxu1 %v4868_v21 }
  0x3a   : > { %1216 = vmatprep.subr.bf16.mxu1 %v4873_v22 }
  0x3d   : > { %1217 = vmatpush1.bf16.msra.mxu1 %v4871_v23 }
  0x3e   : > { %1218 = vmatprep.subr.bf16.mxu1 %v4876_v24 }
  0x41   : > { %1219 = vmatpush1.bf16.msra.mxu1 %v4874_v25 }
  0x42   : > { %1220 = vmatprep.subr.bf16.mxu1 %v4879_v26 }
  0x45   : > { %1221 = vmatpush1.bf16.msra.mxu1 %v4877_v27 }
  0x46   : > { %1222 = vmatprep.subr.bf16.mxu1 %v4882_v28 }
  0x49   : > { %1223 = vmatpush1.bf16.msra.mxu1 %v4880_v29 }
  0x4a   : > { %1224 = vmatprep.subr.bf16.mxu1 %v4885_v30 }
  0x4d   : > { %1225 = vmatpush1.bf16.msra.mxu1 %v4883_v31 }
  0x4e   : > { %1226 = vmatprep.subr.bf16.mxu1 %v4888_v32  ;;  %v1296_v32 = vld [vmem:[%s6526_s6] sm:$0xf] }
  0x51   : > { %1227 = vmatpush1.bf16.msra.mxu1 %v4886_v33  ;;  %v4199_v33 = vld [vmem:[%s6526_s6 + $0x4] sm:$0xf] }
  0x52   : > { %1228 = vmatprep.subr.bf16.mxu1 %v4891_v34  ;;  %v4927_v34 = vld [vmem:[%s6527_s3 + $0x4] ss:$8 sps:$4 sm:$0xff]  }
  0x55   : > { %1229 = vmatpush1.bf16.msra.mxu1 %v4889_v35  ;;  %v4201_v35 = vld [vmem:[%s6526_s6 + $0x8] sm:$0xf] }
  0x56   : > { %1230 = vmatprep.subr.bf16.mxu1 %v4894_v36  ;;  %v4925_v36 = vld [vmem:[%s6527_s3] ss:$8 sps:$4 sm:$0xff]  }
  0x59   : > { %1231 = vmatpush1.bf16.msra.mxu1 %v4892_v37  ;;  %v4930_v37 = vld [vmem:[%s6527_s3 + $0x14] ss:$8 sps:$4 sm:$0xff]  }
  0x5a   : > { %1232 = vmatprep.subr.bf16.mxu1 %v4897_v38  ;;  %v4928_v38 = vld [vmem:[%s6527_s3 + $0x10] ss:$8 sps:$4 sm:$0xff]  }
  0x5d   : > { %1233 = vmatpush1.bf16.msra.mxu1 %v4895_v39  ;;  %v4933_v39 = vld [vmem:[%s6527_s3 + $0x24] ss:$8 sps:$4 sm:$0xff]  }
  0x5e   : > { %1234 = vmatprep.subr.bf16.mxu1 %v4900_v40  ;;  %v4931_v40 = vld [vmem:[%s6527_s3 + $0x20] ss:$8 sps:$4 sm:$0xff]  }
  0x61   : > { %1235 = vmatpush1.bf16.msra.mxu1 %v4898_v41  ;;  %v4936_v41 = vld [vmem:[%s6527_s3 + $0x34] ss:$8 sps:$4 sm:$0xff]  }
  0x62   : > { %1247 = vmatprep.subr.bf16.mxu1 %v4903_v42  ;;  %v4934_v42 = vld [vmem:[%s6527_s3 + $0x30] ss:$8 sps:$4 sm:$0xff]  }
  0xf6   : > { %v790_v44 = vpop.f32.mrb[0].mxu0  ;;  %v843_v45 = vpop.f32.mrb[0].mxu1 }
  0xf7   : > { %v4562_v46 = vpop.f32.mrb[1].mxu0  ;;  %v4570_v47 = vpop.f32.mrb[1].mxu1 }
  0xf8   : > { %v793_v48 = vpop.f32.mrb[2].mxu0  ;;  %v846_v49 = vpop.f32.mrb[2].mxu1  ;;  %v4940_v46 = vld [vmem:[%s6527_s3 + $0x50] ss:$8 sps:$4 sm:$0xff]   ;;  %v4945_v47 = vld [vmem:[%s6527_s3 + $0x64] ss:$8 sps:$4 sm:$0xff]  }
  0xf9   : > { %v797_v50 = vpack.c.bf16 %v793_v48, %v790_v44  ;;  %v850_v51 = vpack.c.bf16 %v846_v49, %v843_v45  ;;  %v4563_v52 = vpop.f32.mrb[3].mxu0  ;;  %v4571_v53 = vpop.f32.mrb[3].mxu1  ;;  %v4937_v44 = vld [vmem:[%s6527_s3 + $0x40] ss:$8 sps:$4 sm:$0xff]   ;;  %v4942_v45 = vld [vmem:[%s6527_s3 + $0x54] ss:$8 sps:$4 sm:$0xff]  }
  0xfa   : > { %v4943_v48 = vld [vmem:[%s6527_s3 + $0x60] ss:$8 sps:$4 sm:$0xff]   ;;  %v4948_v49 = vld [vmem:[%s6527_s3 + $0x74] ss:$8 sps:$4 sm:$0xff]  }
  0xfb   : > { %1236 = vmatprep.mubr.bf16.mxu1 %v850_v51  ;;  %v4951_v51 = vld [vmem:[%s6527_s3 + $0x84] ss:$8 sps:$4 sm:$0xff]   ;;  %v4949_v52 = vld [vmem:[%s6527_s3 + $0x80] ss:$8 sps:$4 sm:$0xff]   ;;  %v4954_v53 = vld [vmem:[%s6527_s3 + $0x94] ss:$8 sps:$4 sm:$0xff]  }
  0xfc   : > { %1237 = vmatmul.mubr.bf16.vlgmr.msra.gmra.mrb[4].mxu1 %v797_v50  ;;  %v4946_v50 = vld [vmem:[%s6527_s3 + $0x70] ss:$8 sps:$4 sm:$0xff]  }
  0xfd   : > { %1248 = vmatpush1.bf16.msra.mxu1 %v4901_v54  ;;  %1279 = vmatprep.mubr.bf16.mxu1 %v5125_v43  ;;  %v4952_v54 = vld [vmem:[%s6527_s3 + $0x90] ss:$8 sps:$4 sm:$0xff]  }
  0xfe   : > { %1249 = vmatprep.subr.bf16.mxu1 %v4906_v55  ;;  %v896_v58 = vpop.f32.mrb[4].mxu0  ;;  %v4957_v55 = vld [vmem:[%s6527_s3 + $0xa4] ss:$8 sps:$4 sm:$0xff]  }
  0xff   : > { %v4578_v59 = vpop.f32.mrb[5].mxu0 }
 0x100   : > { %v899_v60 = vpop.f32.mrb[6].mxu0  ;;  %v4963_v59 = vld [vmem:[%s6527_s3 + $0xc4] ss:$8 sps:$4 sm:$0xff]  }
 0x101   : > { %1250 = vmatpush1.bf16.msra.mxu1 %v4904_v56  ;;  %v903_v62 = vpack.c.bf16 %v899_v60, %v896_v58  ;;  %v4579_v63 = vpop.f32.mrb[7].mxu0  ;;  %v4955_v56 = vld [vmem:[%s6527_s3 + $0xa0] ss:$8 sps:$4 sm:$0xff]   ;;  %v4958_v58 = vld [vmem:[%s6527_s3 + $0xb0] ss:$8 sps:$4 sm:$0xff]  }
 0x102   : > { %1251 = vmatprep.subr.bf16.mxu1 %v4909_v57  ;;  %v4960_v57 = vld [vmem:[%s6527_s3 + $0xb4] ss:$8 sps:$4 sm:$0xff]   ;;  %v4961_v60 = vld [vmem:[%s6527_s3 + $0xc0] ss:$8 sps:$4 sm:$0xff]   ;;  %v4969_v63 = vld [vmem:[%s6527_s3 + $0xe4] ss:$8 sps:$4 sm:$0xff]  }
 0x105   : > { %1252 = vmatpush1.bf16.msra.mxu1 %v4907_v61  ;;  %v4966_v61 = vld [vmem:[%s6527_s3 + $0xd4] ss:$8 sps:$4 sm:$0xff]  }
 0x106   : > { %1253 = vmatprep.subr.bf16.mxu1 %v4912_v1  ;;  %v4967_v1 = vld [vmem:[%s6527_s3 + $0xe0] ss:$8 sps:$4 sm:$0xff]  }
 0x109   : > { %1254 = vmatpush1.bf16.msra.mxu1 %v4910_v2  ;;  %v4972_v2 = vld [vmem:[%s6527_s3 + $0xf4] ss:$8 sps:$4 sm:$0xff]  }
 0x10a   : > { %1255 = vmatprep.subr.bf16.mxu1 %v4915_v3  ;;  %v4970_v3 = vld [vmem:[%s6527_s3 + $0xf0] ss:$8 sps:$4 sm:$0xff]  }
 0x10d   : > { %1256 = vmatpush1.bf16.msra.mxu1 %v4913_v4  ;;  %v4975_v4 = vld [vmem:[%s6527_s3 + $0x104] ss:$8 sps:$4 sm:$0xff]  }
 0x10e   : > { %1257 = vmatprep.subr.bf16.mxu1 %v4918_v5 }
 0x111   : > { %1258 = vmatpush1.bf16.msra.mxu1 %v4916_v6 }
 0x112   : > { %1259 = vmatprep.subr.bf16.mxu1 %v4921_v7 }
 0x115   : > { %1260 = vmatpush1.bf16.msra.mxu1 %v4919_v8 }
 0x116   : > { %1261 = vmatprep.subr.bf16.mxu1 %v4924_v9  ;;  %v4973_v9 = vld [vmem:[%s6527_s3 + $0x100] ss:$8 sps:$4 sm:$0xff]  }
 0x119   : > { %1262 = vmatpush1.bf16.msra.mxu1 %v4922_v10 }
 0x11c   : > { %1280 = vmatmul.mubr.bf16.vlgmr.msra.gmra.mrb[4].mxu1 %v903_v62  ;;  %v4964_v62 = vld [vmem:[%s6527_s3 + $0xd0] ss:$8 sps:$4 sm:$0xff]  }
 0x1ef   : > { %v1281_v18 = vpop.f32.mrb[4].mxu1 }
 0x1f0   : > { %v4774_v19 = vadd.f32 %v1281_v18, %v957_v16  ;;  %v1283_v20 = vpop.f32.mrb[5].mxu1 }
 0x1f1   : > { %v4775_v21 = vadd.f32 %v1283_v20, %v961_v17  ;;  %v1285_v22 = vpop.f32.mrb[6].mxu1  ;;  %v4979_v20 = vld [vmem:[%s6527_s3 + $0x120] ss:$8 sps:$4 sm:$0xff]  }
 0x1f2   : > { %v5453_v23 = vmax.f32 %v4774_v19, 0.0  ;;  %v4776_v24 = vadd.f32 %v1285_v22, %v957_v16  ;;  %v1287_v25 = vpop.f32.mrb[7].mxu1  ;;  %v4976_v16 = vld [vmem:[%s6527_s3 + $0x110] ss:$8 sps:$4 sm:$0xff]  }
 0x1f3   : > { %v5455_v26 = vmax.f32 %v4775_v21, 0.0  ;;  %v4777_v27 = vadd.f32 %v1287_v25, %v961_v17  ;;  %v4981_v17 = vld [vmem:[%s6527_s3 + $0x124] ss:$8 sps:$4 sm:$0xff]  }
 0x1f4   : > { %v5457_v28 = vmax.f32 %v4776_v24, 0.0  ;;  %2153 = vst.msk [vmem:[#allocation2] sm:$0xff] %vm1297_vm2, %v5453_v23  ;;  %v4984_v24 = vld [vmem:[%s6527_s3 + $0x134] ss:$8 sps:$4 sm:$0xff]  }
 0x1f5   : > { %v5461_v29 = vmax.f32 %v4777_v27, 0.0  ;;  %2221 = vst.msk [vmem:[#allocation2 + $0x80] sm:$0xff] %vm1297_vm2, %v5455_v26  ;;  %v4982_v27 = vld [vmem:[%s6527_s3 + $0x130] ss:$8 sps:$4 sm:$0xff]  }
 0x1f6   : > { %2154 = vst.msk [vmem:[#allocation2 + $0x8] sm:$0xff] %vm1297_vm2, %v5457_v28  ;;  %v1294_v31 = vpack.c.bf16 %v5457_v28, %v5453_v23 }
 0x1f7   : > { %v1295_v30 = vpack.c.bf16 %v5461_v29, %v5455_v26  ;;  %2222 = vst.msk [vmem:[#allocation2 + $0x88] sm:$0xff] %vm1297_vm2, %v5461_v29 }
 0x1f9   : > { %1301 = vmatprep.subr.bf16.mxu0 %v1295_v30 }
 0x1fa   : > { %1302 = vmatpush1.bf16.msra.mxu0 %v1294_v31 }
 0x1fb   : > { %1349 = vmatprep.subr.bf16.mxu0 %v1295_v30 }
 0x1fd   : > { %4198 = vmatmul.mubr.msk.bf16.vlgmr.msra.gmra.mrb[8].mxu0 %vm1297_vm2, %v1296_v32 }
 0x1fe   : > { %1350 = vmatpush1.bf16.msra.mxu0 %v1294_v31  ;;  %1381 = vmatprep.mubr.bf16.mxu0 %v5125_v43 }
 0x1ff   : > { %1397 = vmatprep.subr.bf16.mxu0 %v1295_v30  ;;  %v4987_v30 = vld [vmem:[%s6527_s3 + $0x144] ss:$8 sps:$4 sm:$0xff]  }
 0x205   : > { %4200 = vmatmul.mubr.msk.bf16.vlgmr.msra.gmra.mrb[12].mxu0 %vm1297_vm2, %v4199_v33  ;;  %v4985_v33 = vld [vmem:[%s6527_s3 + $0x140] ss:$8 sps:$4 sm:$0xff]  }
 0x206   : > { %1398 = vmatpush1.bf16.msra.mxu0 %v1294_v31  ;;  %1429 = vmatprep.mubr.bf16.mxu0 %v5125_v43  ;;  %v4939_v43 = vld [vmem:[%s6527_s3 + $0x44] ss:$8 sps:$4 sm:$0xff]  }
 0x207   : > { %2028 = vmatprep.subr.bf16.mxu0 %v4927_v34 }
 0x20d   : > { %4202 = vmatmul.mubr.msk.bf16.vlgmr.msra.gmra.mrb[16].mxu0 %vm1297_vm2, %v4201_v35  ;;  %v4990_v35 = vld [vmem:[%s6527_s3 + $0x154] ss:$8 sps:$4 sm:$0xff]  }
 0x20e   : > { %2029 = vmatpush1.bf16.msra.mxu0 %v4925_v36 }
 0x20f   : > { %2030 = vmatprep.subr.bf16.mxu0 %v4930_v37  ;;  %v4988_v37 = vld [vmem:[%s6527_s3 + $0x150] ss:$8 sps:$4 sm:$0xff]  }
 0x212   : > { %2031 = vmatpush1.bf16.msra.mxu0 %v4928_v38  ;;  %v4993_v38 = vld [vmem:[%s6527_s3 + $0x164] ss:$8 sps:$4 sm:$0xff]  }
 0x213   : > { %2032 = vmatprep.subr.bf16.mxu0 %v4933_v39  ;;  %v4991_v39 = vld [vmem:[%s6527_s3 + $0x160] ss:$8 sps:$4 sm:$0xff]  }
 0x216   : > { %2033 = vmatpush1.bf16.msra.mxu0 %v4931_v40  ;;  %v4996_v40 = vld [vmem:[%s6527_s3 + $0x174] ss:$8 sps:$4 sm:$0xff]  }
 0x217   : > { %2034 = vmatprep.subr.bf16.mxu0 %v4936_v41  ;;  %v4994_v41 = vld [vmem:[%s6527_s3 + $0x170] ss:$8 sps:$4 sm:$0xff]  }
 0x21a   : > { %2035 = vmatpush1.bf16.msra.mxu0 %v4934_v42  ;;  %v4999_v42 = vld [vmem:[%s6527_s3 + $0x184] ss:$8 sps:$4 sm:$0xff]  }
 0x21b   : > { %2036 = vmatprep.subr.bf16.mxu0 %v4939_v43  ;;  %v4997_v43 = vld [vmem:[%s6527_s3 + $0x180] ss:$8 sps:$4 sm:$0xff]  }
 0x21e   : > { %2037 = vmatpush1.bf16.msra.mxu0 %v4937_v44  ;;  %v5002_v44 = vld [vmem:[%s6527_s3 + $0x194] ss:$8 sps:$4 sm:$0xff]  }
 0x21f   : > { %2038 = vmatprep.subr.bf16.mxu0 %v4942_v45  ;;  %v5000_v45 = vld [vmem:[%s6527_s3 + $0x190] ss:$8 sps:$4 sm:$0xff]  }
 0x222   : > { %2039 = vmatpush1.bf16.msra.mxu0 %v4940_v46  ;;  %v5005_v46 = vld [vmem:[%s6527_s3 + $0x1a4] ss:$8 sps:$4 sm:$0xff]  }
 0x223   : > { %2040 = vmatprep.subr.bf16.mxu0 %v4945_v47  ;;  %v5003_v47 = vld [vmem:[%s6527_s3 + $0x1a0] ss:$8 sps:$4 sm:$0xff]  }
 0x226   : > { %2041 = vmatpush1.bf16.msra.mxu0 %v4943_v48  ;;  %v5008_v48 = vld [vmem:[%s6527_s3 + $0x1b4] ss:$8 sps:$4 sm:$0xff]  }
 0x227   : > { %2042 = vmatprep.subr.bf16.mxu0 %v4948_v49  ;;  %v5006_v49 = vld [vmem:[%s6527_s3 + $0x1b0] ss:$8 sps:$4 sm:$0xff]  }
 0x22a   : > { %2043 = vmatpush1.bf16.msra.mxu0 %v4946_v50  ;;  %v5011_v50 = vld [vmem:[%s6527_s3 + $0x1c4] ss:$8 sps:$4 sm:$0xff]  }
 0x22b   : > { %2044 = vmatprep.subr.bf16.mxu0 %v4951_v51  ;;  %v5009_v51 = vld [vmem:[%s6527_s3 + $0x1c0] ss:$8 sps:$4 sm:$0xff]  }
 0x22e   : > { %2045 = vmatpush1.bf16.msra.mxu0 %v4949_v52  ;;  %v5014_v52 = vld [vmem:[%s6527_s3 + $0x1d4] ss:$8 sps:$4 sm:$0xff]  }
 0x22f   : > { %2046 = vmatprep.subr.bf16.mxu0 %v4954_v53  ;;  %v5012_v53 = vld [vmem:[%s6527_s3 + $0x1d0] ss:$8 sps:$4 sm:$0xff]  }
 0x232   : > { %2047 = vmatpush1.bf16.msra.mxu0 %v4952_v54  ;;  %v5017_v54 = vld [vmem:[%s6527_s3 + $0x1e4] ss:$8 sps:$4 sm:$0xff]  }
 0x233   : > { %2048 = vmatprep.subr.bf16.mxu0 %v4957_v55  ;;  %v5015_v55 = vld [vmem:[%s6527_s3 + $0x1e0] ss:$8 sps:$4 sm:$0xff]  }
 0x236   : > { %2049 = vmatpush1.bf16.msra.mxu0 %v4955_v56  ;;  %v5020_v56 = vld [vmem:[%s6527_s3 + $0x1f4] ss:$8 sps:$4 sm:$0xff]  }
 0x237   : > { %2050 = vmatprep.subr.bf16.mxu0 %v4960_v57  ;;  %v5018_v57 = vld [vmem:[%s6527_s3 + $0x1f0] ss:$8 sps:$4 sm:$0xff]  }
 0x23a   : > { %2051 = vmatpush1.bf16.msra.mxu0 %v4958_v58  ;;  %v5023_v58 = vld [vmem:[%s6527_s3 + $0x204] ss:$8 sps:$4 sm:$0xff]  }
 0x23b   : > { %2052 = vmatprep.subr.bf16.mxu0 %v4963_v59 }
 0x23e   : > { %2053 = vmatpush1.bf16.msra.mxu0 %v4961_v60  ;;  %v5021_v60 = vld [vmem:[%s6527_s3 + $0x200] ss:$8 sps:$4 sm:$0xff]  }
 0x23f   : > { %2054 = vmatprep.subr.bf16.mxu0 %v4966_v61 }
 0x242   : > { %2055 = vmatpush1.bf16.msra.mxu0 %v4964_v62  ;;  %v5026_v62 = vld [vmem:[%s6527_s3 + $0x214] ss:$8 sps:$4 sm:$0xff]  }
 0x243   : > { %2056 = vmatprep.subr.bf16.mxu0 %v4969_v63  ;;  %v5024_v63 = vld [vmem:[%s6527_s3 + $0x210] ss:$8 sps:$4 sm:$0xff]  }
 0x246   : > { %2057 = vmatpush1.bf16.msra.mxu0 %v4967_v1  ;;  %v5029_v1 = vld [vmem:[%s6527_s3 + $0x224] ss:$8 sps:$4 sm:$0xff]  }
 0x247   : > { %2058 = vmatprep.subr.bf16.mxu0 %v4972_v2  ;;  %v5027_v2 = vld [vmem:[%s6527_s3 + $0x220] ss:$8 sps:$4 sm:$0xff]  }
 0x24a   : > { %2059 = vmatpush1.bf16.msra.mxu0 %v4970_v3  ;;  %v5032_v3 = vld [vmem:[%s6527_s3 + $0x234] ss:$8 sps:$4 sm:$0xff]  }
 0x24b   : > { %2069 = vmatprep.subr.bf16.mxu0 %v4975_v4  ;;  %v5030_v4 = vld [vmem:[%s6527_s3 + $0x230] ss:$8 sps:$4 sm:$0xff]  }
 0x2d0   : > { %v1335_v5 = vpop.f32.mrb[8].mxu0 }
 0x2d1   : > { %v1337_v6 = vpop.f32.mrb[9].mxu0  ;;  %v1342_v10 = vpack.c.bf16 %v1335_v5, %v1335_v5  ;;  %v5035_v5 = vld [vmem:[%s6527_s3 + $0x244] ss:$8 sps:$4 sm:$0xff]  }
 0x2d2   : > { %v1343_v7 = vpack.c.bf16 %v1337_v6, %v1337_v6  ;;  %v1339_v8 = vpop.f32.mrb[10].mxu0  ;;  %v5033_v6 = vld [vmem:[%s6527_s3 + $0x240] ss:$8 sps:$4 sm:$0xff]  }
 0x2d3   : > { %v1340_v11 = vpop.f32.mrb[11].mxu0  ;;  %v5036_v8 = vld [vmem:[%s6527_s3 + $0x250] ss:$8 sps:$4 sm:$0xff]  }
 0x2d4   : > { %2060 = vmatprep.mubr.bf16.mxu0 %v1343_v7  ;;  %v5038_v7 = vld [vmem:[%s6527_s3 + $0x254] ss:$8 sps:$4 sm:$0xff]  }
 0x2d5   : > { %2061 = vmatmul.mubr.bf16.vlgmr.msra.gmra.mrb[20].mxu0 %v1342_v10  ;;  %v5039_v10 = vld [vmem:[%s6527_s3 + $0x260] ss:$8 sps:$4 sm:$0xff]   ;;  %v5044_v11 = vld [vmem:[%s6527_s3 + $0x274] ss:$8 sps:$4 sm:$0xff]  }
 0x2d6   : > { %2070 = vmatpush1.bf16.msra.mxu0 %v4973_v9  ;;  %v5041_v9 = vld [vmem:[%s6527_s3 + $0x264] ss:$8 sps:$4 sm:$0xff]  }
 0x2d7   : > { %2071 = vmatprep.subr.bf16.mxu0 %v4978_v14  ;;  %v5042_v14 = vld [vmem:[%s6527_s3 + $0x270] ss:$8 sps:$4 sm:$0xff]  }
 0x2d8   : > { %v5598_v18 = vpop.f32.mrb[12].mxu0 }
 0x2d9   : > { %v1385_v19 = vpop.f32.mrb[13].mxu0  ;;  %v1390_v59 = vpack.c.bf16 %v5598_v18, %v5598_v18  ;;  %v5050_v18 = vld [vmem:[%s6527_s3 + $0x294] ss:$8 sps:$4 sm:$0xff]  }
 0x2da   : > { %2072 = vmatpush1.bf16.msra.mxu0 %v4976_v16  ;;  %v1391_v21 = vpack.c.bf16 %v1385_v19, %v1385_v19  ;;  %v1387_v22 = vpop.f32.mrb[14].mxu0  ;;  %v5047_v16 = vld [vmem:[%s6527_s3 + $0x284] ss:$8 sps:$4 sm:$0xff]   ;;  %v5048_v19 = vld [vmem:[%s6527_s3 + $0x290] ss:$8 sps:$4 sm:$0xff]  }
 0x2db   : > { %2073 = vmatprep.subr.bf16.mxu0 %v4981_v17  ;;  %v1388_v25 = vpop.f32.mrb[15].mxu0  ;;  %v5045_v17 = vld [vmem:[%s6527_s3 + $0x280] ss:$8 sps:$4 sm:$0xff]   ;;  %v5056_v22 = vld [vmem:[%s6527_s3 + $0x2b4] ss:$8 sps:$4 sm:$0xff]  }
 0x2dc   : > { %2101 = vmatprep.mubr.bf16.mxu0 %v1391_v21  ;;  %v5051_v21 = vld [vmem:[%s6527_s3 + $0x2a0] ss:$8 sps:$4 sm:$0xff]   ;;  %v5059_v25 = vld [vmem:[%s6527_s3 + $0x2c4] ss:$8 sps:$4 sm:$0xff]  }
 0x2de   : > { %2074 = vmatpush1.bf16.msra.mxu0 %v4979_v20  ;;  %v5053_v20 = vld [vmem:[%s6527_s3 + $0x2a4] ss:$8 sps:$4 sm:$0xff]  }
 0x2df   : > { %2075 = vmatprep.subr.bf16.mxu0 %v4984_v24  ;;  %v5054_v24 = vld [vmem:[%s6527_s3 + $0x2b0] ss:$8 sps:$4 sm:$0xff]  }
 0x2e0   : > { %v5612_v31 = vpop.f32.mrb[16].mxu0 }
 0x2e1   : > { %v1433_v32 = vpop.f32.mrb[17].mxu0 }
 0x2e2   : > { %2076 = vmatpush1.bf16.msra.mxu0 %v4982_v27  ;;  %v1435_v34 = vpop.f32.mrb[18].mxu0  ;;  %v1439_v61 = vpack.c.bf16 %v1433_v32, %v1433_v32  ;;  %v5057_v27 = vld [vmem:[%s6527_s3 + $0x2c0] ss:$8 sps:$4 sm:$0xff]   ;;  %v5060_v32 = vld [vmem:[%s6527_s3 + $0x2d0] ss:$8 sps:$4 sm:$0xff]  }
 0x2e3   : > { %2077 = vmatprep.subr.bf16.mxu0 %v4987_v30  ;;  %v1436_v36 = vpop.f32.mrb[19].mxu0  ;;  %v5062_v30 = vld [vmem:[%s6527_s3 + $0x2d4] ss:$8 sps:$4 sm:$0xff]   ;;  %v5063_v34 = vld [vmem:[%s6527_s3 + $0x2e0] ss:$8 sps:$4 sm:$0xff]  }
 0x2e4   : > { %v5066_v36 = vld [vmem:[%s6527_s3 + $0x2f0] ss:$8 sps:$4 sm:$0xff]  }
 0x2e6   : > { %2078 = vmatpush1.bf16.msra.mxu0 %v4985_v33  ;;  %v5065_v33 = vld [vmem:[%s6527_s3 + $0x2e4] ss:$8 sps:$4 sm:$0xff]  }
 0x2e7   : > { %2079 = vmatprep.subr.bf16.mxu0 %v4990_v35  ;;  %v5068_v35 = vld [vmem:[%s6527_s3 + $0x2f4] ss:$8 sps:$4 sm:$0xff]  }
 0x2ea   : > { %2080 = vmatpush1.bf16.msra.mxu0 %v4988_v37  ;;  %v1438_v37 = vpack.c.bf16 %v5612_v31, %v5612_v31  ;;  %v5070_v31 = vld [vmem:[%s6529_s0 + $0x8] sm:$0xff]  }
 0x2eb   : > { %2081 = vmatprep.subr.bf16.mxu0 %v4993_v38  ;;  %v1536_v38 = vld [vmem:[%s6528_s28] sm:$0x3]  ;;  %s5130_s28 = smov 80  }
 0x2ee   : > { %2082 = vmatpush1.bf16.msra.mxu0 %v4991_v39  ;;  %v5069_v39 = vld [vmem:[%s6529_s0] sm:$0xff]   ;;  %s4413_s0 = sshll.u32 %s6547_s26, 4 }
 0x2ef   : > { %2083 = vmatprep.subr.bf16.mxu0 %v4996_v40  ;;  %v1541_v40 = vrot.slane %v1536_v38, %v956_v13  ;;  %4580 = vmatprep.subr.bf16.mxu1 %v5069_v39 }
 0x2f0   : > { %4581 = vmatpush3.bf16.msra.mxu1 %v5069_v39 }
 0x2f1   : > { %4582 = vmatprep.subr.bf16.mxu1 %v5070_v31 }
 0x2f2   : > { %2084 = vmatpush1.bf16.msra.mxu0 %v4994_v41  ;;  %v1545_v41 = vrot.slane %v1536_v38, %v960_v15 }
 0x2f3   : > { %2085 = vmatprep.subr.bf16.mxu0 %v4999_v42 }
 0x2f4   : > { %4583 = vmatpush3.bf16.msra.mxu1 %v5070_v31 }
 0x2f6   : > { %2086 = vmatpush1.bf16.msra.mxu0 %v4997_v43 }
 0x2f7   : > { %2087 = vmatprep.subr.bf16.mxu0 %v5002_v44 }
 0x2fa   : > { %2088 = vmatpush1.bf16.msra.mxu0 %v5000_v45 }
 0x2fb   : > { %2089 = vmatprep.subr.bf16.mxu0 %v5005_v46 }
 0x2fe   : > { %2090 = vmatpush1.bf16.msra.mxu0 %v5003_v47 }
 0x2ff   : > { %2091 = vmatprep.subr.bf16.mxu0 %v5008_v48 }
 0x302   : > { %2092 = vmatpush1.bf16.msra.mxu0 %v5006_v49 }
 0x303   : > { %2093 = vmatprep.subr.bf16.mxu0 %v5011_v50 }
 0x306   : > { %2094 = vmatpush1.bf16.msra.mxu0 %v5009_v51 }
 0x307   : > { %2095 = vmatprep.subr.bf16.mxu0 %v5014_v52 }
 0x30a   : > { %2096 = vmatpush1.bf16.msra.mxu0 %v5012_v53 }
 0x30b   : > { %2097 = vmatprep.subr.bf16.mxu0 %v5017_v54 }
 0x30e   : > { %2098 = vmatpush1.bf16.msra.mxu0 %v5015_v55 }
 0x30f   : > { %2099 = vmatprep.subr.bf16.mxu0 %v5020_v56 }
 0x312   : > { %2100 = vmatpush1.bf16.msra.mxu0 %v5018_v57 }
 0x313   : > { %2110 = vmatprep.subr.bf16.mxu0 %v5023_v58 }
 0x315   : > { %2102 = vmatmul.mubr.bf16.vlgmr.msra.gmra.mrb[20].mxu0 %v1390_v59 }
 0x316   : > { %2111 = vmatpush1.bf16.msra.mxu0 %v5021_v60  ;;  %2142 = vmatprep.mubr.bf16.mxu0 %v1439_v61 }
 0x317   : > { %2112 = vmatprep.subr.bf16.mxu0 %v5026_v62 }
 0x31a   : > { %2113 = vmatpush1.bf16.msra.mxu0 %v5024_v63 }
 0x31b   : > { %2114 = vmatprep.subr.bf16.mxu0 %v5029_v1 }
 0x31e   : > { %2115 = vmatpush1.bf16.msra.mxu0 %v5027_v2 }
 0x31f   : > { %2116 = vmatprep.subr.bf16.mxu0 %v5032_v3 }
 0x322   : > { %2117 = vmatpush1.bf16.msra.mxu0 %v5030_v4 }
 0x323   : > { %2118 = vmatprep.subr.bf16.mxu0 %v5035_v5 }
 0x326   : > { %2119 = vmatpush1.bf16.msra.mxu0 %v5033_v6 }
 0x327   : > { %2120 = vmatprep.subr.bf16.mxu0 %v5038_v7 }
 0x32a   : > { %2121 = vmatpush1.bf16.msra.mxu0 %v5036_v8 }
 0x32b   : > { %2122 = vmatprep.subr.bf16.mxu0 %v5041_v9 }
 0x32e   : > { %2123 = vmatpush1.bf16.msra.mxu0 %v5039_v10 }
 0x32f   : > { %2124 = vmatprep.subr.bf16.mxu0 %v5044_v11 }
 0x332   : > { %2125 = vmatpush1.bf16.msra.mxu0 %v5042_v14 }
 0x333   : > { %2126 = vmatprep.subr.bf16.mxu0 %v5047_v16 }
 0x336   : > { %2127 = vmatpush1.bf16.msra.mxu0 %v5045_v17 }
 0x337   : > { %2128 = vmatprep.subr.bf16.mxu0 %v5050_v18 }
 0x33a   : > { %2129 = vmatpush1.bf16.msra.mxu0 %v5048_v19 }
 0x33b   : > { %2130 = vmatprep.subr.bf16.mxu0 %v5053_v20 }
 0x33e   : > { %2131 = vmatpush1.bf16.msra.mxu0 %v5051_v21 }
 0x33f   : > { %2132 = vmatprep.subr.bf16.mxu0 %v5056_v22 }
 0x342   : > { %2133 = vmatpush1.bf16.msra.mxu0 %v5054_v24 }
 0x343   : > { %2134 = vmatprep.subr.bf16.mxu0 %v5059_v25 }
 0x346   : > { %2135 = vmatpush1.bf16.msra.mxu0 %v5057_v27 }
 0x347   : > { %2136 = vmatprep.subr.bf16.mxu0 %v5062_v30 }
 0x34a   : > { %2137 = vmatpush1.bf16.msra.mxu0 %v5060_v32 }
 0x34b   : > { %2138 = vmatprep.subr.bf16.mxu0 %v5065_v33 }
 0x34e   : > { %2139 = vmatpush1.bf16.msra.mxu0 %v5063_v34  ;;  %v5071_v34 = vld [vmem:[%s6488_s9] sm:$0xff]  }
 0x34f   : > { %2140 = vmatprep.subr.bf16.mxu0 %v5068_v35 }
 0x352   : > { %2141 = vmatpush1.bf16.msra.mxu0 %v5066_v36 }
 0x355   : > { %2143 = vmatmul.mubr.bf16.vlgmr.msra.gmra.mrb[20].mxu0 %v1438_v37 }
 0x428   : > { %v2144_v42 = vpop.f32.mrb[20].mxu0 }
 0x429   : > { %v4778_v43 = vadd.f32 %v2144_v42, %v1541_v40  ;;  %v2146_v44 = vpop.f32.mrb[21].mxu0 }
 0x42a   : > { %v4779_v45 = vadd.f32 %v2146_v44, %v1545_v41  ;;  %v2148_v46 = vpop.f32.mrb[22].mxu0 }
 0x42b   : > { %v2151_v47 = vmax.f32 %v4778_v43, 0.0  ;;  %v2149_v48 = vpop.f32.mrb[23].mxu0 }
 0x42c   : > { %v2152_v49 = vmax.f32 %v4779_v45, 0.0  ;;  %v5074_v48 = vld [vmem:[%s6488_s9 + $0x10] sm:$0xff]  }
 0x42d   : > { %2288 = vst.msk [vmem:[#allocation3] sm:$0xff] %vm752_vm1, %v2151_v47  ;;  %2300 = vrot.lane.b32.xlu1 %v2151_v47, %s5126_s25  ;;  %2290 = vrot.lane.b32.xlu0 %v2151_v47, %s5127_s4 }
 0x42e   : > { %2306 = vst.msk [vmem:[#allocation3 + $0x20] sm:$0xff] %vm752_vm1, %v2152_v49 }
 0x431   : > { %2308 = vrot.lane.b32.xlu1 %v2152_v49, %s5127_s4  ;;  %2295 = vrot.lane.b32.xlu0 %v2151_v47, %s5128_s1  ;;  %v5072_v47 = vld [vmem:[%s6488_s9 + $0x8] sm:$0xff]  }
 0x434   : > { %v2371_v51 = vld [vmem:[#allocation3] sm:$0xff] }
 0x435   : > { %2318 = vrot.lane.b32.xlu1 %v2152_v49, %s5126_s25  ;;  %2313 = vrot.lane.b32.xlu0 %v2152_v49, %s5128_s1  ;;  %v5075_v49 = vld [vmem:[%s6488_s9 + $0x18] sm:$0xff]  }
 0x439   : > { %2159 = vrot.lane.b32.xlu1 %v5457_v28, %s5129_s27  ;;  %2157 = vrot.lane.b32.xlu0 %v5453_v23, %s5129_s27 }
 0x43d   : > { %2168 = vrot.lane.b32.xlu1 %v5457_v28, %s5127_s4  ;;  %2166 = vrot.lane.b32.xlu0 %v5453_v23, %s5127_s4 }
 0x441   : > { %2177 = vrot.lane.b32.xlu1 %v5457_v28, %s5130_s28  ;;  %2175 = vrot.lane.b32.xlu0 %v5453_v23, %s5130_s28 }
 0x445   : > { %2186 = vrot.lane.b32.xlu1 %v5457_v28, %s5128_s1  ;;  %2184 = vrot.lane.b32.xlu0 %v5453_v23, %s5128_s1 }
 0x449   : > { %2195 = vrot.lane.b32.xlu1 %v5457_v28, %s5131_s2  ;;  %2193 = vrot.lane.b32.xlu0 %v5453_v23, %s5131_s2 }
 0x44d   : > { %2204 = vrot.lane.b32.xlu1 %v5457_v28, %s5126_s25  ;;  %2202 = vrot.lane.b32.xlu0 %v5453_v23, %s5126_s25 }
 0x451   : > { %2213 = vrot.lane.b32.xlu1 %v5457_v28, %s5132_s29  ;;  %2211 = vrot.lane.b32.xlu0 %v5453_v23, %s5132_s29 }
 0x455   : > { %2227 = vrot.lane.b32.xlu1 %v5461_v29, %s5129_s27  ;;  %2225 = vrot.lane.b32.xlu0 %v5455_v26, %s5129_s27 }
 0x459   : > { %2236 = vrot.lane.b32.xlu1 %v5461_v29, %s5127_s4  ;;  %2234 = vrot.lane.b32.xlu0 %v5455_v26, %s5127_s4  ;;  %s737_s4 = scalar_lea.vmem %s6503_s24, %s4413_s0 }
 0x45d   : > { %2245 = vrot.lane.b32.xlu1 %v5461_v29, %s5130_s28  ;;  %2243 = vrot.lane.b32.xlu0 %v5455_v26, %s5130_s28 }
 0x461   : > { %2254 = vrot.lane.b32.xlu1 %v5461_v29, %s5128_s1  ;;  %2252 = vrot.lane.b32.xlu0 %v5455_v26, %s5128_s1  ;;  %s6530_s1 = sld [smem:[#allocation11_spill]] }
 0x465   : > { %2263 = vrot.lane.b32.xlu1 %v5461_v29, %s5131_s2  ;;  %2261 = vrot.lane.b32.xlu0 %v5455_v26, %s5131_s2 }
 0x467   : > { %v5073_v46 = vld [vmem:[%s6530_s1] sm:$0xff]  }
 0x469   : > { %2272 = vrot.lane.b32.xlu1 %v5461_v29, %s5126_s25  ;;  %2270 = vrot.lane.b32.xlu0 %v5455_v26, %s5126_s25 }
 0x46d   : > { %2281 = vrot.lane.b32.xlu1 %v5461_v29, %s5132_s29  ;;  %2279 = vrot.lane.b32.xlu0 %v5455_v26, %s5132_s29  ;;  %v2375_v29 = vld [vmem:[#allocation3 + $0x20] sm:$0xff] }
 0x49f   : > { %v2301_v12 = vpop.permute.xlu1 %2300  ;;  %v2291_v13 = vpop.permute.xlu0 %2290 }
 0x4a0   : > { %2304 = vst.msk [vmem:[#allocation3 + $0x18] sm:$0xff] %vm752_vm1, %v2301_v12  ;;  %2294 = vst.msk [vmem:[#allocation3 + $0x8] sm:$0xff] %vm752_vm1, %v2291_v13  ;;  %v5076_v12 = vld [vmem:[%s6488_s9 + $0x20] sm:$0xff]   ;;  %v5077_v13 = vld [vmem:[%s6488_s9 + $0x28] sm:$0xff]  }
 0x4a3   : > { %v2309_v15 = vpop.permute.xlu1 %2308  ;;  %v2296_v23 = vpop.permute.xlu0 %2295 }
 0x4a4   : > { %2312 = vst.msk [vmem:[#allocation3 + $0x28] sm:$0xff] %vm752_vm1, %v2309_v15  ;;  %2299 = vst.msk [vmem:[#allocation3 + $0x10] sm:$0xff] %vm752_vm1, %v2296_v23  ;;  %v5078_v15 = vld [vmem:[%s6488_s9 + $0x30] sm:$0xff]   ;;  %v5079_v23 = vld [vmem:[%s6488_s9 + $0x38] sm:$0xff]  }
 0x4a7   : > { %v2319_v28 = vpop.permute.xlu1 %2318  ;;  %v2314_v50 = vpop.permute.xlu0 %2313  ;;  %v2372_v52 = vld [vmem:[#allocation3 + $0x8] sm:$0xff]  ;;  %v2374_v56 = vld [vmem:[#allocation3 + $0x18] sm:$0xff] }
 0x4a8   : > { %2322 = vst.msk [vmem:[#allocation3 + $0x38] sm:$0xff] %vm752_vm1, %v2319_v28  ;;  %2317 = vst.msk [vmem:[#allocation3 + $0x30] sm:$0xff] %vm752_vm1, %v2314_v50  ;;  %v2379_v26 = vpack.c.bf16 %v2372_v52, %v2371_v51  ;;  %v5080_v28 = vld [vmem:[%s6488_s9 + $0x40] sm:$0xff]   ;;  %v5081_v50 = vld [vmem:[%s6488_s9 + $0x48] sm:$0xff]  }
 0x4a9   : > { %v5082_v51 = vld [vmem:[%s6488_s9 + $0x50] sm:$0xff]   ;;  %v5083_v52 = vld [vmem:[%s6488_s9 + $0x58] sm:$0xff]  }
 0x4aa   : > { %4584 = vmatprep.mubr.msk.bf16.mxu1 %vm752_vm1, %v2379_v26  ;;  %v5084_v26 = vld [vmem:[%s6488_s9 + $0x60] sm:$0xff]  }
 0x4ab   : > { %v2160_v53 = vpop.permute.xlu1 %2159  ;;  %v2158_v54 = vpop.permute.xlu0 %2157  ;;  %v2373_v55 = vld [vmem:[#allocation3 + $0x10] sm:$0xff]  ;;  %v2376_v57 = vld [vmem:[#allocation3 + $0x28] sm:$0xff] }
 0x4ac   : > { %2165 = vst.msk [vmem:[#allocation2 + $0x18] sm:$0xff] %vm1297_vm2, %v2160_v53  ;;  %2164 = vst.msk [vmem:[#allocation2 + $0x10] sm:$0xff] %vm1297_vm2, %v2158_v54  ;;  %v2380_v58 = vpack.c.bf16 %v2374_v56, %v2373_v55  ;;  %v2381_v59 = vpack.c.bf16 %v2376_v57, %v2375_v29  ;;  %v5085_v29 = vld [vmem:[%s6488_s9 + $0x68] sm:$0xff]   ;;  %v5086_v53 = vld [vmem:[%s6488_s9 + $0x70] sm:$0xff]  }
 0x4ad   : > { %v5087_v54 = vld [vmem:[%s6488_s9 + $0x78] sm:$0xff]   ;;  %v2324_v55 = vld [vmem:[#allocation2 + $0x8] sm:$0xff]  ;;  %v2323_v56 = vld [vmem:[#allocation2] sm:$0xff] }
 0x4ae   : > { %4585 = vmatmul.mubr.msk.bf16.vlgmr.msra.gmra.mrb[8].mxu1 %vm752_vm1, %v2380_v58  ;;  %v2355_v57 = vpack.c.bf16 %v2324_v55, %v2323_v56 }
 0x4af   : > { %v2169_v60 = vpop.permute.xlu1 %2168  ;;  %v2167_v61 = vpop.permute.xlu0 %2166  ;;  %4588 = vmatprep.mubr.msk.bf16.mxu1 %vm752_vm1, %v2381_v59  ;;  %v2377_v62 = vld [vmem:[#allocation3 + $0x30] sm:$0xff]  ;;  %v2378_v63 = vld [vmem:[#allocation3 + $0x38] sm:$0xff] }
 0x4b0   : > { %2174 = vst.msk [vmem:[#allocation2 + $0x28] sm:$0xff] %vm1297_vm2, %v2169_v60  ;;  %2173 = vst.msk [vmem:[#allocation2 + $0x20] sm:$0xff] %vm1297_vm2, %v2167_v61  ;;  %v2382_v3 = vpack.c.bf16 %v2378_v63, %v2377_v62 }
 0x4b3   : > { %v2178_v1 = vpop.permute.xlu1 %2177  ;;  %v2176_v2 = vpop.permute.xlu0 %2175  ;;  %v2325_v58 = vld [vmem:[#allocation2 + $0x10] sm:$0xff]  ;;  %v2326_v59 = vld [vmem:[#allocation2 + $0x18] sm:$0xff] }
 0x4b4   : > { %2183 = vst.msk [vmem:[#allocation2 + $0x38] sm:$0xff] %vm1297_vm2, %v2178_v1  ;;  %2182 = vst.msk [vmem:[#allocation2 + $0x30] sm:$0xff] %vm1297_vm2, %v2176_v2  ;;  %v2356_v62 = vpack.c.bf16 %v2326_v59, %v2325_v58 }
 0x4b6   : > { %4589 = vmatmul.mubr.msk.bf16.gmra.mrb[12].mxu1 %vm752_vm1, %v2382_v3 }
 0x4b7   : > { %v2187_v4 = vpop.permute.xlu1 %2186  ;;  %v2185_v5 = vpop.permute.xlu0 %2184  ;;  %4600 = vmatprep.mubr.msk.bf16.mxu1 %vm2592_vm3, %v5071_v34  ;;  %v2327_v60 = vld [vmem:[#allocation2 + $0x20] sm:$0xff]  ;;  %v2328_v61 = vld [vmem:[#allocation2 + $0x28] sm:$0xff] }
 0x4b8   : > { %2192 = vst.msk [vmem:[#allocation2 + $0x48] sm:$0xff] %vm1297_vm2, %v2187_v4  ;;  %2191 = vst.msk [vmem:[#allocation2 + $0x40] sm:$0xff] %vm1297_vm2, %v2185_v5  ;;  %v2357_v63 = vpack.c.bf16 %v2328_v61, %v2327_v60 }
 0x4bb   : > { %v2196_v6 = vpop.permute.xlu1 %2195  ;;  %v2194_v7 = vpop.permute.xlu0 %2193  ;;  %v2329_v1 = vld [vmem:[#allocation2 + $0x30] sm:$0xff]  ;;  %v2330_v2 = vld [vmem:[#allocation2 + $0x38] sm:$0xff] }
 0x4bc   : > { %2201 = vst.msk [vmem:[#allocation2 + $0x58] sm:$0xff] %vm1297_vm2, %v2196_v6  ;;  %2200 = vst.msk [vmem:[#allocation2 + $0x50] sm:$0xff] %vm1297_vm2, %v2194_v7  ;;  %v2358_v5 = vpack.c.bf16 %v2330_v2, %v2329_v1 }
 0x4bf   : > { %v2205_v8 = vpop.permute.xlu1 %2204  ;;  %v2203_v9 = vpop.permute.xlu0 %2202  ;;  %v2331_v3 = vld [vmem:[#allocation2 + $0x40] sm:$0xff]  ;;  %v2332_v4 = vld [vmem:[#allocation2 + $0x48] sm:$0xff] }
 0x4c0   : > { %2210 = vst.msk [vmem:[#allocation2 + $0x68] sm:$0xff] %vm1297_vm2, %v2205_v8  ;;  %2209 = vst.msk [vmem:[#allocation2 + $0x60] sm:$0xff] %vm1297_vm2, %v2203_v9  ;;  %v2359_v6 = vpack.c.bf16 %v2332_v4, %v2331_v3 }
 0x4c3   : > { %v2214_v10 = vpop.permute.xlu1 %2213  ;;  %v2212_v11 = vpop.permute.xlu0 %2211  ;;  %v2333_v7 = vld [vmem:[#allocation2 + $0x50] sm:$0xff]  ;;  %v2334_v8 = vld [vmem:[#allocation2 + $0x58] sm:$0xff] }
 0x4c4   : > { %2219 = vst.msk [vmem:[#allocation2 + $0x78] sm:$0xff] %vm1297_vm2, %v2214_v10  ;;  %2218 = vst.msk [vmem:[#allocation2 + $0x70] sm:$0xff] %vm1297_vm2, %v2212_v11  ;;  %v2360_v11 = vpack.c.bf16 %v2334_v8, %v2333_v7 }
 0x4c7   : > { %v2228_v14 = vpop.permute.xlu1 %2227  ;;  %v2226_v16 = vpop.permute.xlu0 %2225  ;;  %v2335_v9 = vld [vmem:[#allocation2 + $0x60] sm:$0xff]  ;;  %v2336_v10 = vld [vmem:[#allocation2 + $0x68] sm:$0xff] }
 0x4c8   : > { %2233 = vst.msk [vmem:[#allocation2 + $0x98] sm:$0xff] %vm1297_vm2, %v2228_v14  ;;  %2232 = vst.msk [vmem:[#allocation2 + $0x90] sm:$0xff] %vm1297_vm2, %v2226_v16  ;;  %v2361_v14 = vpack.c.bf16 %v2336_v10, %v2335_v9 }
 0x4cb   : > { %v2237_v17 = vpop.permute.xlu1 %2236  ;;  %v2235_v18 = vpop.permute.xlu0 %2234  ;;  %v2337_v16 = vld [vmem:[#allocation2 + $0x70] sm:$0xff] }
 0x4cc   : > { %2242 = vst.msk [vmem:[#allocation2 + $0xa8] sm:$0xff] %vm1297_vm2, %v2237_v17  ;;  %2241 = vst.msk [vmem:[#allocation2 + $0xa0] sm:$0xff] %vm1297_vm2, %v2235_v18  ;;  %v2338_v17 = vld [vmem:[#allocation2 + $0x78] sm:$0xff]  ;;  %v2340_v18 = vld [vmem:[#allocation2 + $0x88] sm:$0xff] }
 0x4cf   : > { %v2246_v19 = vpop.permute.xlu1 %2245  ;;  %v2244_v20 = vpop.permute.xlu0 %2243 }
 0x4d0   : > { %2251 = vst.msk [vmem:[#allocation2 + $0xb8] sm:$0xff] %vm1297_vm2, %v2246_v19  ;;  %2250 = vst.msk [vmem:[#allocation2 + $0xb0] sm:$0xff] %vm1297_vm2, %v2244_v20  ;;  %v2362_v19 = vpack.c.bf16 %v2338_v17, %v2337_v16  ;;  %v2339_v20 = vld [vmem:[#allocation2 + $0x80] sm:$0xff] }
 0x4d3   : > { %v2255_v21 = vpop.permute.xlu1 %2254  ;;  %v2253_v22 = vpop.permute.xlu0 %2252 }
 0x4d4   : > { %2260 = vst.msk [vmem:[#allocation2 + $0xc8] sm:$0xff] %vm1297_vm2, %v2255_v21  ;;  %2259 = vst.msk [vmem:[#allocation2 + $0xc0] sm:$0xff] %vm1297_vm2, %v2253_v22  ;;  %v2363_v21 = vpack.c.bf16 %v2340_v18, %v2339_v20  ;;  %v2341_v22 = vld [vmem:[#allocation2 + $0x90] sm:$0xff] }
 0x4d7   : > { %v2264_v24 = vpop.permute.xlu1 %2263  ;;  %v2262_v25 = vpop.permute.xlu0 %2261  ;;  %v2346_v34 = vld [vmem:[#allocation2 + $0xb8] sm:$0xff] }
 0x4d8   : > { %2269 = vst.msk [vmem:[#allocation2 + $0xd8] sm:$0xff] %vm1297_vm2, %v2264_v24  ;;  %2268 = vst.msk [vmem:[#allocation2 + $0xd0] sm:$0xff] %vm1297_vm2, %v2262_v25  ;;  %v2342_v24 = vld [vmem:[#allocation2 + $0x98] sm:$0xff]  ;;  %v2343_v25 = vld [vmem:[#allocation2 + $0xa0] sm:$0xff] }
 0x4db   : > { %v2273_v27 = vpop.permute.xlu1 %2272  ;;  %v2271_v30 = vpop.permute.xlu0 %2270 }
 0x4dc   : > { %2278 = vst.msk [vmem:[#allocation2 + $0xe8] sm:$0xff] %vm1297_vm2, %v2273_v27  ;;  %2277 = vst.msk [vmem:[#allocation2 + $0xe0] sm:$0xff] %vm1297_vm2, %v2271_v30  ;;  %v2344_v27 = vld [vmem:[#allocation2 + $0xa8] sm:$0xff]  ;;  %v2364_v30 = vpack.c.bf16 %v2342_v24, %v2341_v22 }
 0x4df   : > { %v2282_v32 = vpop.permute.xlu1 %2281  ;;  %v2280_v33 = vpop.permute.xlu0 %2279 }
 0x4e0   : > { %2287 = vst.msk [vmem:[#allocation2 + $0xf8] sm:$0xff] %vm1297_vm2, %v2282_v32  ;;  %2286 = vst.msk [vmem:[#allocation2 + $0xf0] sm:$0xff] %vm1297_vm2, %v2280_v33  ;;  %v2365_v32 = vpack.c.bf16 %v2344_v27, %v2343_v25  ;;  %v2345_v33 = vld [vmem:[#allocation2 + $0xb0] sm:$0xff] }
 0x581   : > { %v4586_v35 = vpop.f32.mrb[8].mxu1 }
 0x582   : > { %v2445_v36 = vpop.f32.mrb[9].mxu1 }
 0x583   : > { %v4587_v37 = vpop.f32.mrb[10].mxu1 }
 0x584   : > { %v2509_v38 = vpack.c.bf16 %v4587_v37, %v4586_v35  ;;  %v2448_v39 = vpop.f32.mrb[11].mxu1  ;;  %v2347_v35 = vld [vmem:[#allocation2 + $0xc0] sm:$0xff]  ;;  %v2366_v37 = vpack.c.bf16 %v2346_v34, %v2345_v33 }
 0x585   : > { %v2508_v40 = vpack.c.bf16 %v2448_v39, %v2445_v36  ;;  %v2348_v36 = vld [vmem:[#allocation2 + $0xc8] sm:$0xff]  ;;  %v2349_v39 = vld [vmem:[#allocation2 + $0xd0] sm:$0xff] }
 0x587   : > { %4592 = vmatprep.subr.bf16.mxu1 %v2508_v40 }
 0x588   : > { %4593 = vmatpush3.bf16.msra.mxu1 %v2508_v40  ;;  %v2350_v40 = vld [vmem:[#allocation2 + $0xd8] sm:$0xff] }
 0x589   : > { %v4590_v41 = vpop.f32.mrb[12].mxu1  ;;  %4594 = vmatprep.subr.bf16.mxu1 %v2509_v38 }
 0x58a   : > { %v2461_v42 = vpop.f32.mrb[13].mxu1 }
 0x58b   : > { %v4591_v31 = vpop.f32.mrb[14].mxu1 }
 0x58c   : > { %v2511_v43 = vpack.c.bf16 %v4591_v31, %v4590_v41  ;;  %v2464_v44 = vpop.f32.mrb[15].mxu1  ;;  %4595 = vmatpush3.bf16.msra.mxu1 %v2509_v38  ;;  %v2367_v38 = vpack.c.bf16 %v2348_v36, %v2347_v35  ;;  %v2351_v41 = vld [vmem:[#allocation2 + $0xe0] sm:$0xff]  ;;  %v2368_v31 = vpack.c.bf16 %v2350_v40, %v2349_v39 }
 0x58d   : > { %v2510_v45 = vpack.c.bf16 %v2464_v44, %v2461_v42  ;;  %v2352_v42 = vld [vmem:[#allocation2 + $0xe8] sm:$0xff]  ;;  %v2353_v44 = vld [vmem:[#allocation2 + $0xf0] sm:$0xff] }
 0x58f   : > { %4596 = vmatprep.subr.bf16.mxu1 %v2510_v45 }
 0x590   : > { %4597 = vmatpush3.bf16.msra.mxu1 %v2510_v45  ;;  %v2354_v45 = vld [vmem:[#allocation2 + $0xf8] sm:$0xff] }
 0x591   : > { %4598 = vmatprep.subr.bf16.mxu1 %v2511_v43 }
 0x594   : > { %4599 = vmatpush3.bf16.msra.mxu1 %v2511_v43  ;;  %v2369_v43 = vpack.c.bf16 %v2352_v42, %v2351_v41 }
 0x595   : > { %4632 = vmatprep.subr.bf16.mxu1 %v5073_v46 }
 0x597   : > { %4601 = vmatmul.mubr.msk.bf16.vlgmr.msra.gmra.mrb[16].mxu1 %vm2592_vm3, %v5072_v47  ;;  %v5088_v47 = vld [vmem:[%s6491_s12] sm:$0xff]  }
 0x598   : > { %4633 = vmatpush3.bf16.msra.mxu1 %v5073_v46  ;;  %4604 = vmatprep.mubr.msk.bf16.mxu1 %vm2592_vm3, %v5074_v48  ;;  %v2370_v46 = vpack.c.bf16 %v2354_v45, %v2353_v44  ;;  %v5089_v48 = vld [vmem:[%s6493_s14] sm:$0xff]  }
 0x599   : > { %4666 = vmatprep.subr.bf16.mxu0 %v5088_v47  ;;  %4702 = vmatprep.subr.bf16.mxu1 %v5089_v48 }
 0x59a   : > { %4667 = vmatpush3.bf16.msra.mxu0 %v5088_v47 }
 0x59f   : > { %4605 = vmatmul.mubr.msk.bf16.gmra.mrb[20].mxu1 %vm2592_vm3, %v5075_v49  ;;  %v5090_v49 = vld [vmem:[%s6491_s12 + $0x8] sm:$0xff]  }
 0x5a0   : > { %4608 = vmatprep.mubr.msk.bf16.mxu1 %vm2592_vm3, %v5076_v12  ;;  %v5091_v12 = vld [vmem:[%s6493_s14 + $0x8] sm:$0xff]   ;;  %4668 = vmatprep.subr.bf16.mxu0 %v5090_v49 }
 0x5a1   : > { %4669 = vmatpush3.bf16.msra.mxu0 %v5090_v49 }
 0x5a7   : > { %4609 = vmatmul.mubr.msk.bf16.gmra.mrb[24].mxu1 %vm2592_vm3, %v5077_v13  ;;  %v5968_v13 = vld [vmem:[%s6489_s10] ss:$0 sm:$0xff] }
 0x5a8   : > { %4612 = vmatprep.mubr.msk.bf16.mxu1 %vm2592_vm3, %v5078_v15 }
 0x5af   : > { %4613 = vmatmul.mubr.msk.bf16.gmra.mrb[28].mxu1 %vm2592_vm3, %v5079_v23 }
 0x5b0   : > { %4616 = vmatprep.mubr.msk.bf16.mxu1 %vm2592_vm3, %v5080_v28 }
 0x5b7   : > { %4617 = vmatmul.mubr.msk.bf16.gmra.mrb[32].mxu1 %vm2592_vm3, %v5081_v50 }
 0x5b8   : > { %4620 = vmatprep.mubr.msk.bf16.mxu1 %vm2592_vm3, %v5082_v51 }
 0x5bf   : > { %4621 = vmatmul.mubr.msk.bf16.gmra.mrb[36].mxu1 %vm2592_vm3, %v5083_v52 }
 0x5c0   : > { %4624 = vmatprep.mubr.msk.bf16.mxu1 %vm2592_vm3, %v5084_v26 }
 0x5c7   : > { %4625 = vmatmul.mubr.msk.bf16.gmra.mrb[40].mxu1 %vm2592_vm3, %v5085_v29 }
 0x5c8   : > { %4628 = vmatprep.mubr.msk.bf16.mxu1 %vm2592_vm3, %v5086_v53 }
 0x5cf   : > { %4629 = vmatmul.mubr.msk.bf16.gmra.mrb[44].mxu1 %vm2592_vm3, %v5087_v54 }
 0x5d0   : > { %4634 = vmatprep.mubr.msk.bf16.mxu1 %vm1297_vm2, %v2355_v57 }
 0x5d7   : > { %4635 = vmatmul.mubr.msk.bf16.vlgmr.msra.gmra.mrb[16].mxu1 %vm1297_vm2, %v2356_v62 }
 0x5d8   : > { %4638 = vmatprep.mubr.msk.bf16.mxu1 %vm1297_vm2, %v2357_v63  ;;  %4703 = vmatpush3.bf16.msra.mxu1 %v5089_v48 }
 0x5d9   : > { %4704 = vmatprep.subr.bf16.mxu1 %v5091_v12 }
 0x5dc   : > { %4705 = vmatpush3.bf16.msra.mxu1 %v5091_v12 }
 0x5df   : > { %4639 = vmatmul.mubr.msk.bf16.gmra.mrb[20].mxu1 %vm1297_vm2, %v2358_v5 }
 0x5e0   : > { %4642 = vmatprep.mubr.msk.bf16.mxu1 %vm1297_vm2, %v2359_v6 }
 0x5e7   : > { %4643 = vmatmul.mubr.msk.bf16.gmra.mrb[24].mxu1 %vm1297_vm2, %v2360_v11 }
 0x5e8   : > { %4646 = vmatprep.mubr.msk.bf16.mxu1 %vm1297_vm2, %v2361_v14 }
 0x5ef   : > { %4647 = vmatmul.mubr.msk.bf16.gmra.mrb[28].mxu1 %vm1297_vm2, %v2362_v19 }
 0x5f0   : > { %4650 = vmatprep.mubr.msk.bf16.mxu1 %vm1297_vm2, %v2363_v21 }
 0x5f7   : > { %4651 = vmatmul.mubr.msk.bf16.gmra.mrb[32].mxu1 %vm1297_vm2, %v2364_v30 }
 0x5f8   : > { %4654 = vmatprep.mubr.msk.bf16.mxu1 %vm1297_vm2, %v2365_v32 }
 0x5ff   : > { %4655 = vmatmul.mubr.msk.bf16.gmra.mrb[36].mxu1 %vm1297_vm2, %v2366_v37 }
 0x600   : > { %4658 = vmatprep.mubr.msk.bf16.mxu1 %vm1297_vm2, %v2367_v38 }
 0x607   : > { %4659 = vmatmul.mubr.msk.bf16.gmra.mrb[40].mxu1 %vm1297_vm2, %v2368_v31 }
 0x608   : > { %4662 = vmatprep.mubr.msk.bf16.mxu1 %vm1297_vm2, %v2369_v43 }
 0x60f   : > { %4663 = vmatmul.mubr.msk.bf16.gmra.mrb[44].mxu1 %vm1297_vm2, %v2370_v46 }
 0x6aa   : > { %v4636_v15 = vpop.f32.mrb[16].mxu1 }
 0x6ab   : > { %v3028_v23 = vadd.f32 %v4636_v15, %v5968_v13  ;;  %v2892_v28 = vpop.f32.mrb[17].mxu1 }
 0x6ac   : > { %v3026_v50 = vadd.f32 %v5968_v13, %v2892_v28  ;;  %v4637_v51 = vpop.f32.mrb[18].mxu1 }
 0x6ad   : > { %v3029_v52 = vadd.f32 %v4637_v51, %v5968_v13  ;;  %v2895_v26 = vpop.f32.mrb[19].mxu1  ;;  %v3060_v53 = vmax.f32 %v3028_v23, 0.0 }
 0x6ae   : > { %v3027_v29 = vadd.f32 %v5968_v13, %v2895_v26  ;;  %v3058_v55 = vmax.f32 %v3026_v50, 0.0 }
 0x6af   : > { %v3061_v54 = vmax.f32 %v3029_v52, 0.0 }
 0x6b0   : > { %v3059_v56 = vmax.f32 %v3027_v29, 0.0 }
 0x6b1   : > { %v3091_v57 = vpack.c.bf16 %v3061_v54, %v3060_v53 }
 0x6b2   : > { %v3090_v58 = vpack.c.bf16 %v3059_v56, %v3058_v55  ;;  %v4640_v59 = vpop.f32.mrb[20].mxu1 }
 0x6b3   : > { %v3032_v60 = vadd.f32 %v4640_v59, %v5968_v13  ;;  %v2908_v61 = vpop.f32.mrb[21].mxu1 }
 0x6b4   : > { %v3030_v62 = vadd.f32 %v5968_v13, %v2908_v61  ;;  %v4641_v63 = vpop.f32.mrb[22].mxu1  ;;  %4670 = vmatprep.mubr.msk.bf16.mxu0 %vm752_vm1, %v3090_v58  ;;  %4706 = vmatprep.mubr.msk.bf16.mxu1 %vm752_vm1, %v3090_v58 }
 0x6b5   : > { %v3033_v1 = vadd.f32 %v4641_v63, %v5968_v13  ;;  %v2911_v2 = vpop.f32.mrb[23].mxu1  ;;  %4671 = vmatmul.mubr.msk.bf16.vlgmr.msra.gmra.mrb[24].mxu0 %vm752_vm1, %v3091_v57  ;;  %4707 = vmatmul.mubr.msk.bf16.vlgmr.msra.gmra.mrb[48].mxu1 %vm752_vm1, %v3091_v57  ;;  %v3064_v4 = vmax.f32 %v3032_v60, 0.0 }
 0x6b6   : > { %v3031_v3 = vadd.f32 %v5968_v13, %v2911_v2  ;;  %v3062_v6 = vmax.f32 %v3030_v62, 0.0 }
 0x6b7   : > { %v3065_v5 = vmax.f32 %v3033_v1, 0.0 }
 0x6b8   : > { %v3063_v7 = vmax.f32 %v3031_v3, 0.0 }
 0x6b9   : > { %v3093_v8 = vpack.c.bf16 %v3065_v5, %v3064_v4 }
 0x6ba   : > { %v3092_v9 = vpack.c.bf16 %v3063_v7, %v3062_v6  ;;  %v4644_v10 = vpop.f32.mrb[24].mxu1 }
 0x6bb   : > { %v3036_v11 = vadd.f32 %v4644_v10, %v5968_v13  ;;  %v2924_v14 = vpop.f32.mrb[25].mxu1 }
 0x6bc   : > { %v3034_v16 = vadd.f32 %v5968_v13, %v2924_v14  ;;  %v4645_v17 = vpop.f32.mrb[26].mxu1  ;;  %4674 = vmatprep.mubr.msk.bf16.mxu0 %vm752_vm1, %v3092_v9  ;;  %4710 = vmatprep.mubr.msk.bf16.mxu1 %vm752_vm1, %v3092_v9 }
 0x6bd   : > { %v3037_v18 = vadd.f32 %v4645_v17, %v5968_v13  ;;  %v2927_v19 = vpop.f32.mrb[27].mxu1  ;;  %4675 = vmatmul.mubr.msk.bf16.gmra.mrb[28].mxu0 %vm752_vm1, %v3093_v8  ;;  %4711 = vmatmul.mubr.msk.bf16.gmra.mrb[52].mxu1 %vm752_vm1, %v3093_v8  ;;  %v3068_v21 = vmax.f32 %v3036_v11, 0.0 }
 0x6be   : > { %v3035_v20 = vadd.f32 %v5968_v13, %v2927_v19  ;;  %v3066_v24 = vmax.f32 %v3034_v16, 0.0 }
 0x6bf   : > { %v3069_v22 = vmax.f32 %v3037_v18, 0.0 }
 0x6c0   : > { %v3067_v25 = vmax.f32 %v3035_v20, 0.0 }
 0x6c1   : > { %v3095_v27 = vpack.c.bf16 %v3069_v22, %v3068_v21 }
 0x6c2   : > { %v3094_v30 = vpack.c.bf16 %v3067_v25, %v3066_v24  ;;  %v4648_v32 = vpop.f32.mrb[28].mxu1 }
 0x6c3   : > { %v3040_v33 = vadd.f32 %v4648_v32, %v5968_v13  ;;  %v2940_v34 = vpop.f32.mrb[29].mxu1 }
 0x6c4   : > { %v3038_v35 = vadd.f32 %v5968_v13, %v2940_v34  ;;  %v4649_v36 = vpop.f32.mrb[30].mxu1  ;;  %4678 = vmatprep.mubr.msk.bf16.mxu0 %vm752_vm1, %v3094_v30  ;;  %4714 = vmatprep.mubr.msk.bf16.mxu1 %vm752_vm1, %v3094_v30 }
 0x6c5   : > { %v3041_v37 = vadd.f32 %v4649_v36, %v5968_v13  ;;  %v2943_v38 = vpop.f32.mrb[31].mxu1  ;;  %4679 = vmatmul.mubr.msk.bf16.gmra.mrb[32].mxu0 %vm752_vm1, %v3095_v27  ;;  %4715 = vmatmul.mubr.msk.bf16.gmra.mrb[56].mxu1 %vm752_vm1, %v3095_v27  ;;  %v3072_v40 = vmax.f32 %v3040_v33, 0.0 }
 0x6c6   : > { %v3039_v39 = vadd.f32 %v5968_v13, %v2943_v38  ;;  %v3070_v42 = vmax.f32 %v3038_v35, 0.0 }
 0x6c7   : > { %v3073_v41 = vmax.f32 %v3041_v37, 0.0 }
 0x6c8   : > { %v3071_v31 = vmax.f32 %v3039_v39, 0.0 }
 0x6c9   : > { %v3097_v43 = vpack.c.bf16 %v3073_v41, %v3072_v40  ;;  %v6037_v40 = vld [vmem:[%s6490_s11] sm:$0x3f]   ;;  %v3369_v41 = vld [vmem:[%s6494_s15 + $0x10] sm:$0xff] }
 0x6ca   : > { %v3096_v44 = vpack.c.bf16 %v3071_v31, %v3070_v42  ;;  %v4652_v45 = vpop.f32.mrb[32].mxu1 }
 0x6cb   : > { %v3044_v46 = vadd.f32 %v4652_v45, %v5968_v13  ;;  %v2956_v47 = vpop.f32.mrb[33].mxu1  ;;  %v3370_v45 = vld [vmem:[%s6494_s15 + $0x18] sm:$0xff] }
 0x6cc   : > { %v3042_v48 = vadd.f32 %v5968_v13, %v2956_v47  ;;  %v4653_v49 = vpop.f32.mrb[34].mxu1  ;;  %4682 = vmatprep.mubr.msk.bf16.mxu0 %vm752_vm1, %v3096_v44  ;;  %4718 = vmatprep.mubr.msk.bf16.mxu1 %vm752_vm1, %v3096_v44  ;;  %v3113_v44 = vld [vmem:[%s6492_s13 + $0x18] sm:$0xff] }
 0x6cd   : > { %v3045_v12 = vadd.f32 %v4653_v49, %v5968_v13  ;;  %v2959_v15 = vpop.f32.mrb[35].mxu1  ;;  %4683 = vmatmul.mubr.msk.bf16.gmra.mrb[36].mxu0 %vm752_vm1, %v3097_v43  ;;  %4719 = vmatmul.mubr.msk.bf16.gmra.mrb[60].mxu1 %vm752_vm1, %v3097_v43  ;;  %v3076_v28 = vmax.f32 %v3044_v46, 0.0  ;;  %v3110_v43 = vld [vmem:[%s6492_s13] sm:$0xff]  ;;  %v3111_v49 = vld [vmem:[%s6492_s13 + $0x8] sm:$0xff] }
 0x6ce   : > { %v3043_v23 = vadd.f32 %v5968_v13, %v2959_v15  ;;  %v3074_v51 = vmax.f32 %v3042_v48, 0.0  ;;  %v3367_v48 = vld [vmem:[%s6494_s15] sm:$0xff] }
 0x6cf   : > { %v3077_v50 = vmax.f32 %v3045_v12, 0.0  ;;  %v3368_v12 = vld [vmem:[%s6494_s15 + $0x8] sm:$0xff] }
 0x6d0   : > { %v3075_v52 = vmax.f32 %v3043_v23, 0.0 }
 0x6d1   : > { %v3099_v26 = vpack.c.bf16 %v3077_v50, %v3076_v28 }
 0x6d2   : > { %v3098_v29 = vpack.c.bf16 %v3075_v52, %v3074_v51  ;;  %v4656_v53 = vpop.f32.mrb[36].mxu1 }
 0x6d3   : > { %v3048_v54 = vadd.f32 %v4656_v53, %v5968_v13  ;;  %v2972_v55 = vpop.f32.mrb[37].mxu1 }
 0x6d4   : > { %v3046_v56 = vadd.f32 %v5968_v13, %v2972_v55  ;;  %v4657_v57 = vpop.f32.mrb[38].mxu1  ;;  %4686 = vmatprep.mubr.msk.bf16.mxu0 %vm752_vm1, %v3098_v29  ;;  %4722 = vmatprep.mubr.msk.bf16.mxu1 %vm752_vm1, %v3098_v29 }
 0x6d5   : > { %v3049_v58 = vadd.f32 %v4657_v57, %v5968_v13  ;;  %v2975_v59 = vpop.f32.mrb[39].mxu1  ;;  %4687 = vmatmul.mubr.msk.bf16.gmra.mrb[40].mxu0 %vm752_vm1, %v3099_v26  ;;  %4723 = vmatmul.mubr.msk.bf16.gmra.mrb[64].mxu1 %vm752_vm1, %v3099_v26  ;;  %v3080_v61 = vmax.f32 %v3048_v54, 0.0 }
 0x6d6   : > { %v3047_v60 = vadd.f32 %v5968_v13, %v2975_v59  ;;  %v3078_v63 = vmax.f32 %v3046_v56, 0.0 }
 0x6d7   : > { %v3081_v62 = vmax.f32 %v3049_v58, 0.0  ;;  %v3132_v58 = vld [vmem:[%s6492_s13 + $0xb0] sm:$0xff] }
 0x6d8   : > { %v3079_v1 = vmax.f32 %v3047_v60, 0.0 }
 0x6d9   : > { %v3101_v2 = vpack.c.bf16 %v3081_v62, %v3080_v61  ;;  %v3116_v61 = vld [vmem:[%s6492_s13 + $0x30] sm:$0xff] }
 0x6da   : > { %v3100_v3 = vpack.c.bf16 %v3079_v1, %v3078_v63  ;;  %v4660_v4 = vpop.f32.mrb[40].mxu1  ;;  %v3373_v62 = vld [vmem:[%s6494_s15 + $0x30] sm:$0xff] }
 0x6db   : > { %v3052_v5 = vadd.f32 %v4660_v4, %v5968_v13  ;;  %v2988_v6 = vpop.f32.mrb[41].mxu1  ;;  %v3374_v4 = vld [vmem:[%s6494_s15 + $0x38] sm:$0xff] }
 0x6dc   : > { %v3050_v7 = vadd.f32 %v5968_v13, %v2988_v6  ;;  %v4661_v8 = vpop.f32.mrb[42].mxu1  ;;  %4690 = vmatprep.mubr.msk.bf16.mxu0 %vm752_vm1, %v3100_v3  ;;  %4726 = vmatprep.mubr.msk.bf16.mxu1 %vm752_vm1, %v3100_v3  ;;  %v3117_v3 = vld [vmem:[%s6492_s13 + $0x38] sm:$0xff] }
 0x6dd   : > { %v3053_v9 = vadd.f32 %v4661_v8, %v5968_v13  ;;  %v2991_v10 = vpop.f32.mrb[43].mxu1  ;;  %4691 = vmatmul.mubr.msk.bf16.gmra.mrb[44].mxu0 %vm752_vm1, %v3101_v2  ;;  %4727 = vmatmul.mubr.msk.bf16.gmra.mrb[68].mxu1 %vm752_vm1, %v3101_v2  ;;  %v3084_v14 = vmax.f32 %v3052_v5, 0.0  ;;  %v3114_v2 = vld [vmem:[%s6492_s13 + $0x20] sm:$0xff]  ;;  %v3115_v8 = vld [vmem:[%s6492_s13 + $0x28] sm:$0xff] }
 0x6de   : > { %v3051_v11 = vadd.f32 %v5968_v13, %v2991_v10  ;;  %v3082_v17 = vmax.f32 %v3050_v7, 0.0  ;;  %v3371_v7 = vld [vmem:[%s6494_s15 + $0x20] sm:$0xff] }
 0x6df   : > { %v3085_v16 = vmax.f32 %v3053_v9, 0.0  ;;  %v3372_v9 = vld [vmem:[%s6494_s15 + $0x28] sm:$0xff] }
 0x6e0   : > { %v3083_v18 = vmax.f32 %v3051_v11, 0.0 }
 0x6e1   : > { %v3103_v19 = vpack.c.bf16 %v3085_v16, %v3084_v14 }
 0x6e2   : > { %v3102_v20 = vpack.c.bf16 %v3083_v18, %v3082_v17  ;;  %v4664_v21 = vpop.f32.mrb[44].mxu1 }
 0x6e3   : > { %v3056_v22 = vadd.f32 %v4664_v21, %v5968_v13  ;;  %v3004_v24 = vpop.f32.mrb[45].mxu1 }
 0x6e4   : > { %v3054_v25 = vadd.f32 %v5968_v13, %v3004_v24  ;;  %v4665_v27 = vpop.f32.mrb[46].mxu1  ;;  %4694 = vmatprep.mubr.msk.bf16.mxu0 %vm752_vm1, %v3102_v20  ;;  %4730 = vmatprep.mubr.msk.bf16.mxu1 %vm752_vm1, %v3102_v20 }
 0x6e5   : > { %v3057_v30 = vadd.f32 %v4665_v27, %v5968_v13  ;;  %v3007_v32 = vpop.f32.mrb[47].mxu1  ;;  %4695 = vmatmul.mubr.msk.bf16.gmra.mrb[48].mxu0 %vm752_vm1, %v3103_v19  ;;  %4731 = vmatmul.mubr.msk.bf16.gmra.mrb[72].mxu1 %vm752_vm1, %v3103_v19  ;;  %v3088_v34 = vmax.f32 %v3056_v22, 0.0 }
 0x6e6   : > { %v3055_v33 = vadd.f32 %v5968_v13, %v3007_v32  ;;  %v3086_v36 = vmax.f32 %v3054_v25, 0.0  ;;  %v3112_v13 = vld [vmem:[%s6492_s13 + $0x10] sm:$0xff] }
 0x6e7   : > { %v3089_v35 = vmax.f32 %v3057_v30, 0.0 }
 0x6e8   : > { %v3087_v37 = vmax.f32 %v3055_v33, 0.0 }
 0x6e9   : > { %v3105_v38 = vpack.c.bf16 %v3089_v35, %v3088_v34  ;;  %v3120_v34 = vld [vmem:[%s6492_s13 + $0x50] sm:$0xff] }
 0x6ea   : > { %v3104_v39 = vpack.c.bf16 %v3087_v37, %v3086_v36  ;;  %v3377_v35 = vld [vmem:[%s6494_s15 + $0x50] sm:$0xff] }
 0x6ec   : > { %4698 = vmatprep.mubr.msk.bf16.mxu0 %vm752_vm1, %v3104_v39  ;;  %4734 = vmatprep.mubr.msk.bf16.mxu1 %vm752_vm1, %v3104_v39  ;;  %v3121_v39 = vld [vmem:[%s6492_s13 + $0x58] sm:$0xff] }
 0x6ed   : > { %4699 = vmatmul.mubr.msk.bf16.gmra.mrb[52].mxu0 %vm752_vm1, %v3105_v38  ;;  %4735 = vmatmul.mubr.msk.bf16.gmra.mrb[76].mxu1 %vm752_vm1, %v3105_v38  ;;  %v3118_v38 = vld [vmem:[%s6492_s13 + $0x40] sm:$0xff] }
 0x6ee   : > { %4518 = vmatprep.mubr.msk.bf16.mxu0 %vm752_vm1, %v6037_v40 }
 0x788   : > { %v4672_v42 = vpop.f32.mrb[24].mxu0  ;;  %v4708_v31 = vpop.f32.mrb[48].mxu1 }
 0x789   : > { %v3236_v46 = vpop.f32.mrb[25].mxu0  ;;  %v3445_v47 = vpop.f32.mrb[49].mxu1  ;;  %v6065_v28 = vadd.f32 %v4672_v42, %v3112_v13  ;;  %v6067_v50 = vadd.f32 %v4708_v31, %v3369_v41  ;;  %v3378_v13 = vld [vmem:[%s6494_s15 + $0x58] sm:$0xff]  ;;  %v3375_v31 = vld [vmem:[%s6494_s15 + $0x40] sm:$0xff] }
 0x78a   : > { %v4673_v15 = vpop.f32.mrb[26].mxu0  ;;  %v4709_v23 = vpop.f32.mrb[50].mxu1  ;;  %v6073_v53 = vadd.f32 %v3236_v46, %v3110_v43  ;;  %v6075_v54 = vadd.f32 %v3445_v47, %v3367_v48  ;;  %v3119_v43 = vld [vmem:[%s6492_s13 + $0x48] sm:$0xff] }
 0x78b   : > { %v6069_v51 = vadd.f32 %v4673_v15, %v3113_v44  ;;  %v6071_v52 = vadd.f32 %v4709_v23, %v3370_v45  ;;  %v3239_v26 = vpop.f32.mrb[27].mxu0  ;;  %v3448_v29 = vpop.f32.mrb[51].mxu1  ;;  %v3376_v44 = vld [vmem:[%s6494_s15 + $0x48] sm:$0xff] }
 0x78c   : > { %v6077_v55 = vadd.f32 %v3239_v26, %v3111_v49  ;;  %v6079_v56 = vadd.f32 %v3448_v29, %v3368_v12 }
 0x78e   : > { %v3574_v59 = vpack.c.bf16 %v6077_v55, %v6073_v53  ;;  %v3726_v60 = vpack.c.bf16 %v6079_v56, %v6075_v54  ;;  %v3131_v53 = vld [vmem:[%s6492_s13 + $0xa8] sm:$0xff] }
 0x78f   : > { %v3388_v55 = vld [vmem:[%s6494_s15 + $0xa8] sm:$0xff] }
 0x790   : > { %v4676_v63 = vpop.f32.mrb[28].mxu0  ;;  %v4712_v1 = vpop.f32.mrb[52].mxu1 }
 0x791   : > { %v3252_v5 = vpop.f32.mrb[29].mxu0  ;;  %v3461_v6 = vpop.f32.mrb[53].mxu1  ;;  %v6113_v14 = vadd.f32 %v4676_v63, %v3116_v61  ;;  %v6115_v16 = vadd.f32 %v4712_v1, %v3373_v62 }
 0x792   : > { %v4677_v10 = vpop.f32.mrb[30].mxu0  ;;  %v4713_v11 = vpop.f32.mrb[54].mxu1  ;;  %v6121_v21 = vadd.f32 %v3252_v5, %v3114_v2  ;;  %v6123_v22 = vadd.f32 %v3461_v6, %v3371_v7  ;;  %v3381_v5 = vld [vmem:[%s6494_s15 + $0x70] sm:$0xff] }
 0x793   : > { %v6117_v17 = vadd.f32 %v4677_v10, %v3117_v3  ;;  %v6119_v18 = vadd.f32 %v4713_v11, %v3374_v4  ;;  %v3255_v19 = vpop.f32.mrb[31].mxu0  ;;  %v3464_v20 = vpop.f32.mrb[55].mxu1  ;;  %v3124_v4 = vld [vmem:[%s6492_s13 + $0x70] sm:$0xff]  ;;  %v3382_v10 = vld [vmem:[%s6494_s15 + $0x78] sm:$0xff] }
 0x794   : > { %v6125_v24 = vadd.f32 %v3255_v19, %v3115_v8  ;;  %v6127_v25 = vadd.f32 %v3464_v20, %v3372_v9  ;;  %v3122_v8 = vld [vmem:[%s6492_s13 + $0x60] sm:$0xff]  ;;  %v3125_v9 = vld [vmem:[%s6492_s13 + $0x78] sm:$0xff] }
 0x795   : > { %v3379_v20 = vld [vmem:[%s6494_s15 + $0x60] sm:$0xff] }
 0x798   : > { %v4680_v36 = vpop.f32.mrb[32].mxu0  ;;  %v4716_v37 = vpop.f32.mrb[56].mxu1 }
 0x799   : > { %v3268_v41 = vpop.f32.mrb[33].mxu0  ;;  %v3477_v42 = vpop.f32.mrb[57].mxu1  ;;  %v6161_v47 = vadd.f32 %v4680_v36, %v3120_v34  ;;  %v6163_v48 = vadd.f32 %v4716_v37, %v3377_v35  ;;  %v3123_v34 = vld [vmem:[%s6492_s13 + $0x68] sm:$0xff] }
 0x79a   : > { %v4681_v45 = vpop.f32.mrb[34].mxu0  ;;  %v4717_v46 = vpop.f32.mrb[58].mxu1  ;;  %v6169_v26 = vadd.f32 %v3268_v41, %v3118_v38  ;;  %v6171_v29 = vadd.f32 %v3477_v42, %v3375_v31  ;;  %v3380_v35 = vld [vmem:[%s6494_s15 + $0x68] sm:$0xff] }
 0x79b   : > { %v6165_v49 = vadd.f32 %v4681_v45, %v3121_v39  ;;  %v6167_v12 = vadd.f32 %v4717_v46, %v3378_v13  ;;  %v3271_v15 = vpop.f32.mrb[35].mxu0  ;;  %v3480_v23 = vpop.f32.mrb[59].mxu1 }
 0x79c   : > { %v6173_v61 = vadd.f32 %v3271_v15, %v3119_v43  ;;  %v6175_v62 = vadd.f32 %v3480_v23, %v3376_v44 }
 0x7a0   : > { %v4684_v6 = vpop.f32.mrb[36].mxu0  ;;  %v4720_v7 = vpop.f32.mrb[60].mxu1 }
 0x7a1   : > { %v3284_v11 = vpop.f32.mrb[37].mxu0  ;;  %v3493_v19 = vpop.f32.mrb[61].mxu1  ;;  %v6209_v38 = vadd.f32 %v4684_v6, %v3124_v4  ;;  %v6211_v39 = vadd.f32 %v4720_v7, %v3381_v5  ;;  %v3128_v6 = vld [vmem:[%s6492_s13 + $0x90] sm:$0xff] }
 0x7a2   : > { %v4685_v36 = vpop.f32.mrb[38].mxu0  ;;  %v4721_v37 = vpop.f32.mrb[62].mxu1  ;;  %v6217_v43 = vadd.f32 %v3284_v11, %v3122_v8  ;;  %v6219_v44 = vadd.f32 %v3493_v19, %v3379_v20  ;;  %v3385_v7 = vld [vmem:[%s6494_s15 + $0x90] sm:$0xff]  ;;  %v3129_v11 = vld [vmem:[%s6492_s13 + $0x98] sm:$0xff] }
 0x7a3   : > { %v6213_v13 = vadd.f32 %v4685_v36, %v3125_v9  ;;  %v6215_v41 = vadd.f32 %v4721_v37, %v3382_v10  ;;  %v3287_v42 = vpop.f32.mrb[39].mxu0  ;;  %v3496_v31 = vpop.f32.mrb[63].mxu1  ;;  %v3126_v10 = vld [vmem:[%s6492_s13 + $0x80] sm:$0xff]  ;;  %v3386_v19 = vld [vmem:[%s6494_s15 + $0x98] sm:$0xff]  ;;  %v3127_v36 = vld [vmem:[%s6492_s13 + $0x88] sm:$0xff] }
 0x7a4   : > { %v6221_v45 = vadd.f32 %v3287_v42, %v3123_v34  ;;  %v6223_v46 = vadd.f32 %v3496_v31, %v3380_v35  ;;  %v3383_v35 = vld [vmem:[%s6494_s15 + $0x80] sm:$0xff]  ;;  %v3384_v37 = vld [vmem:[%s6494_s15 + $0x88] sm:$0xff] }
 0x7a8   : > { %v4688_v8 = vpop.f32.mrb[40].mxu0  ;;  %v4724_v9 = vpop.f32.mrb[64].mxu1 }
 0x7a9   : > { %v3300_v20 = vpop.f32.mrb[41].mxu0  ;;  %v3509_v34 = vpop.f32.mrb[65].mxu1  ;;  %v3309_v15 = vadd.f32 %v4688_v8, %v3128_v6  ;;  %v3518_v4 = vadd.f32 %v4724_v9, %v3385_v7  ;;  %v3389_v6 = vld [vmem:[%s6494_s15 + $0xb0] sm:$0xff] }
 0x7aa   : > { %v4689_v42 = vpop.f32.mrb[42].mxu0  ;;  %v4725_v31 = vpop.f32.mrb[66].mxu1  ;;  %v3301_v5 = vadd.f32 %v3300_v20, %v3126_v10  ;;  %v3510_v27 = vadd.f32 %v3509_v34, %v3383_v35  ;;  %v3136_v34 = vld [vmem:[%s6492_s13 + $0xd0] sm:$0xff] }
 0x7ab   : > { %v3312_v63 = vadd.f32 %v4689_v42, %v3129_v11  ;;  %v3521_v2 = vadd.f32 %v4725_v31, %v3386_v19  ;;  %v3303_v0 = vpop.f32.mrb[43].mxu0  ;;  %v3512_v23 = vpop.f32.mrb[67].mxu1  ;;  %v3393_v35 = vld [vmem:[%s6494_s15 + $0xd0] sm:$0xff]  ;;  %v3134_v42 = vld [vmem:[%s6492_s13 + $0xc0] sm:$0xff]  ;;  %v3137_v31 = vld [vmem:[%s6492_s13 + $0xd8] sm:$0xff] }
 0x7ac   : > { %v3304_v1 = vadd.f32 %v3303_v0, %v3127_v36  ;;  %v3513_v3 = vadd.f32 %v3512_v23, %v3384_v37  ;;  %v3130_v0 = vld [vmem:[%s6492_s13 + $0xa0] sm:$0xff] }
 0x7ad   : > { %v3583_v32 = vpack.c.bf16 %v3312_v63, %v3309_v15  ;;  %v3735_v30 = vpack.c.bf16 %v3521_v2, %v3518_v4  ;;  %v3133_v63 = vld [vmem:[%s6492_s13 + $0xb8] sm:$0xff] }
 0x7ae   : > { %v3582_v33 = vpack.c.bf16 %v3304_v1, %v3301_v5  ;;  %v3734_v57 = vpack.c.bf16 %v3513_v3, %v3510_v27  ;;  %v3599_v27 = vsel %vm752_vm1, %v3574_v59, 0  ;;  %v3390_v1 = vld [vmem:[%s6494_s15 + $0xb8] sm:$0xff] }
 0x7b0   : > { %v4692_v7 = vpop.f32.mrb[44].mxu0  ;;  %v4728_v8 = vpop.f32.mrb[68].mxu1  ;;  %4824 = vmatprep.subr.msk.bf16.mxu0 %vm752_vm1, %v3582_v33  ;;  %4520 = vmatprep.subr.bf16.mxu1 %v3734_v57  ;;  %v3387_v57 = vld [vmem:[%s6494_s15 + $0xa0] sm:$0xff] }
 0x7b1   : > { %v3316_v2 = vpop.f32.mrb[45].mxu0  ;;  %v3525_v33 = vpop.f32.mrb[69].mxu1  ;;  %4503 = vmatpush3.bf16.xpose.msra.mxu0 %v3599_v27  ;;  %4521 = vmatpush3.bf16.msra.mxu1 %v3726_v60  ;;  %v6290_v15 = vadd.f32 %v4692_v7, %v3132_v58  ;;  %v3534_v23 = vadd.f32 %v4728_v8, %v3389_v6  ;;  %v3394_v6 = vld [vmem:[%s6494_s15 + $0xd8] sm:$0xff]  ;;  %v3392_v27 = vld [vmem:[%s6494_s15 + $0xc8] sm:$0xff] }
 0x7b2   : > { %v4693_v59 = vpop.f32.mrb[46].mxu0  ;;  %v4729_v3 = vpop.f32.mrb[70].mxu1  ;;  %4825 = vmatprep.subr.msk.bf16.mxu0 %vm752_vm1, %v3583_v32  ;;  %4522 = vmatprep.subr.bf16.mxu1 %v3735_v30  ;;  %v3317_v5 = vadd.f32 %v3316_v2, %v3130_v0  ;;  %v3526_v9 = vadd.f32 %v3525_v33, %v3387_v57  ;;  %v6531_v32 = vpack.c.bf16 %v6071_v52, %v6067_v50  ;;  %v3391_v0 = vld [vmem:[%s6494_s15 + $0xc0] sm:$0xff] }
 0x7b3   : > { %v6292_v4 = vadd.f32 %v4693_v59, %v3133_v63  ;;  %v3537_v54 = vadd.f32 %v4729_v3, %v3390_v1  ;;  %v3319_v56 = vpop.f32.mrb[47].mxu0  ;;  %v3528_v60 = vpop.f32.mrb[71].mxu1  ;;  %v6532_v50 = vpack.c.bf16 %v6069_v51, %v6065_v28  ;;  %v6533_v28 = vpack.c.bf16 %v6127_v25, %v6123_v22  ;;  %v3135_v51 = vld [vmem:[%s6492_s13 + $0xc8] sm:$0xff] }
 0x7b4   : > { %v3320_v10 = vadd.f32 %v3319_v56, %v3131_v53  ;;  %v3529_v11 = vadd.f32 %v3528_v60, %v3388_v55 }
 0x7b5   : > { %v3585_v19 = vpack.c.bf16 %v6292_v4, %v6290_v15  ;;  %v3737_v20 = vpack.c.bf16 %v3537_v54, %v3534_v23  ;;  %4523 = vmatpush3.bf16.msra.mxu1 %v6531_v32  ;;  %v3602_v52 = vsel %vm752_vm1, %v6532_v50, 0  ;;  %v6534_v54 = vpack.c.bf16 %v6119_v18, %v6115_v16  ;;  %v3141_v32 = vld [vmem:[%s6492_s13 + $0xf8] sm:$0xff] }
 0x7b6   : > { %v3584_v58 = vpack.c.bf16 %v3320_v10, %v3317_v5  ;;  %v3736_v30 = vpack.c.bf16 %v3529_v11, %v3526_v9  ;;  %v3140_v5 = vld [vmem:[%s6492_s13 + $0xf0] sm:$0xff]  ;;  %v6535_v16 = vpack.c.bf16 %v6125_v24, %v6121_v21  ;;  %v6536_v21 = vpack.c.bf16 %v6175_v62, %v6171_v29  ;;  %v3139_v24 = vld [vmem:[%s6492_s13 + $0xe8] sm:$0xff] }
 0x7b7   : > { %v3397_v9 = vld [vmem:[%s6494_s15 + $0xf0] sm:$0xff] }
 0x7b8   : > { %v4696_v36 = vpop.f32.mrb[48].mxu0  ;;  %v4732_v37 = vpop.f32.mrb[72].mxu1  ;;  %4524 = vmatprep.subr.bf16.mxu1 %v3736_v30  ;;  %v3605_v18 = vsel %vm752_vm1, %v6535_v16, 0 }
 0x7b9   : > { %v3332_v7 = vpop.f32.mrb[49].mxu0  ;;  %v3541_v8 = vpop.f32.mrb[73].mxu1  ;;  %4505 = vmatpush3.bf16.xpose.msra.mxu0 %v3602_v52  ;;  %4525 = vmatpush3.bf16.msra.mxu1 %v6533_v28  ;;  %v3341_v2 = vadd.f32 %v4696_v36, %v3136_v34  ;;  %v3550_v33 = vadd.f32 %v4732_v37, %v3393_v35  ;;  %v3395_v35 = vld [vmem:[%s6494_s15 + $0xe0] sm:$0xff]  ;;  %v3396_v36 = vld [vmem:[%s6494_s15 + $0xe8] sm:$0xff] }
 0x7ba   : > { %v4697_v63 = vpop.f32.mrb[50].mxu0  ;;  %v4733_v1 = vpop.f32.mrb[74].mxu1  ;;  %4826 = vmatprep.subr.msk.bf16.mxu0 %vm752_vm1, %v3584_v58  ;;  %4526 = vmatprep.subr.bf16.mxu1 %v3737_v20  ;;  %v3333_v25 = vadd.f32 %v3332_v7, %v3134_v42  ;;  %v3542_v59 = vadd.f32 %v3541_v8, %v3391_v0  ;;  %v3138_v20 = vld [vmem:[%s6492_s13 + $0xe0] sm:$0xff]  ;;  %v3398_v58 = vld [vmem:[%s6494_s15 + $0xf8] sm:$0xff] }
 0x7bb   : > { %v3344_v57 = vadd.f32 %v4697_v63, %v3137_v31  ;;  %v3553_v53 = vadd.f32 %v4733_v1, %v3394_v6  ;;  %v3335_v55 = vpop.f32.mrb[51].mxu0  ;;  %v3544_v22 = vpop.f32.mrb[75].mxu1  ;;  %v6537_v63 = vpack.c.bf16 %v6167_v12, %v6163_v48  ;;  %v6540_v48 = vpack.c.bf16 %v6215_v41, %v6211_v39 }
 0x7bc   : > { %v3336_v3 = vadd.f32 %v3335_v55, %v3135_v51  ;;  %v3545_v15 = vadd.f32 %v3544_v22, %v3392_v27  ;;  %v6541_v12 = vmov 0.0   ;;  %v6544_v39 = vpack.c.bf16 %v6221_v45, %v6217_v43 }
 0x7bd   : > { %v3587_v23 = vpack.c.bf16 %v3344_v57, %v3341_v2  ;;  %v3739_v4 = vpack.c.bf16 %v3553_v53, %v3550_v33  ;;  %4527 = vmatpush3.bf16.msra.mxu1 %v6534_v54  ;;  %v6539_v57 = vpack.c.bf16 %v6223_v46, %v6219_v44  ;;  %v6542_v53 = vpack.c.bf16 %v6173_v61, %v6169_v26 }
 0x7be   : > { %v3586_v56 = vpack.c.bf16 %v3336_v3, %v3333_v25  ;;  %v3738_v60 = vpack.c.bf16 %v3545_v15, %v3542_v59  ;;  %v3617_v41 = vsel %vm752_vm1, %v6544_v39, 0  ;;  %v6545_v26 = vpack.c.bf16 %v6213_v13, %v6209_v38  ;;  %v5100_v39 = vld [vmem:[%s6499_s20 + $0x18] sm:$0xff]  }
 0x7c0   : > { %v4700_v10 = vpop.f32.mrb[52].mxu0  ;;  %v4736_v11 = vpop.f32.mrb[76].mxu1  ;;  %4528 = vmatprep.subr.bf16.mxu1 %v3738_v60  ;;  %v3620_v61 = vsel %vm752_vm1, %v6545_v26, 0 }
 0x7c1   : > { %v3348_v30 = vpop.f32.mrb[53].mxu0  ;;  %v3557_v34 = vpop.f32.mrb[77].mxu1  ;;  %4507 = vmatpush3.bf16.xpose.msra.mxu0 %v3605_v18  ;;  %4529 = vmatpush3.bf16.msra.mxu1 %v6536_v21  ;;  %v3357_v50 = vadd.f32 %v4700_v10, %v3140_v5  ;;  %v3566_v52 = vadd.f32 %v4736_v11, %v3397_v9 }
 0x7c2   : > { %v4701_v37 = vpop.f32.mrb[54].mxu0  ;;  %v4737_v42 = vpop.f32.mrb[78].mxu1  ;;  %4827 = vmatprep.subr.msk.bf16.mxu0 %vm752_vm1, %v3585_v19  ;;  %4530 = vmatprep.subr.bf16.mxu1 %v3739_v4  ;;  %v3349_v62 = vadd.f32 %v3348_v30, %v3138_v20  ;;  %v3558_v8 = vadd.f32 %v3557_v34, %v3395_v35  ;;  %v6538_v19 = vpack.c.bf16 %v6117_v17, %v6113_v14  ;;  %v3611_v14 = vsel %vm752_vm1, %v6542_v53, 0  ;;  %v5097_v53 = vld [vmem:[%s6499_s20] sm:$0xff]  }
 0x7c3   : > { %v3360_v31 = vadd.f32 %v4701_v37, %v3141_v32  ;;  %v3569_v6 = vadd.f32 %v4737_v42, %v3398_v58  ;;  %v3351_v7 = vpop.f32.mrb[55].mxu0  ;;  %v3560_v29 = vpop.f32.mrb[79].mxu1  ;;  %v6543_v17 = vpack.c.bf16 %v6165_v49, %v6161_v47 }
 0x7c4   : > { %v3352_v0 = vadd.f32 %v3351_v7, %v3139_v24  ;;  %v3561_v28 = vadd.f32 %v3560_v29, %v3396_v36  ;;  %v3608_v33 = vsel %vm752_vm1, %v6538_v19, 0 }
 0x7c5   : > { %v3589_v51 = vpack.c.bf16 %v3360_v31, %v3357_v50  ;;  %v3741_v27 = vpack.c.bf16 %v3569_v6, %v3566_v52  ;;  %4531 = vmatpush3.bf16.msra.mxu1 %v6537_v63  ;;  %v3614_v44 = vsel %vm752_vm1, %v6543_v17, 0  ;;  %v5093_v50 = vld [vmem:[%s6495_s16] sm:$0xff]   ;;  %v5094_v52 = vld [vmem:[%s6495_s16 + $0x8] sm:$0xff]  }
 0x7c6   : > { %v3588_v1 = vpack.c.bf16 %v3352_v0, %v3349_v62  ;;  %v3740_v2 = vpack.c.bf16 %v3561_v28, %v3558_v8  ;;  %v5095_v28 = vld [vmem:[%s6497_s18] sm:$0xff]   ;;  %v5098_v17 = vld [vmem:[%s6499_s20 + $0x8] sm:$0xff]  }
 0x7c8   : > { %4532 = vmatprep.subr.bf16.mxu1 %v3740_v2 }
 0x7c9   : > { %4509 = vmatpush3.bf16.xpose.msra.mxu0 %v3608_v33  ;;  %4533 = vmatpush3.bf16.msra.mxu1 %v6539_v57 }
 0x7ca   : > { %4828 = vmatprep.subr.msk.bf16.mxu0 %vm752_vm1, %v3586_v56  ;;  %4534 = vmatprep.subr.bf16.mxu1 %v3741_v27  ;;  %v3783_v27 = vld [vmem:[%s6496_s17] sm:$0xff] }
 0x7cd   : > { %4535 = vmatpush3.bf16.msra.mxu1 %v6540_v48 }
 0x7ce   : > { %4766 = vmatprep.subr.bf16.mxu1 %v6541_v12 }
 0x7d1   : > { %4511 = vmatpush3.bf16.xpose.msra.mxu0 %v3611_v14 }
 0x7d2   : > { %4829 = vmatprep.subr.msk.bf16.mxu0 %vm752_vm1, %v3587_v23 }
 0x7d9   : > { %4513 = vmatpush3.bf16.xpose.msra.mxu0 %v3614_v44  ;;  %v5099_v44 = vld [vmem:[%s6499_s20 + $0x10] sm:$0xff]  }
 0x7da   : > { %4830 = vmatprep.subr.msk.bf16.mxu0 %vm752_vm1, %v3588_v1  ;;  %v3784_v1 = vld [vmem:[%s6496_s17 + $0x8] sm:$0xf] }
 0x7e1   : > { %4515 = vmatpush3.bf16.xpose.msra.mxu0 %v3617_v41  ;;  %v4396_v41 = vld [vmem:[%s6498_s19] ss:$0 sm:$0xff] }
 0x7e2   : > { %4831 = vmatprep.subr.msk.bf16.mxu0 %vm752_vm1, %v3589_v51  ;;  %v5096_v51 = vld [vmem:[%s6497_s18 + $0x8] sm:$0xff]  }
 0x7e9   : > { %4517 = vmatpush3.bf16.xpose.msra.mxu0 %v3620_v61 }
 0x7ea   : > { %4738 = vmatprep.subr.bf16.mxu0 %v6541_v12 }
 0x7f0   : > { %4519 = vmatmul.mubr.msk.bf16.vlgmr.msra.gmra.mrb[56].mxu0 %vm752_vm1, %v6037_v40 }
 0x7f1   : > { %4742 = vmatprep.mubr.msk.bf16.mxu0 %vm5124_vm0, %v6541_v12  ;;  %4739 = vmatpush3.bf16.msra.mxu0 %v5093_v50 }
 0x7f2   : > { %4740 = vmatprep.subr.bf16.mxu0 %v6541_v12 }
 0x7f5   : > { %4741 = vmatpush3.bf16.msra.mxu0 %v5094_v52 }
 0x7f6   : > { %4746 = vmatprep.subr.bf16.mxu0 %v6541_v12 }
 0x8c3   : > { %v3680_v47 = vpop.f32.mrb[56].mxu0 }
 0x8c4   : > { %v3682_v49 = vpop.f32.mrb[57].mxu0 }
 0x8c5   : > { %v3684_v43 = vpop.f32.mrb[58].mxu0  ;;  %v3689_v45 = vmax.f32 %v3680_v47, %v3682_v49 }
 0x8c6   : > { %v3693_v46 = vsel %vm3692_vm4, %v3684_v43, -inf  ;;  %v3686_v55 = vpop.f32.mrb[59].mxu0 }
 0x8c7   : > { %v3694_v38 = vsel %vm3692_vm4, %v3686_v55, -inf  ;;  %3690 = vmax.xlane.f32.xlu1 %v3689_v45 }
 0x8c8   : > { %v3695_v13 = vmax.f32 %v3693_v46, %v3694_v38 }
 0x8ca   : > { %3696 = vmax.xlane.f32.xlu0 %v3695_v13  ;;  %v5101_v13 = vld [vmem:[%s6501_s22] sm:$0xff]  }
 0x954   : > { %v3691_v22 = vpop.xlane.xlu1 %3690 }
 0x955   : > { %v3698_v25 = vsub.f32 %v3680_v47, %v3691_v22  ;;  %v3699_v59 = vsub.f32 %v3682_v49, %v3691_v22  ;;  %v5102_v22 = vld [vmem:[%s6501_s22 + $0x8] sm:$0xff]  }
 0x957   : > { %v3702_v40 = vmul.f32 1.442695, %v3698_v25  ;;  %v3704_v3 = vmul.f32 1.442695, %v3699_v59  ;;  %v3697_v15 = vpop.xlane.xlu0 %3696 }
 0x958   : > { %v3700_v23 = vsub.f32 %v3684_v43, %v3697_v15  ;;  %v3701_v4 = vsub.f32 %v3686_v55, %v3697_v15 }
 0x959   : > { %5103 = vpow2.f32 %v3702_v40 }
 0x95a   : > { %5105 = vpow2.f32 %v3704_v3  ;;  %v3706_v54 = vmul.f32 1.442695, %v3700_v23  ;;  %v3708_v56 = vmul.f32 1.442695, %v3701_v4  ;;  %v4405_v3 = vld [vmem:[%s6500_s21] ss:$0 sm:$0xff] }
 0x95c   : > { %5107 = vpow2.f32 %v3706_v54 }
 0x95d   : > { %5109 = vpow2.f32 %v3708_v56 }
 0x963   : > { %v5104_v60 = vpop.eup %5103 }
 0x964   : > { %v5106_v5 = vpop.eup %5105 }
 0x965   : > { %v3710_v9 = vadd.f32 %v5106_v5, %v5104_v60 }
 0x966   : > { %v5108_v10 = vpop.eup %5107 }
 0x967   : > { %v5110_v11 = vpop.eup %5109  ;;  %3711 = vadd.xlane.f32.xlu0 %v3710_v9  ;;  %v3713_v20 = vsel %vm3692_vm4, %v5108_v10, 0.0 }
 0x968   : > { %v3714_v16 = vsel %vm3692_vm4, %v5110_v11, 0.0 }
 0x969   : > { %v3715_v18 = vadd.f32 %v3714_v16, %v3713_v20 }
 0x96b   : > { %3716 = vadd.xlane.f32.xlu0 %v3715_v18 }
 0x9f4   : > { %v3712_v32 = vpop.xlane.xlu0 %3711 }
 0x9f5   : > { %5111 = vrcp.f32 %v3712_v32 }
 0x9f8   : > { %v3717_v58 = vpop.xlane.xlu0 %3716 }
 0x9f9   : > { %5113 = vrcp.f32 %v3717_v58 }
 0x9ff   : > { %v5112_v30 = vpop.eup %5111 }
 0xa00   : > { %v3720_v35 = vmul.f32 %v5112_v30, %v5104_v60  ;;  %v3721_v24 = vmul.f32 %v5112_v30, %v5106_v5 }
 0xa03   : > { %v5114_v34 = vpop.eup %5113 }
 0xa04   : > { %v3722_v21 = vmul.f32 %v5114_v34, %v5108_v10  ;;  %v3723_v36 = vmul.f32 %v5114_v34, %v5110_v11 }
 0xa06   : > { %v3725_v37 = vpack.c.bf16 %v3723_v36, %v3721_v24  ;;  %v3724_v42 = vpack.c.bf16 %v3722_v21, %v3720_v35 }
 0xa08   : > { %3774 = vmatprep.mubr.bf16.mxu1 %v3725_v37 }
 0xa09   : > { %3775 = vmatmul.mubr.bf16.vlgmr.msra.gmra.mrb[80].mxu1 %v3724_v42 }
 0xa0a   : > { %4770 = vmatprep.mubr.msk.bf16.mxu1 %vm5124_vm0, %v6541_v12  ;;  %4767 = vmatpush3.bf16.msra.mxu1 %v5101_v13 }
 0xa0b   : > { %4768 = vmatprep.subr.bf16.mxu1 %v6541_v12 }
 0xa0e   : > { %4769 = vmatpush3.bf16.msra.mxu1 %v5102_v22 }
 0xadc   : > { %v4536_v31 = vpop.f32.mrb[80].mxu1 }
 0xadd   : > { %v4537_v6 = vpop.f32.mrb[81].mxu1 }
 0xade   : > { %v4538_v7 = vadd.f32 %v4537_v6, %v4536_v31  ;;  %v4539_v29 = vpop.f32.mrb[82].mxu1 }
 0xadf   : > { %v4540_v62 = vpop.f32.mrb[83].mxu1 }
 0xae0   : > { %v4541_v8 = vadd.f32 %v4540_v62, %v4539_v29 }
 0xae2   : > { %v3785_v0 = vpack.c.bf16 %v4541_v8, %v4538_v7 }
 0xae4   : > { %4743 = vmatmul.mubr.msk.bf16.vlgmr.msra.gmra.mrb[60].mxu0 %vm752_vm1, %v3785_v0 }
 0xae5   : > { %4750 = vmatprep.mubr.msk.bf16.mxu0 %vm5124_vm0, %v6541_v12  ;;  %4747 = vmatpush3.bf16.msra.mxu0 %v5095_v28 }
 0xae6   : > { %4748 = vmatprep.subr.bf16.mxu0 %v6541_v12 }
 0xae9   : > { %4749 = vmatpush3.bf16.msra.mxu0 %v5096_v51 }
 0xaea   : > { %4754 = vmatprep.subr.bf16.mxu0 %v6541_v12 }
 0xbb7   : > { %v3839_v63 = vpop.f32.mrb[60].mxu0 }
 0xbb8   : > { %v4744_v2 = vpop.f32.mrb[61].mxu0  ;;  %v3846_v33 = vadd.f32 %v3839_v63, %v3783_v27 }
 0xbb9   : > { %v3842_v19 = vpop.f32.mrb[62].mxu0 }
 0xbba   : > { %v3847_v57 = vadd.f32 %v3842_v19, %v3784_v1  ;;  %v4745_v48 = vpop.f32.mrb[63].mxu0 }
 0xbbc   : > { %v3848_v14 = vpack.c.bf16 %v3847_v57, %v3846_v33 }
 0xbbe   : > { %4751 = vmatmul.mubr.msk.bf16.vlgmr.msra.gmra.mrb[64].mxu0 %vm752_vm1, %v3848_v14 }
 0xbbf   : > { %4755 = vmatpush3.bf16.msra.mxu0 %v5097_v53  ;;  %4762 = vmatprep.mubr.msk.bf16.mxu0 %vm5124_vm0, %v6541_v12 }
 0xbc0   : > { %4756 = vmatprep.subr.bf16.mxu0 %v6541_v12 }
 0xbc3   : > { %4757 = vmatpush3.bf16.msra.mxu0 %v5098_v17 }
 0xbc4   : > { %4758 = vmatprep.subr.bf16.mxu0 %v6541_v12 }
 0xbc7   : > { %4759 = vmatpush3.bf16.msra.mxu0 %v5099_v44 }
 0xbc8   : > { %4760 = vmatprep.subr.bf16.mxu0 %v6541_v12  ;;  %v4406_v12 = vld [vmem:[%s6502_s23] ss:$0 sm:$0xff] }
 0xbcb   : > { %4761 = vmatpush3.bf16.msra.mxu0 %v5100_v39 }
 0xc91   : > { %v3909_v26 = vpop.f32.mrb[64].mxu0 }
 0xc92   : > { %v3910_v61 = vadd.f32 %v4396_v41, %v3909_v26  ;;  %v4752_v47 = vpop.f32.mrb[65].mxu0 }
 0xc93   : > { %v3912_v49 = vpop.f32.mrb[66].mxu0 }
 0xc94   : > { %v3913_v43 = vadd.f32 %v4396_v41, %v3912_v49  ;;  %v4753_v45 = vpop.f32.mrb[67].mxu0  ;;  %v3916_v46 = vmax.f32 %v3910_v61, 0.0 }
 0xc96   : > { %v3917_v55 = vmax.f32 %v3913_v43, 0.0 }
 0xc98   : > { %v3918_v38 = vpack.c.bf16 %v3917_v55, %v3916_v46 }
 0xc9a   : > { %4763 = vmatmul.mubr.msk.bf16.vlgmr.msra.gmra.mrb[68].mxu0 %vm2592_vm3, %v3918_v38 }
 0xd6d   : > { %v3988_v25 = vpop.f32.mrb[68].mxu0 }
 0xd6e   : > { %v3995_v59 = vadd.f32 %v3988_v25, %v3846_v33  ;;  %v4764_v40 = vpop.f32.mrb[69].mxu0 }
 0xd6f   : > { %v3991_v15 = vpop.f32.mrb[70].mxu0 }
 0xd70   : > { %v3996_v23 = vadd.f32 %v3991_v15, %v3847_v57  ;;  %v4765_v4 = vpop.f32.mrb[71].mxu0  ;;  %v4004_v54 = vadd.f32 %v4405_v3, %v3995_v59 }
 0xd72   : > { %v4005_v56 = vadd.f32 %v4405_v3, %v3996_v23 }
 0xd74   : > { %v4006_v60 = vpack.c.bf16 %v4005_v56, %v4004_v54 }
 0xd76   : > { %4771 = vmatmul.mubr.msk.bf16.vlgmr.msra.gmra.mrb[84].mxu1 %vm752_vm1, %v4006_v60 }
 0xe49   : > { %v4067_v5 = vpop.f32.mrb[84].mxu1 }
 0xe4a   : > { %v4068_v9 = vadd.f32 %v4406_v12, %v4067_v5  ;;  %v4772_v10 = vpop.f32.mrb[85].mxu1 }
 0xe4b   : > { %v4070_v11 = vpop.f32.mrb[86].mxu1 }
 0xe4c   : > { %4074 = vst [vmem:[%s737_s4] sm:$0xff] %v4068_v9  ;;  %v4071_v20 = vadd.f32 %v4406_v12, %v4070_v11  ;;  %v4773_v16 = vpop.f32.mrb[87].mxu1 }
 0xe4e   : > { %4075 = vst [vmem:[%s737_s4 + $0x8] sm:$0xf] %v4071_v20 }
 0xe4f PF: > { %s34_s5 = sadd.s32 1, %s5121_s5  }
 0xe50   : > { %p31_p4 = scmp.ge.s32.totalorder %s34_s5, 4  }
 0xe52   :  { %33 = sbr.rel (!%p31_p4) target bundleno = 10 (0xa), region = 172 }

</bundles_post_ra>
